<compile_context>
chip_gen: v5e
topology: v5e:2x2
jax: 0.10.0
libtpu: 0.0.40
codegen_flags: <defaults>
</compile_context>

<pallas_src>
import jax
import jax.numpy as jnp
from jax.experimental import pallas as pl
from jax.experimental.pallas import tpu as pltpu

# Logical layer dims (PyTorch module) and padded dims for lane alignment.
D_IN, D_H1, D_H2, D_H3, D_OUT = 100, 256, 512, 1024, 28 * 28
D_IN_PAD = 128          # 100 -> 128   (clean K for the first MXU pass)
D_OUT_PAD = 896         # 784 -> 896   (7 * 128, lane-dense output stores)


def generator_kernel(z_ref,
                     w1_ref, b1_ref,
                     w2_ref, b2_ref,
                     w3_ref, b3_ref,
                     w4_ref, b4_ref,
                     out_ref):
    """One batch tile: 4 MXU matmuls (f32 accum) + ReLU/Tanh, weights resident."""
    h = jnp.dot(z_ref[...], w1_ref[...],
                preferred_element_type=jnp.float32) + b1_ref[...]
    h = jnp.maximum(h, 0.0)                                   # ReLU

    h = jnp.dot(h.astype(w2_ref.dtype), w2_ref[...],
                preferred_element_type=jnp.float32) + b2_ref[...]
    h = jnp.maximum(h, 0.0)                                   # ReLU

    h = jnp.dot(h.astype(w3_ref.dtype), w3_ref[...],
                preferred_element_type=jnp.float32) + b3_ref[...]
    h = jnp.maximum(h, 0.0)                                   # ReLU

    h = jnp.dot(h.astype(w4_ref.dtype), w4_ref[...],
                preferred_element_type=jnp.float32) + b4_ref[...]
    out_ref[...] = jnp.tanh(h)                                # Tanh


def init_generator_params(key):
    """Deterministic init mimicking nn.Linear default (U[-1/sqrt(fan_in), ...])."""
    dims = [(D_IN, D_H1), (D_H1, D_H2), (D_H2, D_H3), (D_H3, D_OUT)]
    params = []
    for (fan_in, fan_out) in dims:
        key, kw, kb = jax.random.split(key, 3)
        bound = 1.0 / jnp.sqrt(jnp.float32(fan_in))
        w = jax.random.uniform(kw, (fan_in, fan_out), jnp.float32, -bound, bound)
        b = jax.random.uniform(kb, (1, fan_out), jnp.float32, -bound, bound)
        params.append((w, b))
    return params


def _prepare_params(params):
    """Pad (K 100->128, N 784->896) with zeros and cast to bf16, once."""
    (w1, b1), (w2, b2), (w3, b3), (w4, b4) = params
    w1p = jnp.zeros((D_IN_PAD, D_H1), jnp.float32).at[:D_IN, :].set(w1)
    w4p = jnp.zeros((D_H3, D_OUT_PAD), jnp.float32).at[:, :D_OUT].set(w4)
    b4p = jnp.zeros((1, D_OUT_PAD), jnp.float32).at[:, :D_OUT].set(b4)
    flat = [w1p, b1, w2, b2, w3, b3, w4p, b4p]
    return [p.astype(jnp.bfloat16) for p in flat]


def _choose_tm(batch):
    """Batch tile: >=8 (sublane), cap at 256 (fills 256x256 MXU, small VMEM)."""
    b8 = ((batch + 7) // 8) * 8
    return min(256, b8)


def generator_forward(z, params):
    """z: (B, 100) float32 -> img: (B, 1, 28, 28) float32."""
    B = z.shape[0]
    TM = _choose_tm(B)
    B_pad = ((B + TM - 1) // TM) * TM

    # Pad z: batch -> multiple of TM, features 100 -> 128 (zeros, exact).
    z_pad = jnp.zeros((B_pad, D_IN_PAD), jnp.float32).at[:B, :D_IN].set(z)

    flat = _prepare_params(params)

    grid = (B_pad // TM,)

    # z / out tiles march along the batch; weights & biases keep a constant
    # block index so they are fetched once and stay VMEM-resident.
    z_spec = pl.BlockSpec((TM, D_IN_PAD), lambda i: (i, 0))
    out_spec = pl.BlockSpec((TM, D_OUT_PAD), lambda i: (i, 0))
    param_specs = [
        pl.BlockSpec(p.shape, lambda i: (0, 0)) for p in flat
    ]

    n_weight_bytes = sum(p.size * p.dtype.itemsize for p in flat)
    flops = 2 * B_pad * (D_IN_PAD * D_H1 + D_H1 * D_H2
                         + D_H2 * D_H3 + D_H3 * D_OUT_PAD)
    bytes_accessed = (B_pad * D_IN_PAD * 4          # z in
                      + n_weight_bytes              # bf16 weights
                      + B_pad * D_OUT_PAD * 4)      # out
    cost = pl.CostEstimate(flops=flops,
                           transcendentals=B_pad * D_OUT_PAD,
                           bytes_accessed=bytes_accessed)

    out_flat = pl.pallas_call(
        generator_kernel,
        out_shape=jax.ShapeDtypeStruct((B_pad, D_OUT_PAD), jnp.float32),
        grid=grid,
        in_specs=[z_spec] + param_specs,
        out_specs=out_spec,
        compiler_params=pltpu.CompilerParams(
            dimension_semantics=("parallel",)),
        cost_estimate=cost,
    )(z_pad, *flat)

    # Strip padding, then img.view(B, 1, 28, 28) — NCHW glue outside kernel.
    return out_flat[:B, :D_OUT].reshape(B, 1, 28, 28)


if __name__ == "__main__":
    key = jax.random.PRNGKey(0)
    key, zkey = jax.random.split(key)

    B = 8
    z = jax.random.normal(zkey, (B, D_IN), dtype=jnp.float32)
    params = init_generator_params(key)

    img = generator_forward(z, params)
    img = jax.block_until_ready(img)

    assert img.shape == (B, 1, 28, 28), img.shape
    assert img.dtype == jnp.float32
    # Tanh output must lie in [-1, 1]
    assert float(jnp.max(jnp.abs(img))) <= 1.0 + 1e-6

    print("KERNEL_OK")
</pallas_src>

<mosaic_0001>
module attributes {stable_mosaic.version = 11 : i64} {
  func.func @generator_kernel(%arg0: i32, %arg1: memref<8x128xf32, #tpu.memory_space<vmem>>, %arg2: memref<128x256xbf16, #tpu.memory_space<vmem>>, %arg3: memref<1x256xbf16, #tpu.memory_space<vmem>>, %arg4: memref<256x512xbf16, #tpu.memory_space<vmem>>, %arg5: memref<1x512xbf16, #tpu.memory_space<vmem>>, %arg6: memref<512x1024xbf16, #tpu.memory_space<vmem>>, %arg7: memref<1x1024xbf16, #tpu.memory_space<vmem>>, %arg8: memref<1024x896xbf16, #tpu.memory_space<vmem>>, %arg9: memref<1x896xbf16, #tpu.memory_space<vmem>>, %arg10: memref<8x896xf32, #tpu.memory_space<vmem>>) attributes {dimension_semantics = [#tpu.dimension_semantics<parallel>], iteration_bounds = array<i64: 1>, scalar_prefetch = 0 : i64, scratch_operands = 0 : i64, tpu.core_type = #tpu.core_type<tc>, window_params = [{transform_indices = @transform_0, window_bounds = array<i64: 8, 128>}, {pipeline_mode = #tpu.pipeline_mode<synchronous>, transform_indices = @transform_1, window_bounds = array<i64: 128, 256>}, {pipeline_mode = #tpu.pipeline_mode<synchronous>, transform_indices = @transform_2, window_bounds = array<i64: 1, 256>}, {pipeline_mode = #tpu.pipeline_mode<synchronous>, transform_indices = @transform_3, window_bounds = array<i64: 256, 512>}, {pipeline_mode = #tpu.pipeline_mode<synchronous>, transform_indices = @transform_4, window_bounds = array<i64: 1, 512>}, {pipeline_mode = #tpu.pipeline_mode<synchronous>, transform_indices = @transform_5, window_bounds = array<i64: 512, 1024>}, {pipeline_mode = #tpu.pipeline_mode<synchronous>, transform_indices = @transform_6, window_bounds = array<i64: 1, 1024>}, {pipeline_mode = #tpu.pipeline_mode<synchronous>, transform_indices = @transform_7, window_bounds = array<i64: 1024, 896>}, {pipeline_mode = #tpu.pipeline_mode<synchronous>, transform_indices = @transform_8, window_bounds = array<i64: 1, 896>}, {transform_indices = @transform_9, window_bounds = array<i64: 8, 896>}]} {
    %c0 = arith.constant 0 : index
    %c0_0 = arith.constant 0 : index
    %0 = vector.load %arg1[%c0, %c0_0] : memref<8x128xf32, #tpu.memory_space<vmem>>, vector<8x128xf32>
    %c0_1 = arith.constant 0 : index
    %c0_2 = arith.constant 0 : index
    %1 = vector.load %arg2[%c0_1, %c0_2] : memref<128x256xbf16, #tpu.memory_space<vmem>>, vector<128x256xbf16>
    %cst = arith.constant dense<0.000000e+00> : vector<8x256xf32>
    %2 = tpu.matmul %0, %1, %cst {dimension_numbers = #tpu.dot_dimension_numbers<[1], [0], [0], [1], [0, 0, 1, 1], [], []>} : vector<8x128xf32>, vector<128x256xbf16>, vector<8x256xf32> -> vector<8x256xf32>
    %c0_3 = arith.constant 0 : index
    %c0_4 = arith.constant 0 : index
    %3 = vector.load %arg3[%c0_3, %c0_4] : memref<1x256xbf16, #tpu.memory_space<vmem>>, vector<1x256xbf16>
    %4 = arith.extf %3 : vector<1x256xbf16> to vector<1x256xf32>
    %5 = vector.broadcast %4 : vector<1x256xf32> to vector<8x256xf32>
    %6 = arith.addf %2, %5 : vector<8x256xf32>
    %cst_5 = arith.constant 0.000000e+00 : f32
    %7 = vector.broadcast %cst_5 : f32 to vector<8x256xf32>
    %8 = arith.maximumf %6, %7 : vector<8x256xf32>
    %9 = arith.truncf %8 : vector<8x256xf32> to vector<8x256xbf16>
    %c0_6 = arith.constant 0 : index
    %c0_7 = arith.constant 0 : index
    %10 = vector.load %arg4[%c0_6, %c0_7] : memref<256x512xbf16, #tpu.memory_space<vmem>>, vector<256x512xbf16>
    %cst_8 = arith.constant dense<0.000000e+00> : vector<8x512xf32>
    %11 = tpu.matmul %9, %10, %cst_8 {dimension_numbers = #tpu.dot_dimension_numbers<[1], [0], [0], [1], [0, 0, 1, 1], [], []>} : vector<8x256xbf16>, vector<256x512xbf16>, vector<8x512xf32> -> vector<8x512xf32>
    %c0_9 = arith.constant 0 : index
    %c0_10 = arith.constant 0 : index
    %12 = vector.load %arg5[%c0_9, %c0_10] : memref<1x512xbf16, #tpu.memory_space<vmem>>, vector<1x512xbf16>
    %13 = arith.extf %12 : vector<1x512xbf16> to vector<1x512xf32>
    %14 = vector.broadcast %13 : vector<1x512xf32> to vector<8x512xf32>
    %15 = arith.addf %11, %14 : vector<8x512xf32>
    %cst_11 = arith.constant 0.000000e+00 : f32
    %16 = vector.broadcast %cst_11 : f32 to vector<8x512xf32>
    %17 = arith.maximumf %15, %16 : vector<8x512xf32>
    %18 = arith.truncf %17 : vector<8x512xf32> to vector<8x512xbf16>
    %c0_12 = arith.constant 0 : index
    %c0_13 = arith.constant 0 : index
    %19 = vector.load %arg6[%c0_12, %c0_13] : memref<512x1024xbf16, #tpu.memory_space<vmem>>, vector<512x1024xbf16>
    %cst_14 = arith.constant dense<0.000000e+00> : vector<8x1024xf32>
    %20 = tpu.matmul %18, %19, %cst_14 {dimension_numbers = #tpu.dot_dimension_numbers<[1], [0], [0], [1], [0, 0, 1, 1], [], []>} : vector<8x512xbf16>, vector<512x1024xbf16>, vector<8x1024xf32> -> vector<8x1024xf32>
    %c0_15 = arith.constant 0 : index
    %c0_16 = arith.constant 0 : index
    %21 = vector.load %arg7[%c0_15, %c0_16] : memref<1x1024xbf16, #tpu.memory_space<vmem>>, vector<1x1024xbf16>
    %22 = arith.extf %21 : vector<1x1024xbf16> to vector<1x1024xf32>
    %23 = vector.broadcast %22 : vector<1x1024xf32> to vector<8x1024xf32>
    %24 = arith.addf %20, %23 : vector<8x1024xf32>
    %cst_17 = arith.constant 0.000000e+00 : f32
    %25 = vector.broadcast %cst_17 : f32 to vector<8x1024xf32>
    %26 = arith.maximumf %24, %25 : vector<8x1024xf32>
    %27 = arith.truncf %26 : vector<8x1024xf32> to vector<8x1024xbf16>
    %c0_18 = arith.constant 0 : index
    %c0_19 = arith.constant 0 : index
    %28 = vector.load %arg8[%c0_18, %c0_19] : memref<1024x896xbf16, #tpu.memory_space<vmem>>, vector<1024x896xbf16>
    %cst_20 = arith.constant dense<0.000000e+00> : vector<8x896xf32>
    %29 = tpu.matmul %27, %28, %cst_20 {dimension_numbers = #tpu.dot_dimension_numbers<[1], [0], [0], [1], [0, 0, 1, 1], [], []>} : vector<8x1024xbf16>, vector<1024x896xbf16>, vector<8x896xf32> -> vector<8x896xf32>
    %c0_21 = arith.constant 0 : index
    %c0_22 = arith.constant 0 : index
    %30 = vector.load %arg9[%c0_21, %c0_22] : memref<1x896xbf16, #tpu.memory_space<vmem>>, vector<1x896xbf16>
    %31 = arith.extf %30 : vector<1x896xbf16> to vector<1x896xf32>
    %32 = vector.broadcast %31 : vector<1x896xf32> to vector<8x896xf32>
    %33 = arith.addf %29, %32 : vector<8x896xf32>
    %34 = math.tanh %33 : vector<8x896xf32>
    %c0_23 = arith.constant 0 : index
    %c0_24 = arith.constant 0 : index
    %35 = vector.load %arg10[%c0_23, %c0_24] : memref<8x896xf32, #tpu.memory_space<vmem>>, vector<8x896xf32>
    tpu.vector_store %arg10[%c0_23, %c0_24], %34 {strides = array<i32>} : memref<8x896xf32, #tpu.memory_space<vmem>>, vector<8x896xf32>,
    return
  }
  func.func @transform_0(%arg0: i32) -> (i32, i32) {
    %c0_i32 = arith.constant 0 : i32
    %c0_i32_0 = arith.constant 0 : i32
    return %arg0, %c0_i32 : i32, i32
  }
  func.func @transform_1(%arg0: i32) -> (i32, i32) {
    %c0_i32 = arith.constant 0 : i32
    %c0_i32_0 = arith.constant 0 : i32
    %c0_i32_1 = arith.constant 0 : i32
    return %c0_i32, %c0_i32_0 : i32, i32
  }
  func.func @transform_2(%arg0: i32) -> (i32, i32) {
    %c0_i32 = arith.constant 0 : i32
    %c0_i32_0 = arith.constant 0 : i32
    %c0_i32_1 = arith.constant 0 : i32
    return %c0_i32, %c0_i32_0 : i32, i32
  }
  func.func @transform_3(%arg0: i32) -> (i32, i32) {
    %c0_i32 = arith.constant 0 : i32
    %c0_i32_0 = arith.constant 0 : i32
    %c0_i32_1 = arith.constant 0 : i32
    return %c0_i32, %c0_i32_0 : i32, i32
  }
  func.func @transform_4(%arg0: i32) -> (i32, i32) {
    %c0_i32 = arith.constant 0 : i32
    %c0_i32_0 = arith.constant 0 : i32
    %c0_i32_1 = arith.constant 0 : i32
    return %c0_i32, %c0_i32_0 : i32, i32
  }
  func.func @transform_5(%arg0: i32) -> (i32, i32) {
    %c0_i32 = arith.constant 0 : i32
    %c0_i32_0 = arith.constant 0 : i32
    %c0_i32_1 = arith.constant 0 : i32
    return %c0_i32, %c0_i32_0 : i32, i32
  }
  func.func @transform_6(%arg0: i32) -> (i32, i32) {
    %c0_i32 = arith.constant 0 : i32
    %c0_i32_0 = arith.constant 0 : i32
    %c0_i32_1 = arith.constant 0 : i32
    return %c0_i32, %c0_i32_0 : i32, i32
  }
  func.func @transform_7(%arg0: i32) -> (i32, i32) {
    %c0_i32 = arith.constant 0 : i32
    %c0_i32_0 = arith.constant 0 : i32
    %c0_i32_1 = arith.constant 0 : i32
    return %c0_i32, %c0_i32_0 : i32, i32
  }
  func.func @transform_8(%arg0: i32) -> (i32, i32) {
    %c0_i32 = arith.constant 0 : i32
    %c0_i32_0 = arith.constant 0 : i32
    %c0_i32_1 = arith.constant 0 : i32
    return %c0_i32, %c0_i32_0 : i32, i32
  }
  func.func @transform_9(%arg0: i32) -> (i32, i32) {
    %c0_i32 = arith.constant 0 : i32
    %c0_i32_0 = arith.constant 0 : i32
    return %arg0, %c0_i32 : i32, i32
  }
}

</mosaic_0001>

<bundles_post_ra>
// kernel: tpu_custom_call.1
= control target key start
LH: loop header
LB: loop body
LE: loop exit
PB: predicated region body
PF: predicated region fallthrough
CT: control target
= control target key end

     0   :  { %14 = vsyncpa [#allocation3], 0  ;;  %s10987_s0 = inlined_call_operand.hbm [shape: f32[8,128], index: 0, kind: input, shape index: {}]   ;;  %s10988_s1 = inlined_call_operand.hbm [shape: bf16[128,256], index: 1, kind: input, shape index: {}]   ;;  %s10989_s2 = inlined_call_operand.hbm [shape: bf16[1,256], index: 2, kind: input, shape index: {}]   ;;  %s10990_s3 = inlined_call_operand.hbm [shape: bf16[256,512], index: 3, kind: input, shape index: {}]   ;;  %s10991_s4 = inlined_call_operand.hbm [shape: bf16[1,512], index: 4, kind: input, shape index: {}]   ;;  %s10992_s5 = inlined_call_operand.hbm [shape: bf16[512,1024], index: 5, kind: input, shape index: {}]   ;;  %s10993_s6 = inlined_call_operand.hbm [shape: bf16[1,1024], index: 6, kind: input, shape index: {}]   ;;  %s10994_s7 = inlined_call_operand.hbm [shape: bf16[1024,896], index: 7, kind: input, shape index: {}]   ;;  %s10995_s8 = inlined_call_operand.hbm [shape: bf16[1,896], index: 8, kind: input, shape index: {}]   ;;  %s10996_s9 = inlined_call_operand.hbm [shape: f32[8,896], index: 9, kind: output, shape index: {}]  }
   0x1   :  { %15 = vsyncpa [#allocation6], 0 }
   0x2   :  { %16 = vsyncpa [#allocation9], 0 }
   0x3   :  { %17 = vsyncpa [#allocation12], 0 }
   0x4   :  { %18 = vsyncpa [#allocation15], 0  ;;  %s35_s11 = sshll.u32 %s10988_s1, 4  ;;  %s36_s11 = int_to_ptr.hbm [resolvable:$true] %s35_s11 }
   0x5   :  { %19 = vsyncpa [#allocation4], 0  ;;  %s10615_s12 = smov [#allocation5]   ;;  %s59_s16 = sshll.u32 %s10990_s3, 4  ;;  %s60_s16 = int_to_ptr.hbm [resolvable:$true] %s59_s16 }
   0x6   :  { %s37_s13 = sshll.u32 %s10615_s12, 4  ;;  %s10616_s17 = smov 128   ;;  %s38_s13 = int_to_ptr.vmem [resolvable:$true] %s37_s13 }
   0x7   :  { %s10617_s18 = smov 8   ;;  %s10618_s19 = smov [#allocation8]  }
   0x8   :  { %43 = dma.hbm_to_vmem [thread:$0]  %s36_s11, 2048, %s38_s13, [#allocation6], %s10616_s17, %s10616_s17, %s10617_s18  }
   0x9   :  { %s61_s20 = sshll.u32 %s10618_s19, 4  ;;  %s10619_s21 = smov 256   ;;  %s62_s20 = int_to_ptr.vmem [resolvable:$true] %s61_s20 }
   0xa   :  { %s10620_s22 = smov 16   ;;  %s83_s24 = sshll.u32 %s10992_s5, 4  ;;  %s84_s24 = int_to_ptr.hbm [resolvable:$true] %s83_s24 }
   0xb   :  { %67 = dma.hbm_to_vmem [thread:$0]  %s60_s16, 8192, %s62_s20, [#allocation9], %s10619_s21, %s10619_s21, %s10620_s22  }
   0xc   :  { %s10621_s25 = smov [#allocation11]   ;;  %s107_s28 = sshll.u32 %s10994_s7, 4  ;;  %s108_s28 = int_to_ptr.hbm [resolvable:$true] %s107_s28 }
   0xd   :  { %s85_s26 = sshll.u32 %s10621_s25, 4  ;;  %s10622_s29 = smov 512   ;;  %s86_s26 = int_to_ptr.vmem [resolvable:$true] %s85_s26 }
   0xe   :  { %s10623_s30 = smov 32   ;;  %s10624_s10 = smov [#allocation14]  }
   0xf   :  { %91 = dma.hbm_to_vmem [thread:$0]  %s84_s24, 32768, %s86_s26, [#allocation12], %s10622_s29, %s10622_s29, %s10623_s30  }
  0x10   :  { %s109_s11 = sshll.u32 %s10624_s10, 4  ;;  %s10625_s12 = smov 448   ;;  %s110_s11 = int_to_ptr.vmem [resolvable:$true] %s109_s11 }
  0x11   :  { %s10626_s13 = smov 28   ;;  %s25_s15 = sshll.u32 %s10987_s0, 4  ;;  %s26_s15 = int_to_ptr.hbm [resolvable:$true] %s25_s15 }
  0x12   :  { %115 = dma.hbm_to_vmem [thread:$0]  %s108_s28, 57344, %s110_s11, [#allocation15], %s10625_s12, %s10625_s12, %s10626_s13  }
  0x13   :  { %s10627_s16 = smov [#allocation2]   ;;  %s49_s19 = sshll.u32 %s10989_s2, 4  ;;  %s50_s19 = int_to_ptr.hbm [resolvable:$true] %s49_s19 }
  0x14   :  { %s27_s17 = sshll.u32 %s10627_s16, 4  ;;  %s10628_s20 = smov [#allocation7]   ;;  %s28_s17 = int_to_ptr.vmem [resolvable:$true] %s27_s17 }
  0x15   :  { %30 = dma.hbm_to_vmem [thread:$0]  %s26_s15, 128, %s28_s17, [#allocation3]  }
  0x16   :  { %s51_s21 = sshll.u32 %s10628_s20, 4  ;;  %s73_s23 = sshll.u32 %s10991_s4, 4  ;;  %s52_s21 = int_to_ptr.vmem [resolvable:$true] %s51_s21  ;;  %s74_s23 = int_to_ptr.hbm [resolvable:$true] %s73_s23 }
  0x17   :  { %54 = dma.hbm_to_vmem [thread:$0]  %s50_s19, 32, %s52_s21, [#allocation6]  }
  0x18   :  { %s97_s25 = sshll.u32 %s10993_s6, 4  ;;  %s10629_s26 = smov [#allocation10]   ;;  %s98_s25 = int_to_ptr.hbm [resolvable:$true] %s97_s25 }
  0x19   :  { %s75_s27 = sshll.u32 %s10629_s26, 4  ;;  %s10630_s2 = smov [#allocation13]   ;;  %s76_s27 = int_to_ptr.vmem [resolvable:$true] %s75_s27 }
  0x1a   :  { %78 = dma.hbm_to_vmem [thread:$0]  %s74_s23, 64, %s76_s27, [#allocation9]  }
  0x1b   :  { %s99_s3 = sshll.u32 %s10630_s2, 4  ;;  %s121_s30 = sshll.u32 %s10995_s8, 4  ;;  %s100_s3 = int_to_ptr.vmem [resolvable:$true] %s99_s3  ;;  %s122_s30 = int_to_ptr.hbm [resolvable:$true] %s121_s30 }
  0x1c   :  { %102 = dma.hbm_to_vmem [thread:$0]  %s98_s25, 128, %s100_s3, [#allocation12]  }
  0x1d   :  { %s10631_s4 = smov [#allocation16]  }
  0x1e   :  { %s123_s10 = sshll.u32 %s10631_s4, 4  ;;  %s124_s10 = int_to_ptr.vmem [resolvable:$true] %s123_s10 }
  0x1f   :  { %126 = dma.hbm_to_vmem [thread:$0]  %s122_s30, 112, %s124_s10, [#allocation15]  }
  0x20   :  { %10603 = dma.done.wait [#allocation3], 128  }
  0x21   :  { %10604 = vsyncadd [#allocation3], 4294967168 }
  0x22   :  { %10605 = dma.done.wait [#allocation6], 2080  }
  0x23   :  { %10606 = vsyncadd [#allocation6], 4294965216 }
  0x24   :  { %10607 = dma.done.wait [#allocation9], 8256  }
  0x25   :  { %10608 = vsyncadd [#allocation9], 4294959040 }
  0x26   :  { %10609 = dma.done.wait [#allocation12], 32896  }
  0x27   :  { %10610 = vsyncadd [#allocation12], 4294934400 }
  0x28   :  { %10611 = dma.done.wait [#allocation15], 57456  }
  0x29   :  { %10612 = vsyncadd [#allocation15], 4294909840  ;;  %v6468_v0 = vld [vmem:[#allocation5 + $0x70] sm:$0xf]  ;;  %v9561_v1 = vld [vmem:[#allocation5 + $0x74] sm:$0xf0] }
  0x2a   :  { %v9560_v2 = vld [vmem:[#allocation5 + $0x74] sm:$0xf]  ;;  %v6469_v3 = vor.u32 %v9561_v1, %v6468_v0  ;;  %v6470_v4 = vld [vmem:[#allocation5 + $0x78] sm:$0xf0]  ;;  %v6460_v5 = vld [vmem:[#allocation5 + $0x60] sm:$0xf] }
  0x2b   :  { %v9559_v6 = vld [vmem:[#allocation5 + $0x64] sm:$0xf0]  ;;  %v6473_v7 = vor.u32 %v9560_v2, %v6470_v4  ;;  %v9558_v8 = vld [vmem:[#allocation5 + $0x64] sm:$0xf]  ;;  %v6462_v9 = vld [vmem:[#allocation5 + $0x68] sm:$0xf0] }
  0x2c   :  { %269 = vmatpush.bf16.msra.mxu0 %v6469_v3  ;;  %v6461_v10 = vor.u32 %v9559_v6, %v6460_v5  ;;  %v6465_v11 = vor.u32 %v9558_v8, %v6462_v9  ;;  %v6452_v12 = vld [vmem:[#allocation5 + $0x50] sm:$0xf]  ;;  %v9557_v13 = vld [vmem:[#allocation5 + $0x54] sm:$0xf0]  ;;  %v9556_v14 = vld [vmem:[#allocation5 + $0x54] sm:$0xf] }
  0x2d   :  { %281 = vmatpush.bf16.msra.mxu1 %v6473_v7  ;;  %v6454_v15 = vld [vmem:[#allocation5 + $0x58] sm:$0xf0]  ;;  %v6453_v16 = vor.u32 %v9557_v13, %v6452_v12  ;;  %v6444_v18 = vld [vmem:[#allocation5 + $0x40] sm:$0xf]  ;;  %v9555_v19 = vld [vmem:[#allocation5 + $0x44] sm:$0xf0] }
  0x2e   :  { %v6457_v17 = vor.u32 %v9556_v14, %v6454_v15  ;;  %v9554_v20 = vld [vmem:[#allocation5 + $0x44] sm:$0xf]  ;;  %v6446_v21 = vld [vmem:[#allocation5 + $0x48] sm:$0xf0]  ;;  %v6445_v22 = vor.u32 %v9555_v19, %v6444_v18  ;;  %v9592_v24 = vld [vmem:[#allocation8 + $0xec] sm:$0xf0] }
  0x2f   :  { %v6588_v23 = vld [vmem:[#allocation8 + $0xe0] sm:$0xf]  ;;  %v6449_v26 = vor.u32 %v9554_v20, %v6446_v21  ;;  %v6436_v27 = vld [vmem:[#allocation5 + $0x30] sm:$0xf]  ;;  %v9553_v28 = vld [vmem:[#allocation5 + $0x34] sm:$0xf0] }
  0x30   :  { %270 = vmatpush.bf16.msra.mxu0 %v6461_v10  ;;  %v6716_v25 = vld [vmem:[#allocation8 + $0x1e0] sm:$0xf]  ;;  %v6589_v29 = vor.u32 %v9592_v24, %v6588_v23  ;;  %v9624_v30 = vld [vmem:[#allocation8 + $0x1ec] sm:$0xf0]  ;;  %v6438_v32 = vld [vmem:[#allocation5 + $0x38] sm:$0xf0]  ;;  %v6437_v38 = vor.u32 %v9553_v28, %v6436_v27 }
  0x31   :  { %282 = vmatpush.bf16.msra.mxu1 %v6465_v11  ;;  %v9552_v31 = vld [vmem:[#allocation5 + $0x34] sm:$0xf]  ;;  %v6717_v33 = vor.u32 %v9624_v30, %v6716_v25  ;;  %v6572_v34 = vld [vmem:[#allocation8 + $0xc0] sm:$0xf]  ;;  %v9551_v40 = vld [vmem:[#allocation5 + $0x24] sm:$0xf0] }
  0x32   :  { %696 = vmatpush.bf16.msra.mxu2 %v6589_v29  ;;  %v9588_v35 = vld [vmem:[#allocation8 + $0xcc] sm:$0xf0]  ;;  %v6700_v36 = vld [vmem:[#allocation8 + $0x1c0] sm:$0xf]  ;;  %v6441_v43 = vor.u32 %v9552_v31, %v6438_v32  ;;  %v6430_v47 = vld [vmem:[#allocation5 + $0x28] sm:$0xf0] }
  0x33   :  { %v9620_v37 = vld [vmem:[#allocation8 + $0x1cc] sm:$0xf0]  ;;  %v6428_v39 = vld [vmem:[#allocation5 + $0x20] sm:$0xf]  ;;  %709 = vmatpush.bf16.msra.mxu3 %v6717_v33  ;;  %v6573_v41 = vor.u32 %v9588_v35, %v6572_v34  ;;  %v9550_v44 = vld [vmem:[#allocation5 + $0x24] sm:$0xf] }
  0x34   :  { %271 = vmatpush.bf16.msra.mxu0 %v6453_v16  ;;  %v6701_v42 = vor.u32 %v9620_v37, %v6700_v36  ;;  %v6556_v45 = vld [vmem:[#allocation8 + $0xa0] sm:$0xf]  ;;  %v9584_v46 = vld [vmem:[#allocation8 + $0xac] sm:$0xf0]  ;;  %v6429_v51 = vor.u32 %v9551_v40, %v6428_v39  ;;  %v6433_v56 = vor.u32 %v9550_v44, %v6430_v47  ;;  %v9549_v57 = vld [vmem:[#allocation5 + $0x14] sm:$0xf0] }
  0x35   :  { %283 = vmatpush.bf16.msra.mxu1 %v6457_v17  ;;  %v6684_v48 = vld [vmem:[#allocation8 + $0x1a0] sm:$0xf]  ;;  %v9616_v49 = vld [vmem:[#allocation8 + $0x1ac] sm:$0xf0]  ;;  %v6557_v50 = vor.u32 %v9584_v46, %v6556_v45  ;;  %v6422_v61 = vld [vmem:[#allocation5 + $0x18] sm:$0xf0] }
  0x36   :  { %697 = vmatpush.bf16.msra.mxu2 %v6573_v41  ;;  %v6420_v52 = vld [vmem:[#allocation5 + $0x10] sm:$0xf]  ;;  %v6685_v53 = vor.u32 %v9616_v49, %v6684_v48  ;;  %v6540_v54 = vld [vmem:[#allocation8 + $0x80] sm:$0xf]  ;;  %v9548_v60 = vld [vmem:[#allocation5 + $0x14] sm:$0xf] }
  0x37   :  { %710 = vmatpush.bf16.msra.mxu3 %v6701_v42  ;;  %v9580_v55 = vld [vmem:[#allocation8 + $0x8c] sm:$0xf0]  ;;  %v6668_v58 = vld [vmem:[#allocation8 + $0x180] sm:$0xf]  ;;  %v6421_v0 = vor.u32 %v9549_v57, %v6420_v52  ;;  %v9547_v1 = vld [vmem:[#allocation5 + $0x4] sm:$0xf0]  ;;  %v6425_v5 = vor.u32 %v9548_v60, %v6422_v61 }
  0x38   :  { %272 = vmatpush.bf16.msra.mxu0 %v6445_v22  ;;  %v9612_v59 = vld [vmem:[#allocation8 + $0x18c] sm:$0xf0]  ;;  %v6412_v62 = vld [vmem:[#allocation5] sm:$0xf]  ;;  %v6541_v63 = vor.u32 %v9580_v55, %v6540_v54  ;;  %v9546_v6 = vld [vmem:[#allocation5 + $0x4] sm:$0xf] }
  0x39   :  { %284 = vmatpush.bf16.msra.mxu1 %v6449_v26  ;;  %v6669_v2 = vor.u32 %v9612_v59, %v6668_v58  ;;  %v6524_v3 = vld [vmem:[#allocation8 + $0x60] sm:$0xf]  ;;  %v9576_v4 = vld [vmem:[#allocation8 + $0x6c] sm:$0xf0]  ;;  %v6414_v9 = vld [vmem:[#allocation5 + $0x8] sm:$0xf0]  ;;  %v6413_v15 = vor.u32 %v9547_v1, %v6412_v62 }
  0x3a   :  { %698 = vmatpush.bf16.msra.mxu2 %v6557_v50  ;;  %v6652_v7 = vld [vmem:[#allocation8 + $0x160] sm:$0xf]  ;;  %v9608_v8 = vld [vmem:[#allocation8 + $0x16c] sm:$0xf0]  ;;  %v9590_v10 = vld [vmem:[#allocation8 + $0xe4] sm:$0xf]  ;;  %v6525_v14 = vor.u32 %v9576_v4, %v6524_v3  ;;  %v6417_v19 = vor.u32 %v9546_v6, %v6414_v9 }
  0x3b   :  { %711 = vmatpush.bf16.msra.mxu3 %v6685_v53  ;;  %v6590_v11 = vld [vmem:[#allocation8 + $0xf0] sm:$0xf0]  ;;  %v9622_v12 = vld [vmem:[#allocation8 + $0x1e4] sm:$0xf]  ;;  %v6653_v16 = vor.u32 %v9608_v8, %v6652_v7  ;;  %v6508_v17 = vld [vmem:[#allocation8 + $0x40] sm:$0xf] }
  0x3c   :  { %273 = vmatpush.bf16.msra.mxu0 %v6437_v38  ;;  %v6718_v13 = vld [vmem:[#allocation8 + $0x1f0] sm:$0xf0]  ;;  %v9572_v18 = vld [vmem:[#allocation8 + $0x4c] sm:$0xf0]  ;;  %v6593_v20 = vor.u32 %v9590_v10, %v6590_v11  ;;  %v6636_v21 = vld [vmem:[#allocation8 + $0x140] sm:$0xf] }
  0x3d   :  { %285 = vmatpush.bf16.msra.mxu1 %v6441_v43  ;;  %v9604_v22 = vld [vmem:[#allocation8 + $0x14c] sm:$0xf0]  ;;  %v6721_v23 = vor.u32 %v9622_v12, %v6718_v13  ;;  %v9586_v24 = vld [vmem:[#allocation8 + $0xc4] sm:$0xf]  ;;  %v6574_v25 = vld [vmem:[#allocation8 + $0xd0] sm:$0xf0]  ;;  %v6509_v28 = vor.u32 %v9572_v18, %v6508_v17 }
  0x3e   :  { %699 = vmatpush.bf16.msra.mxu2 %v6541_v63  ;;  %v9618_v26 = vld [vmem:[#allocation8 + $0x1c4] sm:$0xf]  ;;  %v6702_v27 = vld [vmem:[#allocation8 + $0x1d0] sm:$0xf0]  ;;  %v6637_v30 = vor.u32 %v9604_v22, %v6636_v21  ;;  %v6492_v31 = vld [vmem:[#allocation8 + $0x20] sm:$0xf]  ;;  %v6577_v33 = vor.u32 %v9586_v24, %v6574_v25 }
  0x3f   :  { %712 = vmatpush.bf16.msra.mxu3 %v6669_v2  ;;  %v163_v29 = vld [vmem:[#allocation2] sm:$0xff]  ;;  %v9568_v32 = vld [vmem:[#allocation8 + $0x2c] sm:$0xf0]  ;;  %v6620_v34 = vld [vmem:[#allocation8 + $0x120] sm:$0xf]  ;;  %v6705_v36 = vor.u32 %v9618_v26, %v6702_v27  ;;  %s10632_s6 = smov [#allocation17]  }
  0x40   :  { %274 = vmatpush.bf16.msra.mxu0 %v6429_v51  ;;  %v9600_v35 = vld [vmem:[#allocation8 + $0x12c] sm:$0xf0]  ;;  %v9582_v37 = vld [vmem:[#allocation8 + $0xa4] sm:$0xf]  ;;  %v6558_v38 = vld [vmem:[#allocation8 + $0xb0] sm:$0xf0]  ;;  %v6493_v41 = vor.u32 %v9568_v32, %v6492_v31 }
  0x41   :  { %286 = vmatpush.bf16.msra.mxu1 %v6433_v56  ;;  %v9614_v39 = vld [vmem:[#allocation8 + $0x1a4] sm:$0xf]  ;;  %v6686_v40 = vld [vmem:[#allocation8 + $0x1b0] sm:$0xf0]  ;;  %v6621_v43 = vor.u32 %v9600_v35, %v6620_v34  ;;  %v6476_v44 = vld [vmem:[#allocation8] sm:$0xf]  ;;  %v6561_v47 = vor.u32 %v9582_v37, %v6558_v38 }
  0x42   :  { %700 = vmatpush.bf16.msra.mxu2 %v6525_v14  ;;  %v9578_v42 = vld [vmem:[#allocation8 + $0x84] sm:$0xf]  ;;  %v9564_v45 = vld [vmem:[#allocation8 + $0xc] sm:$0xf0]  ;;  %v6604_v46 = vld [vmem:[#allocation8 + $0x100] sm:$0xf]  ;;  %v6689_v51 = vor.u32 %v9614_v39, %v6686_v40 }
  0x43   :  { %713 = vmatpush.bf16.msra.mxu3 %v6653_v16  ;;  %v9596_v48 = vld [vmem:[#allocation8 + $0x10c] sm:$0xf0]  ;;  %v6596_v49 = vld [vmem:[#allocation8 + $0xe8] sm:$0xf]  ;;  %v9593_v50 = vld [vmem:[#allocation8 + $0xf4] sm:$0xf0]  ;;  %v6477_v57 = vor.u32 %v9564_v45, %v6476_v44 }
  0x44   :  { %275 = vmatpush.bf16.msra.mxu0 %v6421_v0  ;;  %v6542_v52 = vld [vmem:[#allocation8 + $0x90] sm:$0xf0]  ;;  %v6724_v53 = vld [vmem:[#allocation8 + $0x1e8] sm:$0xf]  ;;  %v9625_v54 = vld [vmem:[#allocation8 + $0x1f4] sm:$0xf0]  ;;  %v6605_v58 = vor.u32 %v9596_v48, %v6604_v46  ;;  %v6597_v59 = vor.u32 %v9593_v50, %v6596_v49 }
  0x45   :  { %287 = vmatpush.bf16.msra.mxu1 %v6425_v5  ;;  %v9610_v55 = vld [vmem:[#allocation8 + $0x184] sm:$0xf]  ;;  %v6670_v56 = vld [vmem:[#allocation8 + $0x190] sm:$0xf0]  ;;  %v6545_v60 = vor.u32 %v9578_v42, %v6542_v52  ;;  %v6725_v62 = vor.u32 %v9625_v54, %v6724_v53  ;;  %v6580_v63 = vld [vmem:[#allocation8 + $0xc8] sm:$0xf] }
  0x46   :  { %701 = vmatpush.bf16.msra.mxu2 %v6509_v28  ;;  %v9574_v61 = vld [vmem:[#allocation8 + $0x64] sm:$0xf]  ;;  %v9589_v0 = vld [vmem:[#allocation8 + $0xd4] sm:$0xf0]  ;;  %v6673_v1 = vor.u32 %v9610_v55, %v6670_v56  ;;  %v6526_v2 = vld [vmem:[#allocation8 + $0x70] sm:$0xf0] }
  0x47   :  { %714 = vmatpush.bf16.msra.mxu3 %v6637_v30  ;;  %v6708_v3 = vld [vmem:[#allocation8 + $0x1c8] sm:$0xf]  ;;  %v9621_v4 = vld [vmem:[#allocation8 + $0x1d4] sm:$0xf0]  ;;  %v9606_v5 = vld [vmem:[#allocation8 + $0x164] sm:$0xf]  ;;  %v6581_v7 = vor.u32 %v9589_v0, %v6580_v63  ;;  %v6529_v8 = vor.u32 %v9574_v61, %v6526_v2 }
  0x48   :  { %276 = vmatpush.bf16.msra.mxu0 %v6413_v15  ;;  %v6654_v6 = vld [vmem:[#allocation8 + $0x170] sm:$0xf0]  ;;  %v6709_v9 = vor.u32 %v9621_v4, %v6708_v3  ;;  %v9570_v11 = vld [vmem:[#allocation8 + $0x44] sm:$0xf]  ;;  %v9591_v27 = vld [vmem:[#allocation8 + $0xec] sm:$0xf] }
  0x49   :  { %288 = vmatpush.bf16.msra.mxu1 %v6417_v19  ;;  %v6657_v10 = vor.u32 %v9606_v5, %v6654_v6  ;;  %v6510_v12 = vld [vmem:[#allocation8 + $0x50] sm:$0xf0]  ;;  %v9602_v13 = vld [vmem:[#allocation8 + $0x144] sm:$0xf]  ;;  %v6598_v28 = vld [vmem:[#allocation8 + $0xf8] sm:$0xf0] }
  0x4a   :  { %702 = vmatpush.bf16.msra.mxu2 %v6493_v41  ;;  %v6638_v14 = vld [vmem:[#allocation8 + $0x150] sm:$0xf0]  ;;  %v6513_v15 = vor.u32 %v9570_v11, %v6510_v12  ;;  %v9566_v17 = vld [vmem:[#allocation8 + $0x24] sm:$0xf]  ;;  %v6726_v30 = vld [vmem:[#allocation8 + $0x1f8] sm:$0xf0] }
  0x4b   :  { %277 = vmatmul.f32.vlgmr.msra.gmra.mxu0 %v163_v29  ;;  %715 = vmatpush.bf16.msra.mxu3 %v6621_v43  ;;  %v6641_v16 = vor.u32 %v9602_v13, %v6638_v14  ;;  %v6494_v18 = vld [vmem:[#allocation8 + $0x30] sm:$0xf0]  ;;  %v9598_v19 = vld [vmem:[#allocation8 + $0x124] sm:$0xf]  ;;  %v9587_v35 = vld [vmem:[#allocation8 + $0xcc] sm:$0xf] }
  0x4c   :  { %722 = vmatpush.bf16.msrb.mxu0 %v6593_v20  ;;  %289 = vmatmul.f32.vlgmr.msra.gmra.mxu1 %v163_v29  ;;  %v6622_v20 = vld [vmem:[#allocation8 + $0x130] sm:$0xf0]  ;;  %v6497_v21 = vor.u32 %v9566_v17, %v6494_v18  ;;  %v9594_v25 = vld [vmem:[#allocation8 + $0x104] sm:$0xf]  ;;  %v9623_v29 = vld [vmem:[#allocation8 + $0x1ec] sm:$0xf] }
  0x4d   :  { %735 = vmatpush.bf16.msrb.mxu1 %v6721_v23  ;;  %v6625_v22 = vor.u32 %v9598_v19, %v6622_v20  ;;  %v9562_v23 = vld [vmem:[#allocation8 + $0x4] sm:$0xf]  ;;  %v6478_v24 = vld [vmem:[#allocation8 + $0x10] sm:$0xf0]  ;;  %v6729_v34 = vor.u32 %v9623_v29, %v6726_v30  ;;  %v9619_v37 = vld [vmem:[#allocation8 + $0x1cc] sm:$0xf] }
  0x4e   :  { %703 = vmatpush.bf16.msra.mxu2 %v6477_v57  ;;  %v6606_v26 = vld [vmem:[#allocation8 + $0x110] sm:$0xf0]  ;;  %v6481_v31 = vor.u32 %v9562_v23, %v6478_v24  ;;  %v6710_v38 = vld [vmem:[#allocation8 + $0x1d8] sm:$0xf0]  ;;  %v6564_v41 = vld [vmem:[#allocation8 + $0xa8] sm:$0xf] }
  0x4f   :  { %716 = vmatpush.bf16.msra.mxu3 %v6605_v58  ;;  %v6609_v32 = vor.u32 %v9594_v25, %v6606_v26  ;;  %v6713_v40 = vor.u32 %v9619_v37, %v6710_v38  ;;  %v9585_v42 = vld [vmem:[#allocation8 + $0xb4] sm:$0xf0]  ;;  %v6692_v44 = vld [vmem:[#allocation8 + $0x1a8] sm:$0xf]  ;;  %v9583_v46 = vld [vmem:[#allocation8 + $0xac] sm:$0xf] }
  0x50   :  { %723 = vmatpush.bf16.msrb.mxu0 %v6577_v33  ;;  %v6601_v33 = vor.u32 %v9591_v27, %v6598_v28  ;;  %v6565_v43 = vor.u32 %v9585_v42, %v6564_v41  ;;  %v9617_v45 = vld [vmem:[#allocation8 + $0x1b4] sm:$0xf0]  ;;  %v6566_v48 = vld [vmem:[#allocation8 + $0xb8] sm:$0xf0]  ;;  %v9615_v49 = vld [vmem:[#allocation8 + $0x1ac] sm:$0xf] }
  0x51   :  { %736 = vmatpush.bf16.msrb.mxu1 %v6705_v36  ;;  %v6582_v36 = vld [vmem:[#allocation8 + $0xd8] sm:$0xf0]  ;;  %v6569_v50 = vor.u32 %v9583_v46, %v6566_v48  ;;  %v6548_v53 = vld [vmem:[#allocation8 + $0x88] sm:$0xf]  ;;  %v9581_v54 = vld [vmem:[#allocation8 + $0x94] sm:$0xf0] }
  0x52   :  { %748 = vmatpush.bf16.msrb.mxu2 %v6597_v59  ;;  %v6585_v39 = vor.u32 %v9587_v35, %v6582_v36  ;;  %v6676_v55 = vld [vmem:[#allocation8 + $0x188] sm:$0xf]  ;;  %v6549_v56 = vor.u32 %v9581_v54, %v6548_v53  ;;  %v9613_v57 = vld [vmem:[#allocation8 + $0x194] sm:$0xf0]  ;;  %v9579_v58 = vld [vmem:[#allocation8 + $0x8c] sm:$0xf] }
  0x53   :  { %761 = vmatpush.bf16.msrb.mxu3 %v6725_v62  ;;  %v6550_v59 = vld [vmem:[#allocation8 + $0x98] sm:$0xf0]  ;;  %v9611_v62 = vld [vmem:[#allocation8 + $0x18c] sm:$0xf]  ;;  %v9577_v2 = vld [vmem:[#allocation8 + $0x74] sm:$0xf0] }
  0x54   :  { %724 = vmatpush.bf16.msrb.mxu0 %v6561_v47  ;;  %v6693_v47 = vor.u32 %v9617_v45, %v6692_v44  ;;  %v6553_v61 = vor.u32 %v9579_v58, %v6550_v59  ;;  %v6678_v63 = vld [vmem:[#allocation8 + $0x198] sm:$0xf0]  ;;  %v6660_v3 = vld [vmem:[#allocation8 + $0x168] sm:$0xf]  ;;  %v9609_v5 = vld [vmem:[#allocation8 + $0x174] sm:$0xf0] }
  0x55   :  { %737 = vmatpush.bf16.msrb.mxu1 %v6689_v51  ;;  %v6694_v51 = vld [vmem:[#allocation8 + $0x1b8] sm:$0xf0]  ;;  %v6681_v0 = vor.u32 %v9611_v62, %v6678_v63  ;;  %v9575_v6 = vld [vmem:[#allocation8 + $0x6c] sm:$0xf]  ;;  %v6516_v12 = vld [vmem:[#allocation8 + $0x48] sm:$0xf] }
  0x56   :  { %749 = vmatpush.bf16.msrb.mxu2 %v6581_v7  ;;  %v6697_v52 = vor.u32 %v9615_v49, %v6694_v51  ;;  %v6534_v7 = vld [vmem:[#allocation8 + $0x78] sm:$0xf0]  ;;  %v9573_v14 = vld [vmem:[#allocation8 + $0x54] sm:$0xf0]  ;;  %v9571_v19 = vld [vmem:[#allocation8 + $0x4c] sm:$0xf] }
  0x57   :  { %762 = vmatpush.bf16.msrb.mxu3 %v6709_v9  ;;  %v6537_v9 = vor.u32 %v9575_v6, %v6534_v7  ;;  %v6662_v11 = vld [vmem:[#allocation8 + $0x178] sm:$0xf0]  ;;  %v6517_v17 = vor.u32 %v9573_v14, %v6516_v12  ;;  %v6500_v24 = vld [vmem:[#allocation8 + $0x28] sm:$0xf]  ;;  %v9569_v25 = vld [vmem:[#allocation8 + $0x34] sm:$0xf0] }
  0x58   :  { %725 = vmatpush.bf16.msrb.mxu0 %v6545_v60  ;;  %v6677_v60 = vor.u32 %v9613_v57, %v6676_v55  ;;  %v6518_v20 = vld [vmem:[#allocation8 + $0x58] sm:$0xf0]  ;;  %v6628_v27 = vld [vmem:[#allocation8 + $0x128] sm:$0xf]  ;;  %v9601_v28 = vld [vmem:[#allocation8 + $0x134] sm:$0xf0]  ;;  %v6501_v30 = vor.u32 %v9569_v25, %v6500_v24 }
  0x59   :  { %738 = vmatpush.bf16.msrb.mxu1 %v6673_v1  ;;  %v6532_v1 = vld [vmem:[#allocation8 + $0x68] sm:$0xf]  ;;  %v6646_v23 = vld [vmem:[#allocation8 + $0x158] sm:$0xf0]  ;;  %v9567_v29 = vld [vmem:[#allocation8 + $0x2c] sm:$0xf] }
  0x5a   :  { %750 = vmatpush.bf16.msrb.mxu2 %v6565_v43  ;;  %v6533_v4 = vor.u32 %v9577_v2, %v6532_v1  ;;  %v6484_v35 = vld [vmem:[#allocation8 + $0x8] sm:$0xf]  ;;  %v9565_v36 = vld [vmem:[#allocation8 + $0x14] sm:$0xf0]  ;;  %v9563_v41 = vld [vmem:[#allocation8 + $0xc] sm:$0xf] }
  0x5b   :  { %763 = vmatpush.bf16.msrb.mxu3 %v6693_v47  ;;  %v6612_v38 = vld [vmem:[#allocation8 + $0x108] sm:$0xf]  ;;  %v6486_v42 = vld [vmem:[#allocation8 + $0x18] sm:$0xf0]  ;;  %v6485_v43 = vor.u32 %v9565_v36, %v6484_v35  ;;  %v9595_v44 = vld [vmem:[#allocation8 + $0x10c] sm:$0xf] }
  0x5c   :  { %726 = vmatpush.bf16.msrb.mxu0 %v6529_v8  ;;  %v6661_v8 = vor.u32 %v9609_v5, %v6660_v3  ;;  %v6614_v45 = vld [vmem:[#allocation8 + $0x118] sm:$0xf0]  ;;  %v6489_v48 = vor.u32 %v9563_v41, %v6486_v42  ;;  %v7212_v58 = vld [vmem:[#allocation11 + $0x3c0] sm:$0xf]  ;;  %s6394_s8 = sshll.u32 %s10632_s6, 4  ;;  %s6396_s13 = sshll.u32 %s10996_s9, 4  ;;  %s6395_s8 = int_to_ptr.vmem [resolvable:$true] %s6394_s8  ;;  %s6397_s13 = int_to_ptr.hbm [resolvable:$true] %s6396_s13 }
  0x5d   :  { %739 = vmatpush.bf16.msrb.mxu1 %v6657_v10  ;;  %v9607_v10 = vld [vmem:[#allocation8 + $0x16c] sm:$0xf]  ;;  %v180_v46 = vld [vmem:[#allocation7] sm:$0x3]  ;;  %v6617_v49 = vor.u32 %v9595_v44, %v6614_v45  ;;  %v9750_v59 = vld [vmem:[#allocation11 + $0x3dc] sm:$0xf0] }
  0x5e   :  { %751 = vmatpush.bf16.msrb.mxu2 %v6549_v56  ;;  %v6665_v13 = vor.u32 %v9607_v10, %v6662_v11  ;;  %v9686_v62 = vld [vmem:[#allocation11 + $0x1dc] sm:$0xf0]  ;;  %v7213_v6 = vor.u32 %v9750_v59, %v7212_v58 }
  0x5f   :  { %764 = vmatpush.bf16.msrb.mxu3 %v6677_v60  ;;  %v6956_v60 = vld [vmem:[#allocation11 + $0x1c0] sm:$0xf] }
  0x60   :  { %727 = vmatpush.bf16.msrb.mxu0 %v6513_v15  ;;  %v6644_v15 = vld [vmem:[#allocation8 + $0x148] sm:$0xf]  ;;  %v7724_v63 = vld [vmem:[#allocation11 + $0x7c0] sm:$0xf] }
  0x61   :  { %740 = vmatpush.bf16.msrb.mxu1 %v6641_v16  ;;  %v9605_v16 = vld [vmem:[#allocation8 + $0x154] sm:$0xf0]  ;;  %v7468_v2 = vld [vmem:[#allocation11 + $0x5c0] sm:$0xf] }
  0x62   :  { %752 = vmatpush.bf16.msrb.mxu2 %v6533_v4  ;;  %v6645_v18 = vor.u32 %v9605_v16, %v6644_v15  ;;  %v9814_v3 = vld [vmem:[#allocation11 + $0x5dc] sm:$0xf0] }
  0x63   :  { %765 = vmatpush.bf16.msrb.mxu3 %v6661_v8  ;;  %v7180_v7 = vld [vmem:[#allocation11 + $0x380] sm:$0xf]  ;;  %v7469_v15 = vor.u32 %v9814_v3, %v7468_v2 }
  0x64   :  { %728 = vmatpush.bf16.msrb.mxu0 %v6497_v21  ;;  %v9603_v21 = vld [vmem:[#allocation8 + $0x14c] sm:$0xf]  ;;  %v9742_v8 = vld [vmem:[#allocation11 + $0x39c] sm:$0xf0] }
  0x65   :  { %741 = vmatpush.bf16.msrb.mxu1 %v6625_v22  ;;  %v6521_v22 = vor.u32 %v9571_v19, %v6518_v20  ;;  %v6649_v26 = vor.u32 %v9603_v21, %v6646_v23  ;;  %v6924_v11 = vld [vmem:[#allocation11 + $0x180] sm:$0xf]  ;;  %v7181_v19 = vor.u32 %v9742_v8, %v7180_v7 }
  0x66   :  { %753 = vmatpush.bf16.msrb.mxu2 %v6517_v17  ;;  %v9678_v12 = vld [vmem:[#allocation11 + $0x19c] sm:$0xf0] }
  0x67   :  { %766 = vmatpush.bf16.msrb.mxu3 %v6645_v18  ;;  %v7692_v14 = vld [vmem:[#allocation11 + $0x780] sm:$0xf] }
  0x68   :  { %729 = vmatpush.bf16.msrb.mxu0 %v6481_v31  ;;  %v6502_v31 = vld [vmem:[#allocation8 + $0x38] sm:$0xf0]  ;;  %v9870_v16 = vld [vmem:[#allocation11 + $0x79c] sm:$0xf0] }
  0x69   :  { %742 = vmatpush.bf16.msrb.mxu1 %v6609_v32  ;;  %v9599_v32 = vld [vmem:[#allocation8 + $0x12c] sm:$0xf]  ;;  %v6505_v37 = vor.u32 %v9567_v29, %v6502_v31  ;;  %v7436_v17 = vld [vmem:[#allocation11 + $0x580] sm:$0xf]  ;;  %v7693_v25 = vor.u32 %v9870_v16, %v7692_v14 }
  0x6a   :  { %754 = vmatpush.bf16.msrb.mxu2 %v6501_v30  ;;  %v9806_v18 = vld [vmem:[#allocation11 + $0x59c] sm:$0xf0] }
  0x6b   :  { %v7148_v20 = vld [vmem:[#allocation11 + $0x340] sm:$0xf] }
  0x6c   :  { %774 = vmatpush.bf16.msra.mxu0 %v6601_v33  ;;  %v6630_v33 = vld [vmem:[#allocation8 + $0x138] sm:$0xf0]  ;;  %v9734_v21 = vld [vmem:[#allocation11 + $0x35c] sm:$0xf0] }
  0x6d   :  { %787 = vmatpush.bf16.msra.mxu1 %v6729_v34  ;;  %v6629_v34 = vor.u32 %v9601_v28, %v6628_v27  ;;  %v6892_v23 = vld [vmem:[#allocation11 + $0x140] sm:$0xf]  ;;  %v7437_v27 = vor.u32 %v9806_v18, %v7436_v17  ;;  %v7149_v31 = vor.u32 %v9734_v21, %v7148_v20 }
  0x6e   :  { %755 = vmatpush.bf16.msrb.mxu2 %v6485_v43  ;;  %v9670_v24 = vld [vmem:[#allocation11 + $0x15c] sm:$0xf0] }
  0x6f   :  { %767 = vmatpush.bf16.msrb.mxu3 %v6629_v34  ;;  %v9862_v28 = vld [vmem:[#allocation11 + $0x75c] sm:$0xf0]  ;;  %v6893_v34 = vor.u32 %v9670_v24, %v6892_v23  ;;  %v7214_v24 = vld [vmem:[#allocation11 + $0x3e0] sm:$0xf0] }
  0x70   :  { %775 = vmatpush.bf16.msra.mxu0 %v6585_v39  ;;  %v9597_v39 = vld [vmem:[#allocation8 + $0x114] sm:$0xf0]  ;;  %v7404_v29 = vld [vmem:[#allocation11 + $0x540] sm:$0xf] }
  0x71   :  { %788 = vmatpush.bf16.msra.mxu1 %v6713_v40  ;;  %v6633_v40 = vor.u32 %v9599_v32, %v6630_v33  ;;  %v6613_v47 = vor.u32 %v9597_v39, %v6612_v38  ;;  %v9798_v30 = vld [vmem:[#allocation11 + $0x55c] sm:$0xf0] }
  0x72   :  { %v7116_v32 = vld [vmem:[#allocation11 + $0x300] sm:$0xf]  ;;  %v7405_v39 = vor.u32 %v9798_v30, %v7404_v29 }
  0x73   :  { %768 = vmatpush.bf16.msrb.mxu3 %v6613_v47  ;;  %v9726_v33 = vld [vmem:[#allocation11 + $0x31c] sm:$0xf0] }
  0x74   :  { %776 = vmatpush.bf16.msra.mxu0 %v6569_v50  ;;  %v181_v50 = vunpack.c.l.bf16 %v180_v46  ;;  %v6860_v35 = vld [vmem:[#allocation11 + $0x100] sm:$0xf]  ;;  %v7117_v43 = vor.u32 %v9726_v33, %v7116_v32  ;;  %v7726_v32 = vld [vmem:[#allocation11 + $0x7e0] sm:$0xf0] }
  0x75   :  { %789 = vmatpush.bf16.msra.mxu1 %v6697_v52  ;;  %v9662_v36 = vld [vmem:[#allocation11 + $0x11c] sm:$0xf0] }
  0x76   :  { %v183_v51 = vperm.slane %v181_v50, 0  ;;  %v184_v52 = vperm.slane %v181_v50, 2  ;;  %v7628_v38 = vld [vmem:[#allocation11 + $0x700] sm:$0xf]  ;;  %v6861_v46 = vor.u32 %v9662_v36, %v6860_v35  ;;  %v7182_v36 = vld [vmem:[#allocation11 + $0x3a0] sm:$0xf0] }
  0x77   :  { %v7372_v41 = vld [vmem:[#allocation11 + $0x500] sm:$0xf] }
  0x78   :  { %777 = vmatpush.bf16.msra.mxu0 %v6553_v61  ;;  %v187_v53 = vperm.slane %v183_v51, 0  ;;  %v188_v54 = vperm.slane %v184_v52, 0  ;;  %v9790_v42 = vld [vmem:[#allocation11 + $0x51c] sm:$0xf0] }
  0x79   :  { %790 = vmatpush.bf16.msra.mxu1 %v6681_v0  ;;  %v9878_v0 = vld [vmem:[#allocation11 + $0x7dc] sm:$0xf0]  ;;  %v7373_v51 = vor.u32 %v9790_v42, %v7372_v41  ;;  %v9730_v42 = vld [vmem:[#allocation11 + $0x344] sm:$0xf] }
  0x7a   :  { %v7084_v44 = vld [vmem:[#allocation11 + $0x2c0] sm:$0xf] }
  0x7b   :  { %v9718_v45 = vld [vmem:[#allocation11 + $0x2dc] sm:$0xf0] }
  0x7c   :  { %778 = vmatpush.bf16.msra.mxu0 %v6537_v9  ;;  %v6957_v9 = vor.u32 %v9686_v62, %v6956_v60  ;;  %v6828_v47 = vld [vmem:[#allocation11 + $0xc0] sm:$0xf] }
  0x7d   :  { %791 = vmatpush.bf16.msra.mxu1 %v6665_v13  ;;  %v7725_v13 = vor.u32 %v9878_v0, %v7724_v63  ;;  %v7596_v50 = vld [vmem:[#allocation11 + $0x6c0] sm:$0xf] }
  0x7e   :  { %v9846_v52 = vld [vmem:[#allocation11 + $0x6dc] sm:$0xf0] }
  0x7f   :  { %v6796_v59 = vld [vmem:[#allocation11 + $0x80] sm:$0xf] }
  0x80   :  { %779 = vmatpush.bf16.msra.mxu0 %v6521_v22  ;;  %v6925_v22 = vor.u32 %v9678_v12, %v6924_v11  ;;  %v9646_v60 = vld [vmem:[#allocation11 + $0x9c] sm:$0xf0] }
  0x81   :  { %792 = vmatpush.bf16.msra.mxu1 %v6649_v26  ;;  %v7660_v26 = vld [vmem:[#allocation11 + $0x740] sm:$0xf]  ;;  %v6797_v7 = vor.u32 %v9646_v60, %v6796_v59  ;;  %v7054_v59 = vld [vmem:[#allocation11 + $0x2a0] sm:$0xf0] }
  0x82   :  { %v7564_v62 = vld [vmem:[#allocation11 + $0x680] sm:$0xf]  ;;  %v9866_v60 = vld [vmem:[#allocation11 + $0x784] sm:$0xf] }
  0x83   :  { %v9838_v0 = vld [vmem:[#allocation11 + $0x69c] sm:$0xf0] }
  0x84   :  { %780 = vmatpush.bf16.msra.mxu0 %v6505_v37  ;;  %v7661_v37 = vor.u32 %v9862_v28, %v7660_v26  ;;  %v9774_v2 = vld [vmem:[#allocation11 + $0x49c] sm:$0xf0]  ;;  %v7565_v11 = vor.u32 %v9838_v0, %v7564_v62  ;;  %v6958_v26 = vld [vmem:[#allocation11 + $0x1e0] sm:$0xf0] }
  0x85   :  { %793 = vmatpush.bf16.msra.mxu1 %v6633_v40  ;;  %v9854_v40 = vld [vmem:[#allocation11 + $0x71c] sm:$0xf0]  ;;  %v7694_v62 = vld [vmem:[#allocation11 + $0x7a0] sm:$0xf0] }
  0x86   :  { %v6764_v8 = vld [vmem:[#allocation11 + $0x40] sm:$0xf] }
  0x87   :  { %v7532_v12 = vld [vmem:[#allocation11 + $0x640] sm:$0xf] }
  0x88   :  { %781 = vmatpush.bf16.msra.mxu0 %v6489_v48  ;;  %v9654_v48 = vld [vmem:[#allocation11 + $0xdc] sm:$0xf0] }
  0x89   :  { %794 = vmatpush.bf16.msra.mxu1 %v6617_v49  ;;  %v7629_v49 = vor.u32 %v9854_v40, %v7628_v38  ;;  %v6829_v58 = vor.u32 %v9654_v48, %v6828_v47  ;;  %v7276_v14 = vld [vmem:[#allocation11 + $0x440] sm:$0xf]  ;;  %v6926_v38 = vld [vmem:[#allocation11 + $0x1a0] sm:$0xf0] }
  0x8a   :  { %v9694_v17 = vld [vmem:[#allocation11 + $0x21c] sm:$0xf0]  ;;  %v9722_v48 = vld [vmem:[#allocation11 + $0x304] sm:$0xf] }
  0x8b   :  { %v6732_v20 = vld [vmem:[#allocation11] sm:$0xf] }
  0x8c   :  { %v9630_v21 = vld [vmem:[#allocation11 + $0x1c] sm:$0xf0] }
  0x8d   :  { %v9822_v28 = vld [vmem:[#allocation11 + $0x61c] sm:$0xf0]  ;;  %v6733_v30 = vor.u32 %v9630_v21, %v6732_v20  ;;  %v9690_v21 = vld [vmem:[#allocation11 + $0x204] sm:$0xf] }
  0x8e   :  { %v9758_v0 = vld [vmem:[#allocation11 + $0x41c] sm:$0xf0] }
  0xc8   :  { %v278_v55 = vpop.f32.mrf.mxu0 }
  0xc9   :  { %v279_v56 = vadd.f32 %v278_v55, %v187_v53  ;;  %v290_v57 = vpop.f32.mrf.mxu1  ;;  %v7340_v53 = vld [vmem:[#allocation11 + $0x4c0] sm:$0xf]  ;;  %v7085_v55 = vor.u32 %v9718_v45, %v7084_v44  ;;  %v7150_v44 = vld [vmem:[#allocation11 + $0x360] sm:$0xf0] }
  0xca   :  { %v291_v61 = vadd.f32 %v290_v57, %v188_v54  ;;  %v9782_v54 = vld [vmem:[#allocation11 + $0x4dc] sm:$0xf0]  ;;  %v9666_v45 = vld [vmem:[#allocation11 + $0x144] sm:$0xf]  ;;  %v7153_v47 = vor.u32 %v9730_v42, %v7150_v44 }
  0xcb   :  { %v293_v1 = vmax.f32 %v279_v56, 0.0  ;;  %v7052_v56 = vld [vmem:[#allocation11 + $0x280] sm:$0xf]  ;;  %v7341_v63 = vor.u32 %v9782_v54, %v7340_v53  ;;  %v9834_v42 = vld [vmem:[#allocation11 + $0x684] sm:$0xf] }
  0xcc   :  { %v294_v4 = vmax.f32 %v291_v61, 0.0  ;;  %v9710_v57 = vld [vmem:[#allocation11 + $0x29c] sm:$0xf0]  ;;  %v7597_v61 = vor.u32 %v9846_v52, %v7596_v50  ;;  %v7118_v50 = vld [vmem:[#allocation11 + $0x320] sm:$0xf0] }
  0xcd   :  { %v10710_v5 = vpack.c.bf16 %v293_v1, %v293_v1  ;;  %v7308_v1 = vld [vmem:[#allocation11 + $0x480] sm:$0xf]  ;;  %v7053_v3 = vor.u32 %v9710_v57, %v7052_v56  ;;  %v6862_v52 = vld [vmem:[#allocation11 + $0x120] sm:$0xf0]  ;;  %v7121_v53 = vor.u32 %v9722_v48, %v7118_v50  ;;  %v361_v48 = vld [vmem:[#allocation10] sm:$0xf] }
  0xce   :  { %v10712_v10 = vpack.c.bf16 %v294_v4, %v294_v4  ;;  %v7020_v4 = vld [vmem:[#allocation11 + $0x240] sm:$0xf]  ;;  %v7086_v56 = vld [vmem:[#allocation11 + $0x2e0] sm:$0xf0] }
  0xcf   :  { %704 = vmatmul.bf16.vlgmr.msra.gmra.mxu2 %v10710_v5  ;;  %730 = vmatmul.bf16.vlgmr.msrb.gmra.mxu0 %v10710_v5  ;;  %v7534_v50 = vld [vmem:[#allocation11 + $0x660] sm:$0xf0] }
  0xd0   :  { %717 = vmatmul.bf16.vlgmr.msra.gmra.mxu3 %v10712_v10  ;;  %743 = vmatmul.bf16.vlgmr.msrb.gmra.mxu1 %v10712_v10 }
  0xd1   :  { %2386 = vmatpush.bf16.msra.mxu3 %v7213_v6  ;;  %2373 = vmatpush.bf16.msra.mxu2 %v6957_v9  ;;  %v9702_v6 = vld [vmem:[#allocation11 + $0x25c] sm:$0xf0] }
  0xd2   :  { %2412 = vmatpush.bf16.msrb.mxu1 %v7725_v13  ;;  %2399 = vmatpush.bf16.msrb.mxu0 %v7469_v15  ;;  %v9638_v9 = vld [vmem:[#allocation11 + $0x5c] sm:$0xf0]  ;;  %v7021_v16 = vor.u32 %v9702_v6, %v7020_v4  ;;  %v6830_v4 = vld [vmem:[#allocation11 + $0xe0] sm:$0xf0] }
  0xd3   :  { %v9830_v13 = vld [vmem:[#allocation11 + $0x65c] sm:$0xf0]  ;;  %v6765_v18 = vor.u32 %v9638_v9, %v6764_v8  ;;  %v9810_v6 = vld [vmem:[#allocation11 + $0x5c4] sm:$0xf] }
  0xd4   :  { %v9766_v15 = vld [vmem:[#allocation11 + $0x45c] sm:$0xf0]  ;;  %v7470_v8 = vld [vmem:[#allocation11 + $0x5e0] sm:$0xf0] }
  0xd5   :  { %2387 = vmatpush.bf16.msra.mxu3 %v7181_v19  ;;  %2374 = vmatpush.bf16.msra.mxu2 %v6925_v22  ;;  %v9746_v19 = vld [vmem:[#allocation11 + $0x3c4] sm:$0xf]  ;;  %v7533_v22 = vor.u32 %v9830_v13, %v7532_v12  ;;  %v7277_v23 = vor.u32 %v9766_v15, %v7276_v14  ;;  %v7473_v9 = vor.u32 %v9810_v6, %v7470_v8 }
  0xd6   :  { %2413 = vmatpush.bf16.msrb.mxu1 %v7693_v25  ;;  %2400 = vmatpush.bf16.msrb.mxu0 %v7437_v27  ;;  %v9682_v25 = vld [vmem:[#allocation11 + $0x1c4] sm:$0xf]  ;;  %v7500_v27 = vld [vmem:[#allocation11 + $0x600] sm:$0xf]  ;;  %v7217_v33 = vor.u32 %v9746_v19, %v7214_v24 }
  0xd7   :  { %v6961_v35 = vor.u32 %v9682_v25, %v6958_v26  ;;  %v7022_v12 = vld [vmem:[#allocation11 + $0x260] sm:$0xf0] }
  0xd8   :  { %v7662_v14 = vld [vmem:[#allocation11 + $0x760] sm:$0xf0] }
  0xd9   :  { %2388 = vmatpush.bf16.msra.mxu3 %v7149_v31  ;;  %2375 = vmatpush.bf16.msra.mxu2 %v6893_v34  ;;  %v9874_v31 = vld [vmem:[#allocation11 + $0x7c4] sm:$0xf] }
  0xda   :  { %2414 = vmatpush.bf16.msrb.mxu1 %v7661_v37  ;;  %2401 = vmatpush.bf16.msrb.mxu0 %v7405_v39  ;;  %v9738_v34 = vld [vmem:[#allocation11 + $0x384] sm:$0xf]  ;;  %v7501_v39 = vor.u32 %v9822_v28, %v7500_v27  ;;  %v7729_v40 = vor.u32 %v9874_v31, %v7726_v32 }
  0xdb   :  { %v9674_v37 = vld [vmem:[#allocation11 + $0x184] sm:$0xf]  ;;  %v7185_v41 = vor.u32 %v9738_v34, %v7182_v36 }
  0xdc   :  { %v7438_v19 = vld [vmem:[#allocation11 + $0x5a0] sm:$0xf0] }
  0xdd   :  { %2389 = vmatpush.bf16.msra.mxu3 %v7117_v43  ;;  %2376 = vmatpush.bf16.msra.mxu2 %v6861_v46  ;;  %v6929_v43 = vor.u32 %v9674_v37, %v6926_v38  ;;  %v6894_v46 = vld [vmem:[#allocation11 + $0x160] sm:$0xf0] }
  0xde   :  { %2415 = vmatpush.bf16.msrb.mxu1 %v7629_v49  ;;  %2402 = vmatpush.bf16.msrb.mxu0 %v7373_v51  ;;  %v6897_v49 = vor.u32 %v9666_v45, %v6894_v46  ;;  %v9658_v51 = vld [vmem:[#allocation11 + $0x104] sm:$0xf] }
  0xdf   :  { %756 = vmatmul.bf16.vlgmr.msrb.gmra.mxu2 %v10710_v5  ;;  %782 = vmatmul.bf16.vlgmr.msra.gmra.mxu0 %v10710_v5  ;;  %v7309_v5 = vor.u32 %v9774_v2, %v7308_v1  ;;  %v6865_v54 = vor.u32 %v9658_v51, %v6862_v52  ;;  %v7697_v1 = vor.u32 %v9866_v60, %v7694_v62  ;;  %v9850_v24 = vld [vmem:[#allocation11 + $0x704] sm:$0xf] }
  0xe0   :  { %769 = vmatmul.bf16.vlgmr.msrb.gmra.mxu3 %v10712_v10  ;;  %795 = vmatmul.bf16.vlgmr.msra.gmra.mxu1 %v10712_v10  ;;  %v6988_v10 = vld [vmem:[#allocation11 + $0x200] sm:$0xf]  ;;  %v7630_v25 = vld [vmem:[#allocation11 + $0x720] sm:$0xf0] }
  0xe1   :  { %2390 = vmatpush.bf16.msra.mxu3 %v7085_v55  ;;  %2377 = vmatpush.bf16.msra.mxu2 %v6829_v58  ;;  %v6989_v29 = vor.u32 %v9694_v17, %v6988_v10  ;;  %v9714_v55 = vld [vmem:[#allocation11 + $0x2c4] sm:$0xf]  ;;  %v7633_v26 = vor.u32 %v9850_v24, %v7630_v25 }
  0xe2   :  { %2416 = vmatpush.bf16.msrb.mxu1 %v7597_v61  ;;  %2403 = vmatpush.bf16.msrb.mxu0 %v7341_v63  ;;  %v7089_v57 = vor.u32 %v9714_v55, %v7086_v56  ;;  %v9706_v58 = vld [vmem:[#allocation11 + $0x284] sm:$0xf]  ;;  %v7244_v63 = vld [vmem:[#allocation11 + $0x400] sm:$0xf] }
  0xe3   :  { %v7057_v61 = vor.u32 %v9706_v58, %v7054_v59  ;;  %v7245_v2 = vor.u32 %v9758_v0, %v7244_v63  ;;  %v6798_v10 = vld [vmem:[#allocation11 + $0xa0] sm:$0xf0] }
  0xe4   :  { %v9634_v27 = vld [vmem:[#allocation11 + $0x44] sm:$0xf] }
  0xe5   :  { %2391 = vmatpush.bf16.msra.mxu3 %v7053_v3  ;;  %2378 = vmatpush.bf16.msra.mxu2 %v6797_v7  ;;  %v9650_v3 = vld [vmem:[#allocation11 + $0xc4] sm:$0xf] }
  0xe6   :  { %2417 = vmatpush.bf16.msrb.mxu1 %v7565_v11  ;;  %2404 = vmatpush.bf16.msrb.mxu0 %v7309_v5  ;;  %v6833_v7 = vor.u32 %v9650_v3, %v6830_v4  ;;  %v9698_v11 = vld [vmem:[#allocation11 + $0x244] sm:$0xf] }
  0xe7   :  { %v9858_v5 = vld [vmem:[#allocation11 + $0x744] sm:$0xf]  ;;  %v7025_v13 = vor.u32 %v9698_v11, %v7022_v12  ;;  %v7220_v11 = vld [vmem:[#allocation11 + $0x3c8] sm:$0xf] }
  0xe8   :  { %v7665_v15 = vor.u32 %v9858_v5, %v7662_v14  ;;  %v6766_v28 = vld [vmem:[#allocation11 + $0x60] sm:$0xf0]  ;;  %v9751_v12 = vld [vmem:[#allocation11 + $0x3e4] sm:$0xf0] }
  0xe9   :  { %2392 = vmatpush.bf16.msra.mxu3 %v7021_v16  ;;  %2379 = vmatpush.bf16.msra.mxu2 %v6765_v18  ;;  %v9642_v16 = vld [vmem:[#allocation11 + $0x84] sm:$0xf]  ;;  %v7221_v14 = vor.u32 %v9751_v12, %v7220_v11  ;;  %v7476_v11 = vld [vmem:[#allocation11 + $0x5c8] sm:$0xf] }
  0xea   :  { %2418 = vmatpush.bf16.msrb.mxu1 %v7533_v22  ;;  %2405 = vmatpush.bf16.msrb.mxu0 %v7277_v23  ;;  %v6801_v17 = vor.u32 %v9642_v16, %v6798_v10  ;;  %v9802_v18 = vld [vmem:[#allocation11 + $0x584] sm:$0xf]  ;;  %v9815_v12 = vld [vmem:[#allocation11 + $0x5e4] sm:$0xf0] }
  0xeb   :  { %v7441_v20 = vor.u32 %v9802_v18, %v7438_v19  ;;  %v6990_v22 = vld [vmem:[#allocation11 + $0x220] sm:$0xf0]  ;;  %v9743_v18 = vld [vmem:[#allocation11 + $0x3a4] sm:$0xf0] }
  0xec   :  { %v6993_v23 = vor.u32 %v9690_v21, %v6990_v22  ;;  %v7406_v31 = vld [vmem:[#allocation11 + $0x560] sm:$0xf0]  ;;  %v6964_v22 = vld [vmem:[#allocation11 + $0x1c8] sm:$0xf] }
  0xed   :  { %2393 = vmatpush.bf16.msra.mxu3 %v6989_v29  ;;  %2380 = vmatpush.bf16.msra.mxu2 %v6733_v30  ;;  %v6769_v29 = vor.u32 %v9634_v27, %v6766_v28  ;;  %v9794_v30 = vld [vmem:[#allocation11 + $0x544] sm:$0xf]  ;;  %v7156_v27 = vld [vmem:[#allocation11 + $0x348] sm:$0xf] }
  0xee   :  { %2419 = vmatpush.bf16.msrb.mxu1 %v7501_v39  ;;  %2406 = vmatpush.bf16.msrb.mxu0 %v7245_v2  ;;  %v7409_v32 = vor.u32 %v9794_v30, %v7406_v31  ;;  %v7598_v34 = vld [vmem:[#allocation11 + $0x6e0] sm:$0xf0]  ;;  %v9735_v28 = vld [vmem:[#allocation11 + $0x364] sm:$0xf0] }
  0xef   :  { %v9626_v36 = vld [vmem:[#allocation11 + $0x4] sm:$0xf] }
  0xf0   :  { %v6734_v37 = vld [vmem:[#allocation11 + $0x20] sm:$0xf0] }
  0xf1   :  { %2438 = vmatpush.bf16.msrb.mxu3 %v7217_v33  ;;  %2425 = vmatpush.bf16.msrb.mxu2 %v6961_v35  ;;  %v9842_v33 = vld [vmem:[#allocation11 + $0x6c4] sm:$0xf]  ;;  %v6737_v39 = vor.u32 %v9626_v36, %v6734_v37 }
  0xf2   :  { %2464 = vmatpush.bf16.msra.mxu1 %v7729_v40  ;;  %2451 = vmatpush.bf16.msra.mxu0 %v7473_v9  ;;  %v7601_v35 = vor.u32 %v9842_v33, %v7598_v34  ;;  %v9786_v38 = vld [vmem:[#allocation11 + $0x504] sm:$0xf]  ;;  %v9679_v33 = vld [vmem:[#allocation11 + $0x1a4] sm:$0xf0] }
  0xf3   :  { %v7374_v40 = vld [vmem:[#allocation11 + $0x520] sm:$0xf0] }
  0xf4   :  { %v9778_v45 = vld [vmem:[#allocation11 + $0x4c4] sm:$0xf] }
  0xf5   :  { %2439 = vmatpush.bf16.msrb.mxu3 %v7185_v41  ;;  %2426 = vmatpush.bf16.msrb.mxu2 %v6929_v43  ;;  %v7377_v41 = vor.u32 %v9786_v38, %v7374_v40  ;;  %v7566_v43 = vld [vmem:[#allocation11 + $0x6a0] sm:$0xf0]  ;;  %v7124_v38 = vld [vmem:[#allocation11 + $0x308] sm:$0xf] }
  0xf6   :  { %2465 = vmatpush.bf16.msra.mxu1 %v7697_v1  ;;  %2452 = vmatpush.bf16.msra.mxu0 %v7441_v20  ;;  %v7569_v44 = vor.u32 %v9834_v42, %v7566_v43  ;;  %v7342_v46 = vld [vmem:[#allocation11 + $0x4e0] sm:$0xf0] }
  0xf7   :  { %v9770_v52 = vld [vmem:[#allocation11 + $0x484] sm:$0xf] }
  0xf8   :  { %v9818_v56 = vld [vmem:[#allocation11 + $0x604] sm:$0xf] }
  0xf9   :  { %2440 = vmatpush.bf16.msrb.mxu3 %v7153_v47  ;;  %2427 = vmatpush.bf16.msrb.mxu2 %v6897_v49  ;;  %v7345_v47 = vor.u32 %v9778_v45, %v7342_v46  ;;  %v9826_v49 = vld [vmem:[#allocation11 + $0x644] sm:$0xf]  ;;  %v9671_v45 = vld [vmem:[#allocation11 + $0x164] sm:$0xf0] }
  0xfa   :  { %2466 = vmatpush.bf16.msra.mxu1 %v7665_v15  ;;  %2453 = vmatpush.bf16.msra.mxu0 %v7409_v32  ;;  %v7537_v51 = vor.u32 %v9826_v49, %v7534_v50  ;;  %v9762_v59 = vld [vmem:[#allocation11 + $0x444] sm:$0xf]  ;;  %v6932_v32 = vld [vmem:[#allocation11 + $0x188] sm:$0xf] }
  0xfb   :  { %v7278_v60 = vld [vmem:[#allocation11 + $0x460] sm:$0xf0]  ;;  %v9719_v50 = vld [vmem:[#allocation11 + $0x2e4] sm:$0xf0] }
  0xfc   :  { %v7281_v62 = vor.u32 %v9762_v59, %v7278_v60  ;;  %v9754_v63 = vld [vmem:[#allocation11 + $0x404] sm:$0xf]  ;;  %v7060_v60 = vld [vmem:[#allocation11 + $0x288] sm:$0xf] }
  0xfd   :  { %2441 = vmatpush.bf16.msrb.mxu3 %v7121_v53  ;;  %2428 = vmatpush.bf16.msrb.mxu2 %v6865_v54  ;;  %v7310_v53 = vld [vmem:[#allocation11 + $0x4a0] sm:$0xf0]  ;;  %v10722_v54 = vunpack.c.l.bf16 %v361_v48  ;;  %v7092_v48 = vld [vmem:[#allocation11 + $0x2c8] sm:$0xf] }
  0xfe   :  { %2467 = vmatpush.bf16.msra.mxu1 %v7633_v26  ;;  %2454 = vmatpush.bf16.msra.mxu0 %v7377_v41  ;;  %v7313_v55 = vor.u32 %v9770_v52, %v7310_v53  ;;  %v7246_v0 = vld [vmem:[#allocation11 + $0x420] sm:$0xf0]  ;;  %v6933_v41 = vor.u32 %v9679_v33, %v6932_v32  ;;  %v9879_v52 = vld [vmem:[#allocation11 + $0x7e4] sm:$0xf0] }
  0xff   :  { %v7249_v2 = vor.u32 %v9754_v63, %v7246_v0  ;;  %v364_v3 = vperm.slane %v10722_v54, 0  ;;  %v367_v24 = vperm.slane %v10722_v54, 6  ;;  %v366_v36 = vperm.slane %v10722_v54, 4  ;;  %v9711_v0 = vld [vmem:[#allocation11 + $0x2a4] sm:$0xf0] }
 0x100   :  { %v9695_v32 = vld [vmem:[#allocation11 + $0x224] sm:$0xf0] }
 0x101   :  { %2442 = vmatpush.bf16.msrb.mxu3 %v7089_v57  ;;  %2429 = vmatpush.bf16.msrb.mxu2 %v6833_v7  ;;  %v7502_v57 = vld [vmem:[#allocation11 + $0x620] sm:$0xf0]  ;;  %v372_v9 = vperm.slane %v364_v3, 0  ;;  %v375_v31 = vperm.slane %v367_v24, 0  ;;  %v7444_v24 = vld [vmem:[#allocation11 + $0x588] sm:$0xf] }
 0x102   :  { %2468 = vmatpush.bf16.msra.mxu1 %v7601_v35  ;;  %2455 = vmatpush.bf16.msra.mxu0 %v7345_v47  ;;  %v7505_v58 = vor.u32 %v9818_v56, %v7502_v57  ;;  %v7157_v35 = vor.u32 %v9735_v28, %v7156_v27  ;;  %v374_v47 = vperm.slane %v366_v36, 0  ;;  %v9663_v56 = vld [vmem:[#allocation11 + $0x124] sm:$0xf0] }
 0x103   :  { %v7636_v33 = vld [vmem:[#allocation11 + $0x708] sm:$0xf] }
 0x105   :  { %2443 = vmatpush.bf16.msrb.mxu3 %v7057_v61  ;;  %2430 = vmatpush.bf16.msrb.mxu2 %v6801_v17  ;;  %v365_v61 = vperm.slane %v10722_v54, 2  ;;  %v7188_v17 = vld [vmem:[#allocation11 + $0x388] sm:$0xf] }
 0x106   :  { %2469 = vmatpush.bf16.msra.mxu1 %v7569_v44  ;;  %2456 = vmatpush.bf16.msra.mxu0 %v7313_v55  ;;  %v7189_v25 = vor.u32 %v9743_v18, %v7188_v17  ;;  %v6900_v44 = vld [vmem:[#allocation11 + $0x148] sm:$0xf] }
 0x107   :  { %v373_v1 = vperm.slane %v365_v61, 0  ;;  %v6901_v53 = vor.u32 %v9671_v45, %v6900_v44  ;;  %v6868_v55 = vld [vmem:[#allocation11 + $0x108] sm:$0xf] }
 0x108   :  { %v7668_v17 = vld [vmem:[#allocation11 + $0x748] sm:$0xf] }
 0x109   :  { %2444 = vmatpush.bf16.msrb.mxu3 %v7025_v13  ;;  %2431 = vmatpush.bf16.msrb.mxu2 %v6769_v29  ;;  %v9863_v18 = vld [vmem:[#allocation11 + $0x764] sm:$0xf0] }
 0x10a   :  { %2470 = vmatpush.bf16.msra.mxu1 %v7537_v51  ;;  %2457 = vmatpush.bf16.msra.mxu0 %v7281_v62  ;;  %v7732_v51 = vld [vmem:[#allocation11 + $0x7c8] sm:$0xf]  ;;  %v7669_v28 = vor.u32 %v9863_v18, %v7668_v17 }
 0x10b   :  { %v7733_v59 = vor.u32 %v9879_v52, %v7732_v51  ;;  %v7190_v51 = vld [vmem:[#allocation11 + $0x3a8] sm:$0xf0]  ;;  %v6740_v52 = vld [vmem:[#allocation11 + $0x8] sm:$0xf] }
 0x10c   :  { %v7316_v17 = vld [vmem:[#allocation11 + $0x488] sm:$0xf] }
 0x10d   :  { %2445 = vmatpush.bf16.msrb.mxu3 %v6993_v23  ;;  %2432 = vmatpush.bf16.msrb.mxu2 %v6737_v39  ;;  %v9687_v23 = vld [vmem:[#allocation11 + $0x1e4] sm:$0xf0] }
 0x10e   :  { %2471 = vmatpush.bf16.msra.mxu1 %v7505_v58  ;;  %2458 = vmatpush.bf16.msra.mxu0 %v7249_v2  ;;  %v6965_v29 = vor.u32 %v9687_v23, %v6964_v22  ;;  %v9727_v39 = vld [vmem:[#allocation11 + $0x324] sm:$0xf0]  ;;  %v7093_v58 = vor.u32 %v9719_v50, %v7092_v48  ;;  %v9739_v50 = vld [vmem:[#allocation11 + $0x38c] sm:$0xf] }
 0x10f   :  { %v7125_v46 = vor.u32 %v9727_v39, %v7124_v38  ;;  %v9871_v2 = vld [vmem:[#allocation11 + $0x7a4] sm:$0xf0]  ;;  %v7222_v38 = vld [vmem:[#allocation11 + $0x3e8] sm:$0xf0] }
 0x110   :  { %v9647_v23 = vld [vmem:[#allocation11 + $0xa4] sm:$0xf0] }
 0x111   :  { %v6772_v39 = vld [vmem:[#allocation11 + $0x48] sm:$0xf] }
 0x112   :  { %v9775_v18 = vld [vmem:[#allocation11 + $0x4a4] sm:$0xf0] }
 0x14c   :  { %v731_v4 = vpop.f32.mrf.mxu0 }
 0x14d   :  { %v732_v6 = vadd.f32 %v731_v4, %v373_v1  ;;  %v744_v7 = vpop.f32.mrf.mxu1  ;;  %v7700_v1 = vld [vmem:[#allocation11 + $0x788] sm:$0xf]  ;;  %v6869_v4 = vor.u32 %v9663_v56, %v6868_v55 }
 0x14e   :  { %v9791_v55 = vld [vmem:[#allocation11 + $0x524] sm:$0xf0] }
 0x14f   :  { %v745_v8 = vadd.f32 %v744_v7, %v732_v6  ;;  %v6836_v6 = vld [vmem:[#allocation11 + $0xc8] sm:$0xf] }
 0x151   :  { %v801_v5 = vmax.f32 %v745_v8, 0.0 }
 0x152   :  { %v705_v13 = vpop.f32.mrf.mxu2 }
 0x153   :  { %v10726_v15 = vpack.c.bf16 %v801_v5, %v801_v5  ;;  %v706_v16 = vadd.f32 %v705_v13, %v372_v9  ;;  %v718_v10 = vpop.f32.mrf.mxu3  ;;  %v9655_v9 = vld [vmem:[#allocation11 + $0xe4] sm:$0xf0]  ;;  %v7061_v5 = vor.u32 %v9711_v0, %v7060_v60  ;;  %v7701_v13 = vor.u32 %v9871_v2, %v7700_v1  ;;  %v9731_v1 = vld [vmem:[#allocation11 + $0x34c] sm:$0xf] }
 0x154   :  { %v733_v19 = vpop.f32.mrf.mxu0  ;;  %v7572_v60 = vld [vmem:[#allocation11 + $0x688] sm:$0xf]  ;;  %v7158_v2 = vld [vmem:[#allocation11 + $0x368] sm:$0xf0] }
 0x155   :  { %v719_v20 = vadd.f32 %v718_v10, %v706_v16  ;;  %v746_v21 = vpop.f32.mrf.mxu1  ;;  %2394 = vmatmul.bf16.vlgmr.msra.gmra.mxu3 %v10726_v15  ;;  %v9703_v16 = vld [vmem:[#allocation11 + $0x264] sm:$0xf0]  ;;  %v6837_v19 = vor.u32 %v9655_v9, %v6836_v6  ;;  %v6934_v9 = vld [vmem:[#allocation11 + $0x1a8] sm:$0xf0] }
 0x156   :  { %2490 = vmatpush.bf16.msra.mxu3 %v7221_v14  ;;  %v7028_v14 = vld [vmem:[#allocation11 + $0x248] sm:$0xf] }
 0x157   :  { %v800_v26 = vmax.f32 %v719_v20, 0.0  ;;  %v7477_v20 = vor.u32 %v9815_v12, %v7476_v11  ;;  %v6804_v21 = vld [vmem:[#allocation11 + $0x88] sm:$0xf]  ;;  %v7029_v27 = vor.u32 %v9703_v16, %v7028_v14  ;;  %v7161_v11 = vor.u32 %v9731_v1, %v7158_v2  ;;  %v9723_v14 = vld [vmem:[#allocation11 + $0x30c] sm:$0xf] }
 0x158   :  { %v9783_v6 = vld [vmem:[#allocation11 + $0x4e4] sm:$0xf0]  ;;  %v7126_v16 = vld [vmem:[#allocation11 + $0x328] sm:$0xf0] }
 0x159   :  { %v10730_v30 = vpack.c.bf16 %v800_v26, %v800_v26  ;;  %v7540_v12 = vld [vmem:[#allocation11 + $0x648] sm:$0xf]  ;;  %v7446_v1 = vld [vmem:[#allocation11 + $0x5a8] sm:$0xf0] }
 0x15a   :  { %2491 = vmatpush.bf16.msra.mxu3 %v7189_v25  ;;  %v707_v34 = vpop.f32.mrf.mxu2  ;;  %v9807_v25 = vld [vmem:[#allocation11 + $0x5a4] sm:$0xf0] }
 0x15b   :  { %v720_v37 = vpop.f32.mrf.mxu3  ;;  %2381 = vmatmul.bf16.vlgmr.msra.gmra.mxu2 %v10730_v30  ;;  %v9855_v34 = vld [vmem:[#allocation11 + $0x724] sm:$0xf0]  ;;  %v7445_v36 = vor.u32 %v9807_v25, %v7444_v24 }
 0x15c   :  { %2477 = vmatpush.bf16.msra.mxu2 %v6965_v29  ;;  %v783_v40 = vpop.f32.mrf.mxu0  ;;  %v6996_v29 = vld [vmem:[#allocation11 + $0x208] sm:$0xf]  ;;  %v9747_v37 = vld [vmem:[#allocation11 + $0x3cc] sm:$0xf]  ;;  %v7637_v44 = vor.u32 %v9855_v34, %v7636_v33 }
 0x15d   :  { %v784_v42 = vadd.f32 %v783_v40, %v375_v31  ;;  %v796_v43 = vpop.f32.mrf.mxu1  ;;  %v9639_v40 = vld [vmem:[#allocation11 + $0x64] sm:$0xf0]  ;;  %v7225_v45 = vor.u32 %v9747_v37, %v7222_v38  ;;  %v6870_v37 = vld [vmem:[#allocation11 + $0x128] sm:$0xf0] }
 0x15e   :  { %2492 = vmatpush.bf16.msra.mxu3 %v7157_v35  ;;  %v6805_v35 = vor.u32 %v9647_v23, %v6804_v21  ;;  %v6773_v48 = vor.u32 %v9639_v40, %v6772_v39  ;;  %v6902_v21 = vld [vmem:[#allocation11 + $0x168] sm:$0xf0]  ;;  %v7129_v23 = vor.u32 %v9723_v14, %v7126_v16  ;;  %v7508_v24 = vld [vmem:[#allocation11 + $0x608] sm:$0xf] }
 0x15f   :  { %v797_v49 = vadd.f32 %v796_v43, %v784_v42  ;;  %v9799_v42 = vld [vmem:[#allocation11 + $0x564] sm:$0xf0]  ;;  %v6997_v43 = vor.u32 %v9695_v32, %v6996_v29  ;;  %v9875_v29 = vld [vmem:[#allocation11 + $0x7cc] sm:$0xf] }
 0x160   :  { %2478 = vmatpush.bf16.msra.mxu2 %v6933_v41  ;;  %v7412_v41 = vld [vmem:[#allocation11 + $0x548] sm:$0xf]  ;;  %v9707_v40 = vld [vmem:[#allocation11 + $0x28c] sm:$0xf] }
 0x161   :  { %v803_v54 = vmax.f32 %v797_v49, 0.0  ;;  %v7413_v49 = vor.u32 %v9799_v42, %v7412_v41  ;;  %v9823_v25 = vld [vmem:[#allocation11 + $0x624] sm:$0xf0]  ;;  %v7062_v42 = vld [vmem:[#allocation11 + $0x2a8] sm:$0xf0] }
 0x162   :  { %2493 = vmatpush.bf16.msra.mxu3 %v7125_v46  ;;  %v757_v57 = vpop.f32.mrf.mxu2  ;;  %v7604_v46 = vld [vmem:[#allocation11 + $0x6c8] sm:$0xf]  ;;  %v6774_v14 = vld [vmem:[#allocation11 + $0x68] sm:$0xf0] }
 0x163   :  { %v10734_v61 = vpack.c.bf16 %v803_v54, %v803_v54  ;;  %v758_v62 = vadd.f32 %v757_v57, %v374_v47  ;;  %v770_v63 = vpop.f32.mrf.mxu3  ;;  %v9847_v47 = vld [vmem:[#allocation11 + $0x6e4] sm:$0xf0]  ;;  %v9683_v57 = vld [vmem:[#allocation11 + $0x1cc] sm:$0xf] }
 0x164   :  { %2479 = vmatpush.bf16.msra.mxu2 %v6901_v53  ;;  %v785_v3 = vpop.f32.mrf.mxu0  ;;  %v9631_v53 = vld [vmem:[#allocation11 + $0x24] sm:$0xf0]  ;;  %v7605_v56 = vor.u32 %v9847_v47, %v7604_v46  ;;  %v9795_v16 = vld [vmem:[#allocation11 + $0x54c] sm:$0xf] }
 0x165   :  { %v771_v7 = vadd.f32 %v770_v63, %v758_v62  ;;  %v798_v8 = vpop.f32.mrf.mxu1  ;;  %2420 = vmatmul.bf16.vlgmr.msrb.gmra.mxu1 %v10734_v61  ;;  %2446 = vmatmul.bf16.vlgmr.msrb.gmra.mxu3 %v10726_v15  ;;  %v7380_v54 = vld [vmem:[#allocation11 + $0x508] sm:$0xf]  ;;  %v6741_v63 = vor.u32 %v9631_v53, %v6740_v52  ;;  %v7065_v52 = vor.u32 %v9707_v40, %v7062_v42  ;;  %v7164_v40 = vld [vmem:[#allocation11 + $0x350] sm:$0xf] }
 0x166   :  { %2494 = vmatpush.bf16.msra.mxu3 %v7093_v58  ;;  %2516 = vmatpush.bf16.msrb.mxu1 %v7733_v59  ;;  %v6966_v58 = vld [vmem:[#allocation11 + $0x1e8] sm:$0xf0]  ;;  %v7193_v59 = vor.u32 %v9739_v50, %v7190_v51  ;;  %v9839_v62 = vld [vmem:[#allocation11 + $0x6a4] sm:$0xf0]  ;;  %v7381_v0 = vor.u32 %v9791_v55, %v7380_v54 }
 0x167   :  { %v802_v10 = vmax.f32 %v771_v7, 0.0  ;;  %v6969_v3 = vor.u32 %v9683_v57, %v6966_v58  ;;  %v7573_v7 = vor.u32 %v9839_v62, %v7572_v60  ;;  %v9675_v8 = vld [vmem:[#allocation11 + $0x18c] sm:$0xf]  ;;  %v7284_v33 = vld [vmem:[#allocation11 + $0x448] sm:$0xf] }
 0x168   :  { %2480 = vmatpush.bf16.msra.mxu2 %v6869_v4  ;;  %v7348_v4 = vld [vmem:[#allocation11 + $0x4c8] sm:$0xf]  ;;  %v9811_v50 = vld [vmem:[#allocation11 + $0x5cc] sm:$0xf] }
 0x169   :  { %v10738_v22 = vpack.c.bf16 %v802_v10, %v802_v10  ;;  %v6937_v10 = vor.u32 %v9675_v8, %v6934_v9  ;;  %v9767_v34 = vld [vmem:[#allocation11 + $0x464] sm:$0xf0]  ;;  %v7478_v51 = vld [vmem:[#allocation11 + $0x5e8] sm:$0xf0] }
 0x16a   :  { %2495 = vmatpush.bf16.msra.mxu3 %v7061_v5  ;;  %2517 = vmatpush.bf16.msrb.mxu1 %v7701_v13  ;;  %v759_v26 = vpop.f32.mrf.mxu2  ;;  %v9831_v5 = vld [vmem:[#allocation11 + $0x664] sm:$0xf0]  ;;  %v7349_v13 = vor.u32 %v9783_v6, %v7348_v4  ;;  %v7285_v41 = vor.u32 %v9767_v34, %v7284_v33  ;;  %v9699_v54 = vld [vmem:[#allocation11 + $0x24c] sm:$0xf]  ;;  %v7481_v60 = vor.u32 %v9811_v50, %v7478_v51  ;;  %v6972_v33 = vld [vmem:[#allocation11 + $0x1d0] sm:$0xf] }
 0x16b   :  { %v772_v31 = vpop.f32.mrf.mxu3  ;;  %2407 = vmatmul.bf16.vlgmr.msrb.gmra.mxu0 %v10738_v22  ;;  %2433 = vmatmul.bf16.vlgmr.msrb.gmra.mxu2 %v10730_v30  ;;  %v9715_v26 = vld [vmem:[#allocation11 + $0x2cc] sm:$0xf]  ;;  %v7252_v46 = vld [vmem:[#allocation11 + $0x408] sm:$0xf]  ;;  %v9688_v34 = vld [vmem:[#allocation11 + $0x1ec] sm:$0xf0] }
 0x16c   :  { %2481 = vmatpush.bf16.msra.mxu2 %v6837_v19  ;;  %2503 = vmatpush.bf16.msrb.mxu0 %v7477_v20  ;;  %v7541_v19 = vor.u32 %v9831_v5, %v7540_v12  ;;  %v9667_v20 = vld [vmem:[#allocation11 + $0x14c] sm:$0xf]  ;;  %v9759_v47 = vld [vmem:[#allocation11 + $0x424] sm:$0xf0]  ;;  %v7228_v12 = vld [vmem:[#allocation11 + $0x3d0] sm:$0xf]  ;;  %v6973_v42 = vor.u32 %v9688_v34, %v6972_v33 }
 0x16d   :  { %v7734_v31 = vld [vmem:[#allocation11 + $0x7e8] sm:$0xf0]  ;;  %v6905_v32 = vor.u32 %v9667_v20, %v6902_v21  ;;  %v7253_v55 = vor.u32 %v9759_v47, %v7252_v46  ;;  %v9752_v5 = vld [vmem:[#allocation11 + $0x3ec] sm:$0xf0] }
 0x16e   :  { %2496 = vmatpush.bf16.msra.mxu3 %v7029_v27  ;;  %2518 = vmatpush.bf16.msrb.mxu1 %v7669_v28  ;;  %v7317_v27 = vor.u32 %v9775_v18, %v7316_v17  ;;  %v7094_v28 = vld [vmem:[#allocation11 + $0x2e8] sm:$0xf0]  ;;  %v7737_v39 = vor.u32 %v9875_v29, %v7734_v31  ;;  %v6940_v46 = vld [vmem:[#allocation11 + $0x190] sm:$0xf] }
 0x16f   :  { %v7097_v38 = vor.u32 %v9715_v26, %v7094_v28  ;;  %v9859_v57 = vld [vmem:[#allocation11 + $0x74c] sm:$0xf]  ;;  %v9744_v26 = vld [vmem:[#allocation11 + $0x3ac] sm:$0xf0] }
 0x170   :  { %2482 = vmatpush.bf16.msra.mxu2 %v6805_v35  ;;  %2504 = vmatpush.bf16.msrb.mxu0 %v7445_v36  ;;  %v7509_v35 = vor.u32 %v9823_v25, %v7508_v24  ;;  %v9659_v36 = vld [vmem:[#allocation11 + $0x10c] sm:$0xf]  ;;  %v7196_v25 = vld [vmem:[#allocation11 + $0x390] sm:$0xf] }
 0x171   :  { %v7670_v58 = vld [vmem:[#allocation11 + $0x768] sm:$0xf0]  ;;  %v9680_v47 = vld [vmem:[#allocation11 + $0x1ac] sm:$0xf0] }
 0x172   :  { %2497 = vmatpush.bf16.msra.mxu3 %v6997_v43  ;;  %2519 = vmatpush.bf16.msrb.mxu1 %v7637_v44  ;;  %v9867_v43 = vld [vmem:[#allocation11 + $0x78c] sm:$0xf] }
 0x173   :  { %v7702_v44 = vld [vmem:[#allocation11 + $0x7a8] sm:$0xf0] }
 0x174   :  { %2483 = vmatpush.bf16.msra.mxu2 %v6773_v48  ;;  %2505 = vmatpush.bf16.msrb.mxu0 %v7413_v49  ;;  %v9651_v48 = vld [vmem:[#allocation11 + $0xcc] sm:$0xf]  ;;  %v7705_v53 = vor.u32 %v9867_v43, %v7702_v44 }
 0x175   :  { %2472 = vmatmul.bf16.vlgmr.msra.gmra.mxu1 %v10734_v61  ;;  %2498 = vmatmul.bf16.vlgmr.msra.gmra.mxu3 %v10726_v15  ;;  %v6838_v49 = vld [vmem:[#allocation11 + $0xe8] sm:$0xf0] }
 0x176   :  { %2542 = vmatpush.bf16.msrb.mxu3 %v7225_v45  ;;  %2520 = vmatpush.bf16.msrb.mxu1 %v7605_v56  ;;  %v6873_v45 = vor.u32 %v9659_v36, %v6870_v37  ;;  %v7030_v56 = vld [vmem:[#allocation11 + $0x268] sm:$0xf0] }
 0x177   :  { %v9643_v62 = vld [vmem:[#allocation11 + $0x8c] sm:$0xf]  ;;  %v7033_v2 = vor.u32 %v9699_v54, %v7030_v56  ;;  %v6941_v54 = vor.u32 %v9680_v47, %v6940_v46  ;;  %v9856_v46 = vld [vmem:[#allocation11 + $0x72c] sm:$0xf0] }
 0x178   :  { %2484 = vmatpush.bf16.msra.mxu2 %v6741_v63  ;;  %2506 = vmatpush.bf16.msrb.mxu0 %v7381_v0  ;;  %v6806_v63 = vld [vmem:[#allocation11 + $0xa8] sm:$0xf0] }
 0x179   :  { %v9803_v0 = vld [vmem:[#allocation11 + $0x58c] sm:$0xf]  ;;  %v6809_v9 = vor.u32 %v9643_v62, %v6806_v63 }
 0x17a   :  { %2543 = vmatpush.bf16.msrb.mxu3 %v7193_v59  ;;  %2521 = vmatpush.bf16.msrb.mxu1 %v7573_v7  ;;  %v6841_v59 = vor.u32 %v9651_v48, %v6838_v49  ;;  %v9691_v4 = vld [vmem:[#allocation11 + $0x20c] sm:$0xf] }
 0x17b   :  { %2459 = vmatmul.bf16.vlgmr.msra.gmra.mxu0 %v10738_v22  ;;  %2485 = vmatmul.bf16.vlgmr.msra.gmra.mxu2 %v10730_v30  ;;  %v6998_v6 = vld [vmem:[#allocation11 + $0x228] sm:$0xf0] }
 0x17c   :  { %2529 = vmatpush.bf16.msrb.mxu2 %v6969_v3  ;;  %2507 = vmatpush.bf16.msrb.mxu0 %v7349_v13  ;;  %v7673_v3 = vor.u32 %v9859_v57, %v7670_v58  ;;  %v9851_v7 = vld [vmem:[#allocation11 + $0x70c] sm:$0xf]  ;;  %v7001_v17 = vor.u32 %v9691_v4, %v6998_v6  ;;  %v6908_v58 = vld [vmem:[#allocation11 + $0x150] sm:$0xf] }
 0x17d   :  { %v7638_v8 = vld [vmem:[#allocation11 + $0x728] sm:$0xf0]  ;;  %v9880_v4 = vld [vmem:[#allocation11 + $0x7ec] sm:$0xf0] }
 0x17e   :  { %2544 = vmatpush.bf16.msrb.mxu3 %v7161_v11  ;;  %2522 = vmatpush.bf16.msrb.mxu1 %v7541_v19  ;;  %v7449_v11 = vor.u32 %v9803_v0, %v7446_v1  ;;  %v9635_v13 = vld [vmem:[#allocation11 + $0x4c] sm:$0xf]  ;;  %v7641_v18 = vor.u32 %v9851_v7, %v7638_v8  ;;  %v7229_v19 = vor.u32 %v9752_v5, %v7228_v12  ;;  %v7100_v0 = vld [vmem:[#allocation11 + $0x2d0] sm:$0xf] }
 0x17f   :  { %v9843_v20 = vld [vmem:[#allocation11 + $0x6cc] sm:$0xf]  ;;  %v9664_v12 = vld [vmem:[#allocation11 + $0x12c] sm:$0xf0] }
 0x180   :  { %2530 = vmatpush.bf16.msrb.mxu2 %v6937_v10  ;;  %2508 = vmatpush.bf16.msrb.mxu0 %v7317_v27  ;;  %v7414_v10 = vld [vmem:[#allocation11 + $0x568] sm:$0xf0] }
 0x181   :  { %v7606_v21 = vld [vmem:[#allocation11 + $0x6e8] sm:$0xf0]  ;;  %v7417_v24 = vor.u32 %v9795_v16, %v7414_v10  ;;  %v9712_v10 = vld [vmem:[#allocation11 + $0x2ac] sm:$0xf0] }
 0x182   :  { %2545 = vmatpush.bf16.msrb.mxu3 %v7129_v23  ;;  %2523 = vmatpush.bf16.msrb.mxu1 %v7509_v35  ;;  %v6777_v23 = vor.u32 %v9635_v13, %v6774_v14  ;;  %v9627_v27 = vld [vmem:[#allocation11 + $0xc] sm:$0xf]  ;;  %v7197_v35 = vor.u32 %v9744_v26, %v7196_v25  ;;  %v7068_v14 = vld [vmem:[#allocation11 + $0x290] sm:$0xf] }
 0x183   :  { %v6742_v28 = vld [vmem:[#allocation11 + $0x28] sm:$0xf0]  ;;  %v7484_v25 = vld [vmem:[#allocation11 + $0x5d0] sm:$0xf] }
 0x184   :  { %2531 = vmatpush.bf16.msrb.mxu2 %v6905_v32  ;;  %2509 = vmatpush.bf16.msrb.mxu0 %v7285_v41  ;;  %v9787_v29 = vld [vmem:[#allocation11 + $0x50c] sm:$0xf]  ;;  %v7609_v32 = vor.u32 %v9843_v20, %v7606_v21  ;;  %v9736_v41 = vld [vmem:[#allocation11 + $0x36c] sm:$0xf0] }
 0x185   :  { %2524 = vmatmul.bf16.vlgmr.msrb.gmra.mxu1 %v10734_v61  ;;  %v7382_v31 = vld [vmem:[#allocation11 + $0x528] sm:$0xf0]  ;;  %v7165_v48 = vor.u32 %v9736_v41, %v7164_v40  ;;  %v9816_v26 = vld [vmem:[#allocation11 + $0x5ec] sm:$0xf0] }
 0x186   :  { %2546 = vmatpush.bf16.msrb.mxu3 %v7097_v38  ;;  %2568 = vmatpush.bf16.msra.mxu1 %v7737_v39  ;;  %v9835_v36 = vld [vmem:[#allocation11 + $0x68c] sm:$0xf]  ;;  %v6745_v38 = vor.u32 %v9627_v27, %v6742_v28  ;;  %v7385_v39 = vor.u32 %v9787_v29, %v7382_v31  ;;  %v7069_v27 = vor.u32 %v9712_v10, %v7068_v14  ;;  %v7036_v31 = vld [vmem:[#allocation11 + $0x250] sm:$0xf]  ;;  %v9732_v14 = vld [vmem:[#allocation11 + $0x354] sm:$0xf] }
 0x187   :  { %v7574_v37 = vld [vmem:[#allocation11 + $0x6a8] sm:$0xf0]  ;;  %v7485_v34 = vor.u32 %v9816_v26, %v7484_v25  ;;  %v9808_v40 = vld [vmem:[#allocation11 + $0x5ac] sm:$0xf0]  ;;  %v7166_v10 = vld [vmem:[#allocation11 + $0x370] sm:$0xf0] }
 0x188   :  { %2532 = vmatpush.bf16.msrb.mxu2 %v6873_v45  ;;  %2510 = vmatpush.bf16.msrb.mxu0 %v7253_v55  ;;  %v9779_v43 = vld [vmem:[#allocation11 + $0x4cc] sm:$0xf]  ;;  %v7577_v45 = vor.u32 %v9835_v36, %v7574_v37  ;;  %v9864_v36 = vld [vmem:[#allocation11 + $0x76c] sm:$0xf0] }
 0x189   :  { %v7350_v44 = vld [vmem:[#allocation11 + $0x4e8] sm:$0xf0]  ;;  %v6812_v37 = vld [vmem:[#allocation11 + $0x90] sm:$0xf] }
 0x18a   :  { %2547 = vmatpush.bf16.msrb.mxu3 %v7065_v52  ;;  %2569 = vmatpush.bf16.msra.mxu1 %v7705_v53  ;;  %v9827_v49 = vld [vmem:[#allocation11 + $0x64c] sm:$0xf]  ;;  %v7353_v51 = vor.u32 %v9779_v43, %v7350_v44  ;;  %v7132_v52 = vld [vmem:[#allocation11 + $0x310] sm:$0xf] }
 0x18b   :  { %2511 = vmatmul.bf16.vlgmr.msrb.gmra.mxu0 %v10738_v22  ;;  %v7542_v50 = vld [vmem:[#allocation11 + $0x668] sm:$0xf0]  ;;  %v9728_v53 = vld [vmem:[#allocation11 + $0x32c] sm:$0xf0] }
 0x18c   :  { %2533 = vmatpush.bf16.msrb.mxu2 %v6841_v59  ;;  %2555 = vmatpush.bf16.msra.mxu0 %v7481_v60  ;;  %v9771_v55 = vld [vmem:[#allocation11 + $0x48c] sm:$0xf]  ;;  %v7545_v57 = vor.u32 %v9827_v49, %v7542_v50  ;;  %v9672_v59 = vld [vmem:[#allocation11 + $0x16c] sm:$0xf0]  ;;  %v7133_v60 = vor.u32 %v9728_v53, %v7132_v52  ;;  %v9748_v49 = vld [vmem:[#allocation11 + $0x3d4] sm:$0xf] }
 0x18d   :  { %v7318_v56 = vld [vmem:[#allocation11 + $0x4a8] sm:$0xf0]  ;;  %v6909_v6 = vor.u32 %v9672_v59, %v6908_v58  ;;  %v9696_v44 = vld [vmem:[#allocation11 + $0x22c] sm:$0xf0]  ;;  %v7230_v50 = vld [vmem:[#allocation11 + $0x3f0] sm:$0xf0] }
 0x18e   :  { %2548 = vmatpush.bf16.msrb.mxu3 %v7033_v2  ;;  %2570 = vmatpush.bf16.msra.mxu1 %v7673_v3  ;;  %v9819_v62 = vld [vmem:[#allocation11 + $0x60c] sm:$0xf]  ;;  %v7321_v1 = vor.u32 %v9771_v55, %v7318_v56  ;;  %v9720_v2 = vld [vmem:[#allocation11 + $0x2ec] sm:$0xf0] }
 0x18f   :  { %v7510_v63 = vld [vmem:[#allocation11 + $0x628] sm:$0xf0]  ;;  %v7740_v3 = vld [vmem:[#allocation11 + $0x7d0] sm:$0xf]  ;;  %v7101_v5 = vor.u32 %v9720_v2, %v7100_v0  ;;  %v7198_v0 = vld [vmem:[#allocation11 + $0x3b0] sm:$0xf0] }
 0x190   :  { %2534 = vmatpush.bf16.msrb.mxu2 %v6809_v9  ;;  %2556 = vmatpush.bf16.msra.mxu0 %v7449_v11  ;;  %v9763_v7 = vld [vmem:[#allocation11 + $0x44c] sm:$0xf]  ;;  %v7513_v9 = vor.u32 %v9819_v62, %v7510_v63  ;;  %v6876_v11 = vld [vmem:[#allocation11 + $0x110] sm:$0xf]  ;;  %v7741_v13 = vor.u32 %v9880_v4, %v7740_v3  ;;  %v9740_v63 = vld [vmem:[#allocation11 + $0x394] sm:$0xf] }
 0x191   :  { %v7286_v8 = vld [vmem:[#allocation11 + $0x468] sm:$0xf0]  ;;  %v9640_v52 = vld [vmem:[#allocation11 + $0x6c] sm:$0xf0] }
 0x192   :  { %2549 = vmatpush.bf16.msrb.mxu3 %v7001_v17  ;;  %2571 = vmatpush.bf16.msra.mxu1 %v7641_v18  ;;  %v7289_v16 = vor.u32 %v9763_v7, %v7286_v8  ;;  %v7708_v17 = vld [vmem:[#allocation11 + $0x790] sm:$0xf]  ;;  %v9755_v20 = vld [vmem:[#allocation11 + $0x40c] sm:$0xf]  ;;  %v6974_v7 = vld [vmem:[#allocation11 + $0x1f0] sm:$0xf0] }
 0x193   :  { %v9872_v18 = vld [vmem:[#allocation11 + $0x7ac] sm:$0xf0]  ;;  %v7254_v21 = vld [vmem:[#allocation11 + $0x428] sm:$0xf0] }
 0x194   :  { %2535 = vmatpush.bf16.msrb.mxu2 %v6777_v23  ;;  %2557 = vmatpush.bf16.msra.mxu0 %v7417_v24  ;;  %v6844_v23 = vld [vmem:[#allocation11 + $0xd0] sm:$0xf]  ;;  %v7709_v28 = vor.u32 %v9872_v18, %v7708_v17  ;;  %v7257_v29 = vor.u32 %v9755_v20, %v7254_v21  ;;  %v6942_v20 = vld [vmem:[#allocation11 + $0x1b0] sm:$0xf0] }
 0x195   :  { %2550 = vmatmul.bf16.vlgmr.msrb.gmra.mxu3 %v10726_v15  ;;  %v9656_v24 = vld [vmem:[#allocation11 + $0xec] sm:$0xf0] }
 0x196   :  { %2594 = vmatpush.bf16.msra.mxu3 %v7229_v19  ;;  %2572 = vmatpush.bf16.msra.mxu1 %v7609_v32  ;;  %v6877_v19 = vor.u32 %v9664_v12, %v6876_v11  ;;  %v9704_v32 = vld [vmem:[#allocation11 + $0x26c] sm:$0xf0]  ;;  %v6845_v33 = vor.u32 %v9656_v24, %v6844_v23  ;;  %v7169_v23 = vor.u32 %v9732_v14, %v7166_v10  ;;  %v7454_v14 = vld [vmem:[#allocation11 + $0x5b0] sm:$0xf0] }
 0x197   :  { %v7037_v41 = vor.u32 %v9704_v32, %v7036_v31  ;;  %v7420_v53 = vld [vmem:[#allocation11 + $0x550] sm:$0xf]  ;;  %v9692_v10 = vld [vmem:[#allocation11 + $0x214] sm:$0xf] }
 0x198   :  { %2536 = vmatpush.bf16.msrb.mxu2 %v6745_v38  ;;  %2558 = vmatpush.bf16.msra.mxu0 %v7385_v39  ;;  %v9648_v38 = vld [vmem:[#allocation11 + $0xac] sm:$0xf0] }
 0x199   :  { %v7452_v39 = vld [vmem:[#allocation11 + $0x590] sm:$0xf]  ;;  %v6813_v47 = vor.u32 %v9648_v38, %v6812_v37 }
 0x19a   :  { %2595 = vmatpush.bf16.msra.mxu3 %v7197_v35  ;;  %2573 = vmatpush.bf16.msra.mxu1 %v7577_v45  ;;  %v7676_v35 = vld [vmem:[#allocation11 + $0x750] sm:$0xf] }
 0x19b   :  { %2537 = vmatmul.bf16.vlgmr.msrb.gmra.mxu2 %v10730_v30  ;;  %v7677_v43 = vor.u32 %v9864_v36, %v7676_v35  ;;  %v7644_v45 = vld [vmem:[#allocation11 + $0x710] sm:$0xf] }
 0x19c   :  { %2581 = vmatpush.bf16.msra.mxu2 %v6973_v42  ;;  %2559 = vmatpush.bf16.msra.mxu0 %v7353_v51  ;;  %v7004_v42 = vld [vmem:[#allocation11 + $0x210] sm:$0xf]  ;;  %v7645_v56 = vor.u32 %v9856_v46, %v7644_v45 }
 0x19d   :  { %v6780_v51 = vld [vmem:[#allocation11 + $0x50] sm:$0xf]  ;;  %v7005_v55 = vor.u32 %v9696_v44, %v7004_v42  ;;  %v7742_v44 = vld [vmem:[#allocation11 + $0x7f0] sm:$0xf0] }
 0x19e   :  { %2596 = vmatpush.bf16.msra.mxu3 %v7165_v48  ;;  %2574 = vmatpush.bf16.msra.mxu1 %v7545_v57  ;;  %v7453_v48 = vor.u32 %v9808_v40, %v7452_v39  ;;  %v7233_v57 = vor.u32 %v9748_v49, %v7230_v50  ;;  %v7612_v58 = vld [vmem:[#allocation11 + $0x6d0] sm:$0xf]  ;;  %v9716_v40 = vld [vmem:[#allocation11 + $0x2d4] sm:$0xf] }
 0x19f   :  { %v9848_v59 = vld [vmem:[#allocation11 + $0x6ec] sm:$0xf0] }
 0x1a0   :  { %2582 = vmatpush.bf16.msra.mxu2 %v6941_v54  ;;  %2560 = vmatpush.bf16.msra.mxu0 %v7321_v1  ;;  %v9800_v54 = vld [vmem:[#allocation11 + $0x56c] sm:$0xf0]  ;;  %v7613_v8 = vor.u32 %v9848_v59, %v7612_v58 }
 0x1a1   :  { %v7421_v62 = vor.u32 %v9800_v54, %v7420_v53  ;;  %v6748_v1 = vld [vmem:[#allocation11 + $0x10] sm:$0xf]  ;;  %v7070_v53 = vld [vmem:[#allocation11 + $0x2b0] sm:$0xf0] }
 0x1a2   :  { %2597 = vmatpush.bf16.msra.mxu3 %v7133_v60  ;;  %2575 = vmatpush.bf16.msra.mxu1 %v7513_v9  ;;  %v6781_v60 = vor.u32 %v9640_v52, %v6780_v51  ;;  %v9632_v2 = vld [vmem:[#allocation11 + $0x2c] sm:$0xf0]  ;;  %v7201_v9 = vor.u32 %v9740_v63, %v7198_v0  ;;  %v9708_v52 = vld [vmem:[#allocation11 + $0x294] sm:$0xf] }
 0x1a3   :  { %v7388_v3 = vld [vmem:[#allocation11 + $0x510] sm:$0xf]  ;;  %v6749_v11 = vor.u32 %v9632_v2, %v6748_v1  ;;  %v9812_v63 = vld [vmem:[#allocation11 + $0x5d4] sm:$0xf]  ;;  %v7073_v1 = vor.u32 %v9708_v52, %v7070_v53  ;;  %v7172_v52 = vld [vmem:[#allocation11 + $0x358] sm:$0xf] }
 0x1a4   :  { %2583 = vmatpush.bf16.msra.mxu2 %v6909_v6  ;;  %2561 = vmatpush.bf16.msra.mxu0 %v7289_v16  ;;  %v9792_v4 = vld [vmem:[#allocation11 + $0x52c] sm:$0xf0]  ;;  %v9684_v6 = vld [vmem:[#allocation11 + $0x1d4] sm:$0xf] }
 0x1a5   :  { %2576 = vmatmul.bf16.vlgmr.msra.gmra.mxu1 %v10734_v61  ;;  %v7389_v12 = vor.u32 %v9792_v4, %v7388_v3  ;;  %v6977_v16 = vor.u32 %v9684_v6, %v6974_v7  ;;  %v7356_v17 = vld [vmem:[#allocation11 + $0x4d0] sm:$0xf]  ;;  %v7486_v0 = vld [vmem:[#allocation11 + $0x5f0] sm:$0xf0] }
 0x1a6   :  { %2598 = vmatpush.bf16.msra.mxu3 %v7101_v5  ;;  %2620 = vmatpush.bf16.msrb.mxu1 %v7741_v13  ;;  %v7580_v5 = vld [vmem:[#allocation11 + $0x690] sm:$0xf]  ;;  %v9700_v6 = vld [vmem:[#allocation11 + $0x254] sm:$0xf] }
 0x1a7   :  { %v9840_v13 = vld [vmem:[#allocation11 + $0x6ac] sm:$0xf0]  ;;  %v7038_v7 = vld [vmem:[#allocation11 + $0x270] sm:$0xf0] }
 0x1a8   :  { %2584 = vmatpush.bf16.msra.mxu2 %v6877_v19  ;;  %2562 = vmatpush.bf16.msra.mxu0 %v7257_v29  ;;  %v9784_v18 = vld [vmem:[#allocation11 + $0x4ec] sm:$0xf0]  ;;  %v9676_v19 = vld [vmem:[#allocation11 + $0x194] sm:$0xf]  ;;  %v7581_v21 = vor.u32 %v9840_v13, %v7580_v5 }
 0x1a9   :  { %v7357_v24 = vor.u32 %v9784_v18, %v7356_v17  ;;  %v7548_v25 = vld [vmem:[#allocation11 + $0x650] sm:$0xf]  ;;  %v7134_v29 = vld [vmem:[#allocation11 + $0x330] sm:$0xf0] }
 0x1aa   :  { %2599 = vmatpush.bf16.msra.mxu3 %v7069_v27  ;;  %2621 = vmatpush.bf16.msrb.mxu1 %v7709_v28  ;;  %v9832_v26 = vld [vmem:[#allocation11 + $0x66c] sm:$0xf0]  ;;  %v9724_v27 = vld [vmem:[#allocation11 + $0x314] sm:$0xf]  ;;  %v6945_v28 = vor.u32 %v9676_v19, %v6942_v20 }
 0x1ab   :  { %2563 = vmatmul.bf16.vlgmr.msra.gmra.mxu0 %v10738_v22  ;;  %v7324_v31 = vld [vmem:[#allocation11 + $0x490] sm:$0xf]  ;;  %v7549_v35 = vor.u32 %v9832_v26, %v7548_v25  ;;  %v7137_v37 = vor.u32 %v9724_v27, %v7134_v29  ;;  %v6814_v5 = vld [vmem:[#allocation11 + $0xb0] sm:$0xf0]  ;;  %v9753_v25 = vld [vmem:[#allocation11 + $0x3f4] sm:$0xf0] }
 0x1ac   :  { %2585 = vmatpush.bf16.msra.mxu2 %v6845_v33  ;;  %2607 = vmatpush.bf16.msrb.mxu0 %v7485_v34  ;;  %v9776_v32 = vld [vmem:[#allocation11 + $0x4ac] sm:$0xf0]  ;;  %v9668_v33 = vld [vmem:[#allocation11 + $0x154] sm:$0xf] }
 0x1ad   :  { %v6910_v34 = vld [vmem:[#allocation11 + $0x170] sm:$0xf0]  ;;  %v7516_v36 = vld [vmem:[#allocation11 + $0x610] sm:$0xf]  ;;  %v7325_v38 = vor.u32 %v9776_v32, %v7324_v31 }
 0x1ae   :  { %2600 = vmatpush.bf16.msra.mxu3 %v7037_v41  ;;  %2622 = vmatpush.bf16.msrb.mxu1 %v7677_v43  ;;  %v9824_v39 = vld [vmem:[#allocation11 + $0x62c] sm:$0xf0]  ;;  %v7102_v41 = vld [vmem:[#allocation11 + $0x2f0] sm:$0xf0]  ;;  %v6913_v42 = vor.u32 %v9668_v33, %v6910_v34 }
 0x1af   :  { %v9876_v43 = vld [vmem:[#allocation11 + $0x7d4] sm:$0xf]  ;;  %v7292_v45 = vld [vmem:[#allocation11 + $0x450] sm:$0xf]  ;;  %v7517_v49 = vor.u32 %v9824_v39, %v7516_v36  ;;  %v7105_v50 = vor.u32 %v9716_v40, %v7102_v41  ;;  %v9745_v39 = vld [vmem:[#allocation11 + $0x3b4] sm:$0xf0] }
 0x1b0   :  { %2586 = vmatpush.bf16.msra.mxu2 %v6813_v47  ;;  %2608 = vmatpush.bf16.msrb.mxu0 %v7453_v48  ;;  %v9768_v46 = vld [vmem:[#allocation11 + $0x46c] sm:$0xf0]  ;;  %v9660_v47 = vld [vmem:[#allocation11 + $0x114] sm:$0xf]  ;;  %v7745_v51 = vor.u32 %v9876_v43, %v7742_v44  ;;  %v6980_v44 = vld [vmem:[#allocation11 + $0x1d8] sm:$0xf] }
 0x1b1   :  { %v6878_v48 = vld [vmem:[#allocation11 + $0x130] sm:$0xf0]  ;;  %v7293_v54 = vor.u32 %v9768_v46, %v7292_v45  ;;  %v7260_v58 = vld [vmem:[#allocation11 + $0x410] sm:$0xf]  ;;  %v9689_v45 = vld [vmem:[#allocation11 + $0x1f4] sm:$0xf0] }
 0x1b2   :  { %2601 = vmatpush.bf16.msra.mxu3 %v7005_v55  ;;  %2623 = vmatpush.bf16.msrb.mxu1 %v7645_v56  ;;  %v6881_v55 = vor.u32 %v9660_v47, %v6878_v48  ;;  %v9868_v56 = vld [vmem:[#allocation11 + $0x794] sm:$0xf]  ;;  %v9760_v59 = vld [vmem:[#allocation11 + $0x42c] sm:$0xf0]  ;;  %v6981_v53 = vor.u32 %v9689_v45, %v6980_v44  ;;  %v9817_v44 = vld [vmem:[#allocation11 + $0x5f4] sm:$0xf0] }
 0x1b3   :  { %v7261_v3 = vor.u32 %v9760_v59, %v7260_v58  ;;  %v9804_v13 = vld [vmem:[#allocation11 + $0x594] sm:$0xf]  ;;  %v9681_v58 = vld [vmem:[#allocation11 + $0x1b4] sm:$0xf0] }
 0x1b4   :  { %2587 = vmatpush.bf16.msra.mxu2 %v6781_v60  ;;  %2609 = vmatpush.bf16.msrb.mxu0 %v7421_v62  ;;  %v9652_v60 = vld [vmem:[#allocation11 + $0xd4] sm:$0xf] }
 0x1b5   :  { %2602 = vmatmul.bf16.vlgmr.msra.gmra.mxu3 %v10726_v15  ;;  %v6846_v62 = vld [vmem:[#allocation11 + $0xf0] sm:$0xf0] }
 0x1b6   :  { %2646 = vmatpush.bf16.msrb.mxu3 %v7233_v57  ;;  %2624 = vmatpush.bf16.msrb.mxu1 %v7613_v8  ;;  %v7710_v57 = vld [vmem:[#allocation11 + $0x7b0] sm:$0xf0]  ;;  %v6849_v4 = vor.u32 %v9652_v60, %v6846_v62 }
 0x1b7   :  { %v7713_v2 = vor.u32 %v9868_v56, %v7710_v57  ;;  %v9860_v8 = vld [vmem:[#allocation11 + $0x754] sm:$0xf]  ;;  %v6948_v57 = vld [vmem:[#allocation11 + $0x198] sm:$0xf] }
 0x1b8   :  { %2588 = vmatpush.bf16.msra.mxu2 %v6749_v11  ;;  %2610 = vmatpush.bf16.msrb.mxu0 %v7389_v12  ;;  %v7678_v11 = vld [vmem:[#allocation11 + $0x770] sm:$0xf0] }
 0x1b9   :  { %v9644_v12 = vld [vmem:[#allocation11 + $0x94] sm:$0xf]  ;;  %v7681_v17 = vor.u32 %v9860_v8, %v7678_v11  ;;  %v6916_v8 = vld [vmem:[#allocation11 + $0x158] sm:$0xf] }
 0x1ba   :  { %2647 = vmatpush.bf16.msrb.mxu3 %v7201_v9  ;;  %2625 = vmatpush.bf16.msrb.mxu1 %v7581_v21  ;;  %v7489_v9 = vor.u32 %v9812_v63, %v7486_v0  ;;  %v6817_v18 = vor.u32 %v9644_v12, %v6814_v5  ;;  %v7006_v19 = vld [vmem:[#allocation11 + $0x230] sm:$0xf0] }
 0x1bb   :  { %2589 = vmatmul.bf16.vlgmr.msra.gmra.mxu2 %v10730_v30  ;;  %v9852_v20 = vld [vmem:[#allocation11 + $0x714] sm:$0xf]  ;;  %v7009_v31 = vor.u32 %v9692_v10, %v7006_v19  ;;  %v7108_v10 = vld [vmem:[#allocation11 + $0x2d8] sm:$0xf] }
 0x1bc   :  { %2633 = vmatpush.bf16.msrb.mxu2 %v6977_v16  ;;  %2611 = vmatpush.bf16.msrb.mxu0 %v7357_v24  ;;  %v7041_v16 = vor.u32 %v9700_v6, %v7038_v7  ;;  %v7646_v21 = vld [vmem:[#allocation11 + $0x730] sm:$0xf0]  ;;  %v7236_v24 = vld [vmem:[#allocation11 + $0x3d8] sm:$0xf] }
 0x1bd   :  { %v9636_v26 = vld [vmem:[#allocation11 + $0x54] sm:$0xf]  ;;  %v7649_v32 = vor.u32 %v9852_v20, %v7646_v21  ;;  %v7237_v33 = vor.u32 %v9753_v25, %v7236_v24  ;;  %v7748_v19 = vld [vmem:[#allocation11 + $0x7d8] sm:$0xf] }
 0x1be   :  { %2648 = vmatpush.bf16.msrb.mxu3 %v7169_v23  ;;  %2626 = vmatpush.bf16.msrb.mxu1 %v7549_v35  ;;  %v7457_v23 = vor.u32 %v9804_v13, %v7454_v14  ;;  %v6782_v27 = vld [vmem:[#allocation11 + $0x70] sm:$0xf0]  ;;  %v9881_v20 = vld [vmem:[#allocation11 + $0x7f4] sm:$0xf0] }
 0x1bf   :  { %v7422_v29 = vld [vmem:[#allocation11 + $0x570] sm:$0xf0]  ;;  %v6785_v36 = vor.u32 %v9636_v26, %v6782_v27  ;;  %v6884_v24 = vld [vmem:[#allocation11 + $0x118] sm:$0xf] }
 0x1c0   :  { %2634 = vmatpush.bf16.msrb.mxu2 %v6945_v28  ;;  %2612 = vmatpush.bf16.msrb.mxu0 %v7325_v38  ;;  %v9796_v28 = vld [vmem:[#allocation11 + $0x554] sm:$0xf]  ;;  %v7204_v38 = vld [vmem:[#allocation11 + $0x398] sm:$0xf] }
 0x1c1   :  { %v9844_v34 = vld [vmem:[#allocation11 + $0x6d4] sm:$0xf]  ;;  %v7205_v47 = vor.u32 %v9745_v39, %v7204_v38  ;;  %v9665_v25 = vld [vmem:[#allocation11 + $0x134] sm:$0xf0] }
 0x1c2   :  { %2649 = vmatpush.bf16.msrb.mxu3 %v7137_v37  ;;  %2627 = vmatpush.bf16.msrb.mxu1 %v7517_v49  ;;  %v7614_v35 = vld [vmem:[#allocation11 + $0x6f0] sm:$0xf0]  ;;  %v7425_v37 = vor.u32 %v9796_v28, %v7422_v29 }
 0x1c3   :  { %v9628_v40 = vld [vmem:[#allocation11 + $0x14] sm:$0xf]  ;;  %v7617_v46 = vor.u32 %v9844_v34, %v7614_v35  ;;  %v6885_v35 = vor.u32 %v9665_v25, %v6884_v24 }
 0x1c4   :  { %2635 = vmatpush.bf16.msrb.mxu2 %v6913_v42  ;;  %2613 = vmatpush.bf16.msrb.mxu0 %v7293_v54  ;;  %v6750_v41 = vld [vmem:[#allocation11 + $0x30] sm:$0xf0]  ;;  %v9737_v54 = vld [vmem:[#allocation11 + $0x374] sm:$0xf0] }
 0x1c5   :  { %2628 = vmatmul.bf16.vlgmr.msrb.gmra.mxu1 %v10734_v61  ;;  %v9788_v42 = vld [vmem:[#allocation11 + $0x514] sm:$0xf]  ;;  %v6753_v48 = vor.u32 %v9628_v40, %v6750_v41  ;;  %v7173_v62 = vor.u32 %v9737_v54, %v7172_v52  ;;  %v6852_v40 = vld [vmem:[#allocation11 + $0xd8] sm:$0xf] }
 0x1c6   :  { %2650 = vmatpush.bf16.msrb.mxu3 %v7105_v50  ;;  %2672 = vmatpush.bf16.msra.mxu1 %v7745_v51  ;;  %v7390_v43 = vld [vmem:[#allocation11 + $0x530] sm:$0xf0]  ;;  %v9657_v41 = vld [vmem:[#allocation11 + $0xf4] sm:$0xf0] }
 0x1c7   :  { %v7393_v49 = vor.u32 %v9788_v42, %v7390_v43  ;;  %v9836_v50 = vld [vmem:[#allocation11 + $0x694] sm:$0xf]  ;;  %v7492_v43 = vld [vmem:[#allocation11 + $0x5d8] sm:$0xf] }
 0x1c8   :  { %2636 = vmatpush.bf16.msrb.mxu2 %v6881_v55  ;;  %2614 = vmatpush.bf16.msrb.mxu0 %v7261_v3  ;;  %v7582_v51 = vld [vmem:[#allocation11 + $0x6b0] sm:$0xf0]  ;;  %v6949_v3 = vor.u32 %v9681_v58, %v6948_v57  ;;  %v9865_v54 = vld [vmem:[#allocation11 + $0x774] sm:$0xf0] }
 0x1c9   :  { %v9780_v55 = vld [vmem:[#allocation11 + $0x4d4] sm:$0xf]  ;;  %v7585_v59 = vor.u32 %v9836_v50, %v7582_v51  ;;  %v9705_v50 = vld [vmem:[#allocation11 + $0x274] sm:$0xf0] }
 0x1ca   :  { %2651 = vmatpush.bf16.msrb.mxu3 %v7073_v1  ;;  %2673 = vmatpush.bf16.msra.mxu1 %v7713_v2  ;;  %v7358_v56 = vld [vmem:[#allocation11 + $0x4f0] sm:$0xf0]  ;;  %v7140_v1 = vld [vmem:[#allocation11 + $0x318] sm:$0xf]  ;;  %v10757_v2 = vld [vmem:[#allocation13] sm:$0xff] }
 0x1cb   :  { %2615 = vmatmul.bf16.vlgmr.msrb.gmra.mxu0 %v10738_v22  ;;  %v9828_v60 = vld [vmem:[#allocation11 + $0x654] sm:$0xf]  ;;  %v7361_v63 = vor.u32 %v9780_v55, %v7358_v56  ;;  %v10761_v5 = vunpack.c.l.bf16 %v10757_v2  ;;  %v7684_v51 = vld [vmem:[#allocation11 + $0x758] sm:$0xf] }
 0x1cc   :  { %2637 = vmatpush.bf16.msrb.mxu2 %v6849_v4  ;;  %2659 = vmatpush.bf16.msra.mxu0 %v7489_v9  ;;  %v7550_v0 = vld [vmem:[#allocation11 + $0x670] sm:$0xf0]  ;;  %v9729_v4 = vld [vmem:[#allocation11 + $0x334] sm:$0xf0] }
 0x1cd   :  { %v9772_v6 = vld [vmem:[#allocation11 + $0x494] sm:$0xf]  ;;  %v9673_v9 = vld [vmem:[#allocation11 + $0x174] sm:$0xf0]  ;;  %v7553_v11 = vor.u32 %v9828_v60, %v7550_v0  ;;  %v7141_v13 = vor.u32 %v9729_v4, %v7140_v1  ;;  %v1069_v27 = vperm.slane %v10761_v5, 0  ;;  %v7685_v0 = vor.u32 %v9865_v54, %v7684_v51 }
 0x1ce   :  { %2652 = vmatpush.bf16.msrb.mxu3 %v7041_v16  ;;  %2674 = vmatpush.bf16.msra.mxu1 %v7681_v17  ;;  %v7326_v7 = vld [vmem:[#allocation11 + $0x4b0] sm:$0xf0]  ;;  %v9721_v17 = vld [vmem:[#allocation11 + $0x2f4] sm:$0xf0]  ;;  %v9677_v51 = vld [vmem:[#allocation11 + $0x19c] sm:$0xf] }
 0x1cf   :  { %v9820_v12 = vld [vmem:[#allocation11 + $0x614] sm:$0xf]  ;;  %v7329_v14 = vor.u32 %v9772_v6, %v7326_v7  ;;  %v7109_v29 = vor.u32 %v9721_v17, %v7108_v10  ;;  %v1085_v42 = vperm.slane %v1069_v27, 0  ;;  %v6820_v55 = vld [vmem:[#allocation11 + $0x98] sm:$0xf] }
 0x1d0   :  { %2638 = vmatpush.bf16.msrb.mxu2 %v6817_v18  ;;  %2660 = vmatpush.bf16.msra.mxu0 %v7457_v23  ;;  %v7518_v16 = vld [vmem:[#allocation11 + $0x630] sm:$0xf0]  ;;  %v6917_v18 = vor.u32 %v9673_v9, %v6916_v8  ;;  %v9649_v56 = vld [vmem:[#allocation11 + $0xb4] sm:$0xf0]  ;;  %v7206_v27 = vld [vmem:[#allocation11 + $0x3b8] sm:$0xf0] }
 0x1d1   :  { %v9764_v21 = vld [vmem:[#allocation11 + $0x454] sm:$0xf]  ;;  %v7521_v26 = vor.u32 %v9820_v12, %v7518_v16  ;;  %v7460_v58 = vld [vmem:[#allocation11 + $0x598] sm:$0xf]  ;;  %v6821_v1 = vor.u32 %v9649_v56, %v6820_v55  ;;  %v7238_v12 = vld [vmem:[#allocation11 + $0x3f8] sm:$0xf0] }
 0x1d2   :  { %2653 = vmatpush.bf16.msrb.mxu3 %v7009_v31  ;;  %2675 = vmatpush.bf16.msra.mxu1 %v7649_v32  ;;  %v7294_v23 = vld [vmem:[#allocation11 + $0x470] sm:$0xf0]  ;;  %v7749_v31 = vor.u32 %v9881_v20, %v7748_v19  ;;  %v7076_v32 = vld [vmem:[#allocation11 + $0x298] sm:$0xf] }
 0x1d3   :  { %v7297_v34 = vor.u32 %v9764_v21, %v7294_v23  ;;  %v9756_v38 = vld [vmem:[#allocation11 + $0x414] sm:$0xf]  ;;  %v7652_v4 = vld [vmem:[#allocation11 + $0x718] sm:$0xf] }
 0x1d4   :  { %2639 = vmatpush.bf16.msrb.mxu2 %v6785_v36  ;;  %2661 = vmatpush.bf16.msra.mxu0 %v7425_v37  ;;  %v7716_v36 = vld [vmem:[#allocation11 + $0x798] sm:$0xf]  ;;  %v7262_v39 = vld [vmem:[#allocation11 + $0x430] sm:$0xf0] }
 0x1d5   :  { %2654 = vmatmul.bf16.vlgmr.msrb.gmra.mxu3 %v10726_v15  ;;  %v9873_v37 = vld [vmem:[#allocation11 + $0x7b4] sm:$0xf0] }
 0x1d6   :  { %2698 = vmatpush.bf16.msra.mxu3 %v7237_v33  ;;  %2676 = vmatpush.bf16.msra.mxu1 %v7617_v46  ;;  %v9713_v33 = vld [vmem:[#allocation11 + $0x2b4] sm:$0xf0]  ;;  %v7717_v46 = vor.u32 %v9873_v37, %v7716_v36  ;;  %v6982_v36 = vld [vmem:[#allocation11 + $0x1f8] sm:$0xf0] }
 0x1d7   :  { %v7077_v45 = vor.u32 %v9713_v33, %v7076_v32  ;;  %v9857_v6 = vld [vmem:[#allocation11 + $0x734] sm:$0xf0] }
 0x1d8   :  { %2640 = vmatpush.bf16.msrb.mxu2 %v6753_v48  ;;  %2662 = vmatpush.bf16.msra.mxu0 %v7393_v49  ;;  %v2395_v28 = vpop.f32.mrf.mxu3  ;;  %v6853_v48 = vor.u32 %v9657_v41, %v6852_v40  ;;  %v7044_v49 = vld [vmem:[#allocation11 + $0x258] sm:$0xf] }
 0x1d9   :  { %v7428_v16 = vld [vmem:[#allocation11 + $0x558] sm:$0xf] }
 0x1da   :  { %2699 = vmatpush.bf16.msra.mxu3 %v7205_v47  ;;  %2677 = vmatpush.bf16.msra.mxu1 %v7585_v59  ;;  %v7265_v47 = vor.u32 %v9756_v38, %v7262_v39  ;;  %v9809_v59 = vld [vmem:[#allocation11 + $0x5b4] sm:$0xf0] }
 0x1db   :  { %2641 = vmatmul.bf16.vlgmr.msrb.gmra.mxu2 %v10730_v30  ;;  %v7461_v9 = vor.u32 %v9809_v59, %v7460_v58  ;;  %v9801_v10 = vld [vmem:[#allocation11 + $0x574] sm:$0xf0]  ;;  %v9725_v59 = vld [vmem:[#allocation11 + $0x31c] sm:$0xf] }
 0x1dc   :  { %2685 = vmatpush.bf16.msra.mxu2 %v6981_v53  ;;  %2663 = vmatpush.bf16.msra.mxu0 %v7361_v63  ;;  %v7493_v53 = vor.u32 %v9817_v44, %v7492_v43  ;;  %v7012_v63 = vld [vmem:[#allocation11 + $0x218] sm:$0xf]  ;;  %v7429_v25 = vor.u32 %v9801_v10, %v7428_v16  ;;  %v7110_v16 = vld [vmem:[#allocation11 + $0x2f8] sm:$0xf0] }
 0x1dd   :  { %v7620_v20 = vld [vmem:[#allocation11 + $0x6d8] sm:$0xf] }
 0x1de   :  { %2700 = vmatpush.bf16.msra.mxu3 %v7173_v62  ;;  %2678 = vmatpush.bf16.msra.mxu1 %v7553_v11  ;;  %v2382_v52 = vpop.f32.mrf.mxu2  ;;  %v7045_v62 = vor.u32 %v9705_v50, %v7044_v49  ;;  %v9749_v11 = vld [vmem:[#allocation11 + $0x3dc] sm:$0xf]  ;;  %v9849_v21 = vld [vmem:[#allocation11 + $0x6f4] sm:$0xf0] }
 0x1df   :  { %v2383_v57 = vadd.f32 %v2382_v52, %v1085_v42  ;;  %v7241_v19 = vor.u32 %v9749_v11, %v7238_v12  ;;  %v9793_v32 = vld [vmem:[#allocation11 + $0x534] sm:$0xf0]  ;;  %v7621_v38 = vor.u32 %v9849_v21, %v7620_v20  ;;  %v6950_v52 = vld [vmem:[#allocation11 + $0x1b8] sm:$0xf0] }
 0x1e0   :  { %2686 = vmatpush.bf16.msra.mxu2 %v6949_v3  ;;  %2664 = vmatpush.bf16.msra.mxu0 %v7329_v14  ;;  %v2397_v60 = vpop.f32.mrf.mxu3  ;;  %v9697_v3 = vld [vmem:[#allocation11 + $0x234] sm:$0xf0]  ;;  %v9661_v21 = vld [vmem:[#allocation11 + $0x11c] sm:$0xf] }
 0x1e1   :  { %v2396_v7 = vadd.f32 %v2395_v28, %v2383_v57  ;;  %v9641_v14 = vld [vmem:[#allocation11 + $0x74] sm:$0xf0]  ;;  %v7013_v17 = vor.u32 %v9697_v3, %v7012_v63  ;;  %v6953_v60 = vor.u32 %v9677_v51, %v6950_v52  ;;  %v7046_v51 = vld [vmem:[#allocation11 + $0x278] sm:$0xf0] }
 0x1e2   :  { %2701 = vmatpush.bf16.msra.mxu3 %v7141_v13  ;;  %2679 = vmatpush.bf16.msra.mxu1 %v7521_v26  ;;  %v2421_v8 = vpop.f32.mrf.mxu1  ;;  %v6788_v13 = vld [vmem:[#allocation11 + $0x58] sm:$0xf]  ;;  %v9741_v26 = vld [vmem:[#allocation11 + $0x39c] sm:$0xf] }
 0x1e3   :  { %v6789_v24 = vor.u32 %v9641_v14, %v6788_v13  ;;  %v6756_v28 = vld [vmem:[#allocation11 + $0x18] sm:$0xf]  ;;  %v7209_v39 = vor.u32 %v9741_v26, %v7206_v27  ;;  %v9717_v14 = vld [vmem:[#allocation11 + $0x2dc] sm:$0xf] }
 0x1e4   :  { %2687 = vmatpush.bf16.msra.mxu2 %v6917_v18  ;;  %2665 = vmatpush.bf16.msra.mxu0 %v7297_v34  ;;  %v7653_v18 = vor.u32 %v9857_v6, %v7652_v4  ;;  %v7588_v43 = vld [vmem:[#allocation11 + $0x698] sm:$0xf]  ;;  %v9669_v4 = vld [vmem:[#allocation11 + $0x15c] sm:$0xf]  ;;  %v7113_v26 = vor.u32 %v9717_v14, %v7110_v16 }
 0x1e5   :  { %2680 = vmatmul.bf16.vlgmr.msra.gmra.mxu1 %v10734_v61  ;;  %v9841_v44 = vld [vmem:[#allocation11 + $0x6b4] sm:$0xf0]  ;;  %v6918_v6 = vld [vmem:[#allocation11 + $0x178] sm:$0xf0] }
 0x1e6   :  { %2702 = vmatpush.bf16.msra.mxu3 %v7109_v29  ;;  %2724 = vmatpush.bf16.msrb.mxu1 %v7749_v31  ;;  %v2384_v23 = vpop.f32.mrf.mxu2  ;;  %v9633_v29 = vld [vmem:[#allocation11 + $0x34] sm:$0xf0]  ;;  %v6921_v10 = vor.u32 %v9669_v4, %v6918_v6  ;;  %v9861_v52 = vld [vmem:[#allocation11 + $0x75c] sm:$0xf] }
 0x1e7   :  { %v7396_v31 = vld [vmem:[#allocation11 + $0x518] sm:$0xf]  ;;  %v6757_v41 = vor.u32 %v9633_v29, %v6756_v28  ;;  %v6886_v23 = vld [vmem:[#allocation11 + $0x138] sm:$0xf0] }
 0x1e8   :  { %2688 = vmatpush.bf16.msra.mxu2 %v6885_v35  ;;  %2666 = vmatpush.bf16.msra.mxu0 %v7265_v47  ;;  %v2408_v33 = vpop.f32.mrf.mxu0  ;;  %v10766_v34 = vpop.f32.mrf.mxu3  ;;  %v9685_v35 = vld [vmem:[#allocation11 + $0x1dc] sm:$0xf]  ;;  %v7397_v42 = vor.u32 %v9793_v32, %v7396_v31  ;;  %v7364_v49 = vld [vmem:[#allocation11 + $0x4d8] sm:$0xf]  ;;  %v6889_v32 = vor.u32 %v9661_v21, %v6886_v23 }
 0x1e9   :  { %v2409_v37 = vadd.f32 %v2408_v33, %v2396_v7  ;;  %v6985_v47 = vor.u32 %v9685_v35, %v6982_v36  ;;  %v9785_v50 = vld [vmem:[#allocation11 + $0x4f4] sm:$0xf0]  ;;  %v9709_v28 = vld [vmem:[#allocation11 + $0x29c] sm:$0xf] }
 0x1ea   :  { %2703 = vmatpush.bf16.msra.mxu3 %v7077_v45  ;;  %2725 = vmatpush.bf16.msrb.mxu1 %v7717_v46  ;;  %v2423_v40 = vpop.f32.mrf.mxu1  ;;  %v9733_v45 = vld [vmem:[#allocation11 + $0x35c] sm:$0xf]  ;;  %v7365_v56 = vor.u32 %v9785_v50, %v7364_v49  ;;  %v7556_v57 = vld [vmem:[#allocation11 + $0x658] sm:$0xf] }
 0x1eb   :  { %2667 = vmatmul.bf16.vlgmr.msra.gmra.mxu0 %v10738_v22  ;;  %v10768_v46 = vadd.f32 %v2421_v8, %v2409_v37  ;;  %v9833_v58 = vld [vmem:[#allocation11 + $0x674] sm:$0xf0]  ;;  %v7078_v29 = vld [vmem:[#allocation11 + $0x2b8] sm:$0xf0] }
 0x1ec   :  { %2689 = vmatpush.bf16.msra.mxu2 %v6853_v48  ;;  %2711 = vmatpush.bf16.msrb.mxu0 %v7493_v53  ;;  %v7174_v48 = vld [vmem:[#allocation11 + $0x378] sm:$0xf0]  ;;  %v7589_v53 = vor.u32 %v9841_v44, %v7588_v43  ;;  %v7332_v63 = vld [vmem:[#allocation11 + $0x498] sm:$0xf]  ;;  %v7557_v7 = vor.u32 %v9833_v58, %v7556_v57 }
 0x1ed   :  { %v7177_v55 = vor.u32 %v9733_v45, %v7174_v48  ;;  %v7524_v8 = vld [vmem:[#allocation11 + $0x618] sm:$0xf]  ;;  %v9869_v33 = vld [vmem:[#allocation11 + $0x79c] sm:$0xf]  ;;  %v7081_v45 = vor.u32 %v9709_v28, %v7078_v29  ;;  %v9983_v28 = vld [vmem:[#allocation14 + $0x328] sm:$0xf0] }
 0x1ee   :  { %2704 = vmatpush.bf16.msra.mxu3 %v7045_v62  ;;  %2726 = vmatpush.bf16.msrb.mxu1 %v7685_v0  ;;  %v10771_v54 = vpop.f32.mrf.mxu2  ;;  %v7142_v62 = vld [vmem:[#allocation11 + $0x338] sm:$0xf0]  ;;  %v9777_v0 = vld [vmem:[#allocation11 + $0x4b4] sm:$0xf0] }
 0x1ef   :  { %v7145_v11 = vor.u32 %v9725_v59, %v7142_v62  ;;  %v7333_v12 = vor.u32 %v9777_v0, %v7332_v63  ;;  %v9825_v13 = vld [vmem:[#allocation11 + $0x634] sm:$0xf0]  ;;  %v7718_v35 = vld [vmem:[#allocation11 + $0x7b8] sm:$0xf0] }
 0x1f0   :  { %2690 = vmatpush.bf16.msra.mxu2 %v6821_v1  ;;  %2712 = vmatpush.bf16.msrb.mxu0 %v7461_v9  ;;  %v2410_v1 = vpop.f32.mrf.mxu0  ;;  %v2449_v3 = vpop.f32.mrf.mxu3  ;;  %v9769_v20 = vld [vmem:[#allocation11 + $0x474] sm:$0xf0]  ;;  %v9653_v40 = vld [vmem:[#allocation11 + $0xdc] sm:$0xf] }
 0x1f1   :  { %v7268_v36 = vld [vmem:[#allocation11 + $0x418] sm:$0xf]  ;;  %v7494_v43 = vld [vmem:[#allocation11 + $0x5f8] sm:$0xf0] }
 0x1f2   :  { %2705 = vmatpush.bf16.msra.mxu3 %v7013_v17  ;;  %2727 = vmatpush.bf16.msrb.mxu1 %v7653_v18  ;;  %v10774_v9 = vpop.f32.mrf.mxu1  ;;  %v9877_v17 = vld [vmem:[#allocation11 + $0x7dc] sm:$0xf] }
 0x1f3   :  { %v7750_v18 = vld [vmem:[#allocation11 + $0x7f8] sm:$0xf0] }
 0x1f4   :  { %2691 = vmatpush.bf16.msra.mxu2 %v6789_v24  ;;  %2713 = vmatpush.bf16.msrb.mxu0 %v7429_v25  ;;  %v7525_v24 = vor.u32 %v9825_v13, %v7524_v8  ;;  %v7753_v27 = vor.u32 %v9877_v17, %v7750_v18  ;;  %v9701_v50 = vld [vmem:[#allocation11 + $0x25c] sm:$0xf]  ;;  %v9990_v13 = vld [vmem:[#allocation14 + $0x360] sm:$0xf0] }
 0x1f5   :  { %2706 = vmatmul.bf16.vlgmr.msra.gmra.mxu3 %v10726_v15  ;;  %v6822_v57 = vld [vmem:[#allocation11 + $0xb8] sm:$0xf0] }
 0x1f6   :  { %2750 = vmatpush.bf16.msrb.mxu3 %v7241_v19  ;;  %2728 = vmatpush.bf16.msrb.mxu1 %v7621_v38  ;;  %v7300_v19 = vld [vmem:[#allocation11 + $0x458] sm:$0xf]  ;;  %v2436_v25 = vpop.f32.mrf.mxu2  ;;  %v9805_v58 = vld [vmem:[#allocation11 + $0x59c] sm:$0xf] }
 0x1f7   :  { %v7301_v31 = vor.u32 %v9769_v20, %v7300_v19  ;;  %v7462_v59 = vld [vmem:[#allocation11 + $0x5b8] sm:$0xf0] }
 0x1f8   :  { %2692 = vmatpush.bf16.msra.mxu2 %v6757_v41  ;;  %2714 = vmatpush.bf16.msrb.mxu0 %v7397_v42  ;;  %v10776_v37 = vpop.f32.mrf.mxu0  ;;  %v10778_v38 = vpop.f32.mrf.mxu3  ;;  %v6854_v41 = vld [vmem:[#allocation11 + $0xf8] sm:$0xf0] }
 0x1f9   :  { %v9813_v42 = vld [vmem:[#allocation11 + $0x5dc] sm:$0xf]  ;;  %v6857_v49 = vor.u32 %v9653_v40, %v6854_v41 }
 0x1fa   :  { %2751 = vmatpush.bf16.msrb.mxu3 %v7209_v39  ;;  %2729 = vmatpush.bf16.msrb.mxu1 %v7589_v53  ;;  %v9761_v39 = vld [vmem:[#allocation11 + $0x434] sm:$0xf0]  ;;  %v2475_v44 = vpop.f32.mrf.mxu1  ;;  %v7497_v53 = vor.u32 %v9813_v42, %v7494_v43  ;;  %v9693_v62 = vld [vmem:[#allocation11 + $0x21c] sm:$0xf] }
 0x1fb   :  { %2693 = vmatmul.bf16.vlgmr.msra.gmra.mxu2 %v10730_v30  ;;  %v7269_v48 = vor.u32 %v9761_v39, %v7268_v36  ;;  %v7014_v3 = vld [vmem:[#allocation11 + $0x238] sm:$0xf0]  ;;  %v9934_v36 = vld [vmem:[#allocation14 + $0x1a0] sm:$0xf0] }
 0x1fc   :  { %2737 = vmatpush.bf16.msrb.mxu2 %v6985_v47  ;;  %2715 = vmatpush.bf16.msrb.mxu0 %v7365_v56  ;;  %v7721_v47 = vor.u32 %v9869_v33, %v7718_v35  ;;  %v9645_v56 = vld [vmem:[#allocation11 + $0x9c] sm:$0xf]  ;;  %v7017_v19 = vor.u32 %v9693_v62, %v7014_v3  ;;  %v7952_v35 = vld [vmem:[#allocation14 + $0x188] sm:$0xf]  ;;  %v9969_v3 = vld [vmem:[#allocation14 + $0x2b8] sm:$0xf0] }
 0x1fd   :  { %v6825_v1 = vor.u32 %v9645_v56, %v6822_v57  ;;  %v9853_v4 = vld [vmem:[#allocation11 + $0x71c] sm:$0xf]  ;;  %v9927_v56 = vld [vmem:[#allocation14 + $0x168] sm:$0xf0]  ;;  %v1070_v57 = vperm.slane %v10761_v5, 2 }
 0x1fe   :  { %2752 = vmatpush.bf16.msrb.mxu3 %v7177_v55  ;;  %2730 = vmatpush.bf16.msrb.mxu1 %v7557_v7  ;;  %v7686_v55 = vld [vmem:[#allocation11 + $0x778] sm:$0xf0]  ;;  %v10781_v63 = vpop.f32.mrf.mxu2 }
 0x1ff   :  { %v7689_v0 = vor.u32 %v9861_v52, %v7686_v55  ;;  %v7654_v6 = vld [vmem:[#allocation11 + $0x738] sm:$0xf0]  ;;  %v7924_v55 = vld [vmem:[#allocation14 + $0x150] sm:$0xf] }
 0x200   :  { %2738 = vmatpush.bf16.msrb.mxu2 %v6953_v60  ;;  %2716 = vmatpush.bf16.msrb.mxu0 %v7333_v12  ;;  %v7049_v60 = vor.u32 %v9701_v50, %v7046_v51  ;;  %v2462_v7 = vpop.f32.mrf.mxu0  ;;  %v2501_v8 = vpop.f32.mrf.mxu3  ;;  %v8176_v12 = vld [vmem:[#allocation14 + $0x348] sm:$0xf]  ;;  %v9637_v14 = vld [vmem:[#allocation11 + $0x5c] sm:$0xf]  ;;  %v7657_v20 = vor.u32 %v9853_v4, %v7654_v6 }
 0x201   :  { %v6790_v16 = vld [vmem:[#allocation11 + $0x78] sm:$0xf0]  ;;  %v8177_v21 = vor.u32 %v9990_v13, %v8176_v12  ;;  %v7896_v7 = vld [vmem:[#allocation14 + $0x118] sm:$0xf] }
 0x202   :  { %2753 = vmatpush.bf16.msrb.mxu3 %v7145_v11  ;;  %2731 = vmatpush.bf16.msrb.mxu1 %v7525_v24  ;;  %v7465_v11 = vor.u32 %v9805_v58, %v7462_v59  ;;  %v7430_v17 = vld [vmem:[#allocation11 + $0x578] sm:$0xf0]  ;;  %v10784_v18 = vpop.f32.mrf.mxu1  ;;  %v6793_v25 = vor.u32 %v9637_v14, %v6790_v16 }
 0x203   :  { %v9845_v23 = vld [vmem:[#allocation11 + $0x6dc] sm:$0xf] }
 0x204   :  { %2739 = vmatpush.bf16.msrb.mxu2 %v6921_v10  ;;  %2717 = vmatpush.bf16.msrb.mxu0 %v7301_v31  ;;  %v9797_v10 = vld [vmem:[#allocation11 + $0x55c] sm:$0xf] }
 0x205   :  { %2732 = vmatmul.bf16.vlgmr.msrb.gmra.mxu1 %v10734_v61  ;;  %v7622_v24 = vld [vmem:[#allocation11 + $0x6f8] sm:$0xf0] }
 0x206   :  { %2754 = vmatpush.bf16.msrb.mxu3 %v7113_v26  ;;  %2776 = vmatpush.bf16.msra.mxu1 %v7753_v27  ;;  %v7433_v26 = vor.u32 %v9797_v10, %v7430_v17  ;;  %v8148_v27 = vld [vmem:[#allocation14 + $0x310] sm:$0xf]  ;;  %v9629_v29 = vld [vmem:[#allocation11 + $0x1c] sm:$0xf]  ;;  %v2488_v39 = vpop.f32.mrf.mxu2  ;;  %v7625_v40 = vor.u32 %v9845_v23, %v7622_v24  ;;  %v8064_v17 = vld [vmem:[#allocation14 + $0x268] sm:$0xf] }
 0x207   :  { %v6758_v31 = vld [vmem:[#allocation11 + $0x38] sm:$0xf0]  ;;  %v8149_v41 = vor.u32 %v9983_v28, %v8148_v27  ;;  %v8624_v23 = vld [vmem:[#allocation14 + $0x6c8] sm:$0xf]  ;;  %v10102_v24 = vld [vmem:[#allocation14 + $0x6e0] sm:$0xf0] }
 0x208   :  { %2740 = vmatpush.bf16.msrb.mxu2 %v6889_v32  ;;  %2718 = vmatpush.bf16.msrb.mxu0 %v7269_v48  ;;  %v9789_v32 = vld [vmem:[#allocation11 + $0x51c] sm:$0xf]  ;;  %v6761_v42 = vor.u32 %v9629_v29, %v6758_v31  ;;  %v10787_v48 = vpop.f32.mrf.mxu0  ;;  %v7868_v27 = vld [vmem:[#allocation14 + $0xe0] sm:$0xf]  ;;  %v9913_v28 = vld [vmem:[#allocation14 + $0xf8] sm:$0xf0] }
 0x209   :  { %v7398_v33 = vld [vmem:[#allocation11 + $0x538] sm:$0xf0] }
 0x20a   :  { %2755 = vmatpush.bf16.msrb.mxu3 %v7081_v45  ;;  %2777 = vmatpush.bf16.msra.mxu1 %v7721_v47  ;;  %v7401_v43 = vor.u32 %v9789_v32, %v7398_v33  ;;  %v9837_v44 = vld [vmem:[#allocation11 + $0x69c] sm:$0xf]  ;;  %v8120_v47 = vld [vmem:[#allocation14 + $0x2d8] sm:$0xf]  ;;  %v8625_v32 = vor.u32 %v10102_v24, %v8624_v23  ;;  %v8036_v33 = vld [vmem:[#allocation14 + $0x230] sm:$0xf] }
 0x20b   :  { %2719 = vmatmul.bf16.vlgmr.msrb.gmra.mxu0 %v10738_v22  ;;  %v7590_v45 = vld [vmem:[#allocation11 + $0x6b8] sm:$0xf0]  ;;  %v9072_v23 = vld [vmem:[#allocation14 + $0xa48] sm:$0xf]  ;;  %v10214_v24 = vld [vmem:[#allocation14 + $0xa60] sm:$0xf0] }
 0x20c   :  { %2741 = vmatpush.bf16.msrb.mxu2 %v6857_v49  ;;  %2763 = vmatpush.bf16.msra.mxu0 %v7497_v53  ;;  %v7953_v49 = vor.u32 %v9934_v36, %v7952_v35  ;;  %v9976_v50 = vld [vmem:[#allocation14 + $0x2f0] sm:$0xf0]  ;;  %v2527_v53 = vpop.f32.mrf.mxu1  ;;  %v7593_v58 = vor.u32 %v9837_v44, %v7590_v45  ;;  %v9955_v35 = vld [vmem:[#allocation14 + $0x248] sm:$0xf0]  ;;  %v7840_v45 = vld [vmem:[#allocation14 + $0xa8] sm:$0xf] }
 0x20d   :  { %v9781_v51 = vld [vmem:[#allocation11 + $0x4dc] sm:$0xf]  ;;  %v8121_v59 = vor.u32 %v9976_v50, %v8120_v47  ;;  %v9906_v47 = vld [vmem:[#allocation14 + $0xc0] sm:$0xf0] }
 0x20e   :  { %2756 = vmatpush.bf16.msrb.mxu3 %v7049_v60  ;;  %2778 = vmatpush.bf16.msra.mxu1 %v7689_v0  ;;  %v7366_v52 = vld [vmem:[#allocation11 + $0x4f8] sm:$0xf0]  ;;  %v8092_v0 = vld [vmem:[#allocation14 + $0x2a0] sm:$0xf]  ;;  %v10046_v50 = vld [vmem:[#allocation14 + $0x520] sm:$0xf0] }
 0x20f   :  { %v7369_v60 = vor.u32 %v9781_v51, %v7366_v52  ;;  %v9829_v62 = vld [vmem:[#allocation11 + $0x65c] sm:$0xf]  ;;  %v8093_v14 = vor.u32 %v9969_v3, %v8092_v0  ;;  %v8037_v51 = vor.u32 %v9955_v35, %v8036_v33  ;;  %v10039_v3 = vld [vmem:[#allocation14 + $0x4e8] sm:$0xf0]  ;;  %v7756_v33 = vld [vmem:[#allocation14] sm:$0xf] }
 0x210   :  { %2742 = vmatpush.bf16.msrb.mxu2 %v6825_v1  ;;  %2764 = vmatpush.bf16.msra.mxu0 %v7465_v11  ;;  %v7925_v1 = vor.u32 %v9927_v56, %v7924_v55  ;;  %v9773_v4 = vld [vmem:[#allocation11 + $0x49c] sm:$0xf]  ;;  %v1086_v11 = vperm.slane %v1070_v57, 0  ;;  %v7841_v56 = vor.u32 %v9906_v47, %v7840_v45  ;;  %v8008_v57 = vld [vmem:[#allocation14 + $0x1f8] sm:$0xf] }
 0x211   :  { %v7334_v6 = vld [vmem:[#allocation11 + $0x4b8] sm:$0xf0]  ;;  %v9885_v35 = vld [vmem:[#allocation14 + $0x18] sm:$0xf0]  ;;  %v9044_v45 = vld [vmem:[#allocation14 + $0xa10] sm:$0xf] }
 0x212   :  { %2757 = vmatpush.bf16.msrb.mxu3 %v7017_v19  ;;  %2779 = vmatpush.bf16.msra.mxu1 %v7657_v20  ;;  %v9920_v8 = vld [vmem:[#allocation14 + $0x130] sm:$0xf0]  ;;  %v7337_v16 = vor.u32 %v9773_v4, %v7334_v6  ;;  %v9962_v19 = vld [vmem:[#allocation14 + $0x280] sm:$0xf0]  ;;  %v2514_v20 = vpop.f32.mrf.mxu0  ;;  %v1071_v4 = vperm.slane %v10761_v5, 4 }
 0x213   :  { %v9821_v13 = vld [vmem:[#allocation11 + $0x61c] sm:$0xf]  ;;  %v8065_v31 = vor.u32 %v9962_v19, %v8064_v17  ;;  %v7784_v17 = vld [vmem:[#allocation14 + $0x38] sm:$0xf]  ;;  %v10207_v47 = vld [vmem:[#allocation14 + $0xa28] sm:$0xf0] }
 0x214   :  { %2743 = vmatpush.bf16.msrb.mxu2 %v6793_v25  ;;  %2765 = vmatpush.bf16.msra.mxu0 %v7433_v26  ;;  %v7526_v10 = vld [vmem:[#allocation11 + $0x638] sm:$0xf0]  ;;  %v8344_v20 = vld [vmem:[#allocation14 + $0x498] sm:$0xf] }
 0x215   :  { %2758 = vmatmul.bf16.vlgmr.msrb.gmra.mxu3 %v10726_v15  ;;  %v7558_v15 = vld [vmem:[#allocation11 + $0x678] sm:$0xf0]  ;;  %v7529_v29 = vor.u32 %v9821_v13, %v7526_v10  ;;  %v9941_v13 = vld [vmem:[#allocation14 + $0x1d8] sm:$0xf0] }
 0x216   :  { %5660 = vmatpush.bf16.msra.mxu3 %v8177_v21  ;;  %2780 = vmatpush.bf16.msra.mxu1 %v7625_v40  ;;  %v7561_v12 = vor.u32 %v9829_v62, %v7558_v15  ;;  %v7897_v21 = vor.u32 %v9920_v8, %v7896_v7  ;;  %v9765_v25 = vld [vmem:[#allocation11 + $0x45c] sm:$0xf]  ;;  %v7869_v40 = vor.u32 %v9913_v28, %v7868_v27  ;;  %v7812_v62 = vld [vmem:[#allocation14 + $0x70] sm:$0xf]  ;;  %v9899_v15 = vld [vmem:[#allocation14 + $0x88] sm:$0xf0] }
 0x217   :  { %v7302_v26 = vld [vmem:[#allocation11 + $0x478] sm:$0xf0]  ;;  %v7980_v7 = vld [vmem:[#allocation14 + $0x1c0] sm:$0xf]  ;;  %v1087_v27 = vperm.slane %v1071_v4, 0 }
 0x218   :  { %2744 = vmatpush.bf16.msrb.mxu2 %v6761_v42  ;;  %2766 = vmatpush.bf16.msra.mxu0 %v7401_v43  ;;  %v10792_v36 = vpop.f32.mrf.mxu3  ;;  %v7305_v39 = vor.u32 %v9765_v25, %v7302_v26  ;;  %v10095_v42 = vld [vmem:[#allocation14 + $0x6a8] sm:$0xf0]  ;;  %v9757_v43 = vld [vmem:[#allocation11 + $0x41c] sm:$0xf] }
 0x219   :  { %v7270_v44 = vld [vmem:[#allocation11 + $0x438] sm:$0xf0] }
 0x21a   :  { %5661 = vmatpush.bf16.msra.mxu3 %v8149_v41  ;;  %2781 = vmatpush.bf16.msra.mxu1 %v7593_v58  ;;  %v8596_v41 = vld [vmem:[#allocation14 + $0x690] sm:$0xf]  ;;  %v7273_v55 = vor.u32 %v9757_v43, %v7270_v44  ;;  %v9948_v58 = vld [vmem:[#allocation14 + $0x210] sm:$0xf0]  ;;  %v8848_v43 = vld [vmem:[#allocation14 + $0x888] sm:$0xf] }
 0x21b   :  { %2745 = vmatmul.bf16.vlgmr.msrb.gmra.mxu2 %v10730_v30  ;;  %v2435_v30 = vadd.f32 %v10771_v54, %v1086_v11  ;;  %v8597_v52 = vor.u32 %v10095_v42, %v8596_v41  ;;  %v8009_v6 = vor.u32 %v9948_v58, %v8008_v57  ;;  %v9892_v19 = vld [vmem:[#allocation14 + $0x50] sm:$0xf0]  ;;  %v10025_v42 = vld [vmem:[#allocation14 + $0x478] sm:$0xf0]  ;;  %v10067_v57 = vld [vmem:[#allocation14 + $0x5c8] sm:$0xf0] }
 0x21c   :  { %5647 = vmatpush.bf16.msra.mxu2 %v7953_v49  ;;  %2767 = vmatpush.bf16.msra.mxu0 %v7369_v60  ;;  %v8400_v49 = vld [vmem:[#allocation14 + $0x508] sm:$0xf] }
 0x21d   :  { %v2448_v54 = vadd.f32 %v10766_v34, %v2435_v30  ;;  %v8401_v60 = vor.u32 %v10046_v50, %v8400_v49  ;;  %v10088_v34 = vld [vmem:[#allocation14 + $0x670] sm:$0xf0]  ;;  %v7785_v30 = vor.u32 %v9892_v19, %v7784_v17  ;;  %v8288_v58 = vld [vmem:[#allocation14 + $0x428] sm:$0xf]  ;;  %v10193_v17 = vld [vmem:[#allocation14 + $0x9b8] sm:$0xf0] }
 0x21e   :  { %5662 = vmatpush.bf16.msra.mxu3 %v8121_v59  ;;  %2782 = vmatpush.bf16.msra.mxu1 %v7561_v12  ;;  %v8568_v59 = vld [vmem:[#allocation14 + $0x658] sm:$0xf]  ;;  %v2538_v0 = vpop.f32.mrf.mxu2  ;;  %v7813_v12 = vor.u32 %v9899_v15, %v7812_v62  ;;  %v10151_v62 = vld [vmem:[#allocation14 + $0x868] sm:$0xf0]  ;;  %v9045_v15 = vor.u32 %v10207_v47, %v9044_v45  ;;  %v8932_v47 = vld [vmem:[#allocation14 + $0x930] sm:$0xf] }
 0x21f   :  { %v2461_v53 = vadd.f32 %v10776_v37, %v2448_v54  ;;  %v1072_v37 = vperm.slane %v10761_v5, 6  ;;  %v10032_v5 = vld [vmem:[#allocation14 + $0x4b0] sm:$0xf0]  ;;  %v2789_v54 = vmax.f32 %v10768_v46, 0.0  ;;  %v10018_v46 = vld [vmem:[#allocation14 + $0x440] sm:$0xf0] }
 0x220   :  { %5648 = vmatpush.bf16.msra.mxu2 %v7925_v1  ;;  %2768 = vmatpush.bf16.msra.mxu0 %v7337_v16  ;;  %v8372_v1 = vld [vmem:[#allocation14 + $0x4d0] sm:$0xf]  ;;  %v2553_v11 = vpop.f32.mrf.mxu3  ;;  %v10081_v16 = vld [vmem:[#allocation14 + $0x638] sm:$0xf0] }
 0x221   :  { %v2474_v8 = vadd.f32 %v10774_v9, %v2461_v53  ;;  %v8373_v10 = vor.u32 %v10039_v3, %v8372_v1  ;;  %v1088_v25 = vperm.slane %v1072_v37, 0  ;;  %v7981_v9 = vor.u32 %v9941_v13, %v7980_v7  ;;  %v9016_v1 = vld [vmem:[#allocation14 + $0x9d8] sm:$0xf]  ;;  %v10200_v3 = vld [vmem:[#allocation14 + $0x9f0] sm:$0xf0] }
 0x222   :  { %5663 = vmatpush.bf16.msra.mxu3 %v8093_v14  ;;  %2783 = vmatpush.bf16.msra.mxu1 %v7529_v29  ;;  %v8540_v14 = vld [vmem:[#allocation14 + $0x620] sm:$0xf]  ;;  %v8512_v29 = vld [vmem:[#allocation14 + $0x5e8] sm:$0xf]  ;;  %v10809_v4 = vpack.c.bf16 %v2789_v54, %v2789_v54  ;;  %v8260_v11 = vld [vmem:[#allocation14 + $0x3f0] sm:$0xf] }
 0x223   :  { %v2790_v26 = vmax.f32 %v2474_v8, 0.0  ;;  %v8541_v28 = vor.u32 %v10081_v16, %v8540_v14  ;;  %v2539_v44 = vadd.f32 %v2538_v0, %v1088_v25  ;;  %v8456_v8 = vld [vmem:[#allocation14 + $0x578] sm:$0xf]  ;;  %v10011_v13 = vld [vmem:[#allocation14 + $0x408] sm:$0xf0]  ;;  %v9017_v16 = vor.u32 %v10200_v3, %v9016_v1 }
 0x224   :  { %5649 = vmatpush.bf16.msra.mxu2 %v7897_v21  ;;  %2769 = vmatpush.bf16.msra.mxu0 %v7305_v39  ;;  %v10800_v21 = vpop.f32.mrf.mxu1  ;;  %v8316_v39 = vld [vmem:[#allocation14 + $0x460] sm:$0xf]  ;;  %v8792_v14 = vld [vmem:[#allocation14 + $0x818] sm:$0xf]  ;;  %v9296_v54 = vld [vmem:[#allocation14 + $0xc08] sm:$0xf] }
 0x225   :  { %2784 = vmatmul.bf16.vlgmr.msra.gmra.mxu1 %v10734_v61  ;;  %v8569_v61 = vor.u32 %v10088_v34, %v8568_v59  ;;  %v10804_v49 = vpack.c.bf16 %v2790_v26, %v2790_v26  ;;  %v8317_v53 = vor.u32 %v10025_v42, %v8316_v39  ;;  %v2487_v59 = vadd.f32 %v10781_v63, %v1087_v27  ;;  %v8820_v34 = vld [vmem:[#allocation14 + $0x850] sm:$0xf]  ;;  %v8428_v25 = vld [vmem:[#allocation14 + $0x540] sm:$0xf]  ;;  %v8232_v26 = vld [vmem:[#allocation14 + $0x3b8] sm:$0xf] }
 0x226   :  { %5664 = vmatpush.bf16.msra.mxu3 %v8065_v31  ;;  %5686 = vmatpush.bf16.msrb.mxu1 %v8625_v32  ;;  %v10074_v31 = vld [vmem:[#allocation14 + $0x600] sm:$0xf0]  ;;  %v8345_v32 = vor.u32 %v10032_v5, %v8344_v20  ;;  %v2540_v41 = vpop.f32.mrf.mxu2  ;;  %v2552_v0 = vadd.f32 %v10792_v36, %v2539_v44  ;;  %v8289_v63 = vor.u32 %v10018_v46, %v8288_v58  ;;  %v10144_v36 = vld [vmem:[#allocation14 + $0x830] sm:$0xf0]  ;;  %v9997_v42 = vld [vmem:[#allocation14 + $0x398] sm:$0xf0] }
 0x227   :  { %v8513_v50 = vor.u32 %v10074_v31, %v8512_v29  ;;  %v8821_v7 = vor.u32 %v10151_v62, %v8820_v34  ;;  %v10004_v27 = vld [vmem:[#allocation14 + $0x3d0] sm:$0xf0]  ;;  %v8960_v31 = vld [vmem:[#allocation14 + $0x968] sm:$0xf]  ;;  %v8204_v41 = vld [vmem:[#allocation14 + $0x380] sm:$0xf] }
 0x228   :  { %5650 = vmatpush.bf16.msra.mxu2 %v7869_v40  ;;  %2770 = vmatpush.bf16.msra.mxu0 %v7273_v55  ;;  %v9073_v40 = vor.u32 %v10214_v24, %v9072_v23  ;;  %v8261_v24 = vor.u32 %v10011_v13, %v8260_v11  ;;  %v8233_v39 = vor.u32 %v10004_v27, %v8232_v26  ;;  %v10130_v44 = vld [vmem:[#allocation14 + $0x7c0] sm:$0xf0]  ;;  %v10172_v34 = vld [vmem:[#allocation14 + $0x910] sm:$0xf0]  ;;  %v9268_v62 = vld [vmem:[#allocation14 + $0xbd0] sm:$0xf] }
 0x229   :  { %v10165_v11 = vld [vmem:[#allocation14 + $0x8d8] sm:$0xf0]  ;;  %v10256_v13 = vld [vmem:[#allocation14 + $0xbb0] sm:$0xf0]  ;;  %v9212_v26 = vld [vmem:[#allocation14 + $0xb60] sm:$0xf] }
 0x22a   :  { %5665 = vmatpush.bf16.msra.mxu3 %v8037_v51  ;;  %5687 = vmatpush.bf16.msrb.mxu1 %v8597_v52  ;;  %v2564_v51 = vpop.f32.mrf.mxu0  ;;  %v7757_v52 = vor.u32 %v9885_v35, %v7756_v33  ;;  %v10249_v27 = vld [vmem:[#allocation14 + $0xb78] sm:$0xf0] }
 0x22b   :  { %2771 = vmatmul.bf16.vlgmr.msra.gmra.mxu0 %v10738_v22  ;;  %v10158_v22 = vld [vmem:[#allocation14 + $0x8a0] sm:$0xf0] }
 0x22c   :  { %5651 = vmatpush.bf16.msra.mxu2 %v7841_v56  ;;  %5673 = vmatpush.bf16.msrb.mxu0 %v8401_v60  ;;  %v8849_v55 = vor.u32 %v10158_v22, %v8848_v43  ;;  %v8484_v56 = vld [vmem:[#allocation14 + $0x5b0] sm:$0xf]  ;;  %v2579_v60 = vpop.f32.mrf.mxu1  ;;  %v10819_v43 = vunpack.c.h.bf16 %v10757_v2  ;;  %v8736_v22 = vld [vmem:[#allocation14 + $0x7a8] sm:$0xf] }
 0x22d   :  { %v8485_v37 = vor.u32 %v10067_v57, %v8484_v56  ;;  %v8708_v2 = vld [vmem:[#allocation14 + $0x770] sm:$0xf]  ;;  %v10123_v57 = vld [vmem:[#allocation14 + $0x788] sm:$0xf0] }
 0x22e   :  { %5666 = vmatpush.bf16.msra.mxu3 %v8009_v6  ;;  %5688 = vmatpush.bf16.msrb.mxu1 %v8569_v61  ;;  %v2565_v6 = vadd.f32 %v2564_v51, %v2552_v0  ;;  %v10060_v61 = vld [vmem:[#allocation14 + $0x590] sm:$0xf0]  ;;  %v1073_v56 = vperm.slane %v10819_v43, 0  ;;  %v8709_v3 = vor.u32 %v10123_v57, %v8708_v2  ;;  %v10235_v2 = vld [vmem:[#allocation14 + $0xb08] sm:$0xf0] }
 0x22f   :  { %v8457_v20 = vor.u32 %v10060_v61, %v8456_v8  ;;  %v8876_v8 = vld [vmem:[#allocation14 + $0x8c0] sm:$0xf]  ;;  %v9966_v57 = vld [vmem:[#allocation14 + $0x2a4] sm:$0xf] }
 0x230   :  { %5652 = vmatpush.bf16.msra.mxu2 %v7813_v12  ;;  %5674 = vmatpush.bf16.msrb.mxu0 %v8373_v10  ;;  %v2500_v12 = vadd.f32 %v10778_v38, %v2487_v59  ;;  %v8988_v10 = vld [vmem:[#allocation14 + $0x9a0] sm:$0xf]  ;;  %v2578_v23 = vadd.f32 %v10800_v21, %v2565_v6  ;;  %v8793_v38 = vor.u32 %v10144_v36, %v8792_v14  ;;  %v8904_v59 = vld [vmem:[#allocation14 + $0x8f8] sm:$0xf]  ;;  %v1089_v0 = vperm.slane %v1073_v56, 0 }
 0x231   :  { %v8989_v29 = vor.u32 %v10193_v17, %v8988_v10  ;;  %v8680_v6 = vld [vmem:[#allocation14 + $0x738] sm:$0xf]  ;;  %v9987_v36 = vld [vmem:[#allocation14 + $0x34c] sm:$0xf]  ;;  %v9156_v56 = vld [vmem:[#allocation14 + $0xaf0] sm:$0xf] }
 0x232   :  { %5667 = vmatpush.bf16.msra.mxu3 %v7981_v9  ;;  %5689 = vmatpush.bf16.msrb.mxu1 %v8541_v28  ;;  %v2513_v19 = vadd.f32 %v10787_v48, %v2500_v12  ;;  %v2566_v5 = vpop.f32.mrf.mxu0  ;;  %v10053_v9 = vld [vmem:[#allocation14 + $0x558] sm:$0xf0]  ;;  %v8764_v28 = vld [vmem:[#allocation14 + $0x7e0] sm:$0xf]  ;;  %v2792_v35 = vmax.f32 %v2578_v23, 0.0  ;;  %v8877_v23 = vor.u32 %v10165_v11, %v8876_v8 }
 0x233   :  { %v8429_v33 = vor.u32 %v10053_v9, %v8428_v25  ;;  %v9240_v12 = vld [vmem:[#allocation14 + $0xb98] sm:$0xf]  ;;  %v9931_v5 = vld [vmem:[#allocation14 + $0x18c] sm:$0xf]  ;;  %v7954_v25 = vld [vmem:[#allocation14 + $0x1a4] sm:$0xf0] }
 0x234   :  { %5653 = vmatpush.bf16.msra.mxu2 %v7785_v30  ;;  %5675 = vmatpush.bf16.msrb.mxu0 %v8345_v32  ;;  %v10137_v30 = vld [vmem:[#allocation14 + $0x7f8] sm:$0xf0]  ;;  %v10186_v32 = vld [vmem:[#allocation14 + $0x980] sm:$0xf0]  ;;  %v2526_v48 = vadd.f32 %v10784_v18, %v2513_v19  ;;  %v10179_v18 = vld [vmem:[#allocation14 + $0x948] sm:$0xf0] }
 0x235   :  { %5668 = vmatmul.bf16.vlgmr.msra.gmra.mxu3 %v10804_v49  ;;  %v8961_v45 = vor.u32 %v10186_v32, %v8960_v31  ;;  %v8933_v58 = vor.u32 %v10179_v18, %v8932_v47  ;;  %v8652_v19 = vld [vmem:[#allocation14 + $0x700] sm:$0xf]  ;;  %v8122_v47 = vld [vmem:[#allocation14 + $0x2f4] sm:$0xf0]  ;;  %v9959_v8 = vld [vmem:[#allocation14 + $0x26c] sm:$0xf] }
 0x236   :  { %5712 = vmatpush.bf16.msrb.mxu3 %v9073_v40  ;;  %5690 = vmatpush.bf16.msrb.mxu1 %v8513_v50  ;;  %v8765_v40 = vor.u32 %v10137_v30, %v8764_v28  ;;  %v10270_v50 = vld [vmem:[#allocation14 + $0xc20] sm:$0xf0]  ;;  %v2791_v51 = vmax.f32 %v2526_v48, 0.0  ;;  %v9980_v28 = vld [vmem:[#allocation14 + $0x314] sm:$0xf]  ;;  %v7957_v48 = vor.u32 %v9931_v5, %v7954_v25 }
 0x237   :  { %v9297_v60 = vor.u32 %v10270_v50, %v9296_v54  ;;  %v8150_v30 = vld [vmem:[#allocation14 + $0x32c] sm:$0xf0]  ;;  %v9917_v54 = vld [vmem:[#allocation14 + $0x11c] sm:$0xf]  ;;  %v7898_v50 = vld [vmem:[#allocation14 + $0x134] sm:$0xf0] }
 0x238   :  { %5654 = vmatpush.bf16.msra.mxu2 %v7757_v52  ;;  %5676 = vmatpush.bf16.msrb.mxu0 %v8317_v53  ;;  %v10816_v21 = vpop.f32.mrf.mxu3  ;;  %v10821_v52 = vpack.c.bf16 %v2792_v35, %v2792_v35  ;;  %v8205_v53 = vor.u32 %v9997_v42, %v8204_v41  ;;  %v9213_v35 = vor.u32 %v10249_v27, %v9212_v26  ;;  %v9184_v42 = vld [vmem:[#allocation14 + $0xb28] sm:$0xf]  ;;  %v9903_v11 = vld [vmem:[#allocation14 + $0xac] sm:$0xf]  ;;  %v10312_v26 = vld [vmem:[#allocation14 + $0xd70] sm:$0xf0] }
 0x239   :  { %v8153_v41 = vor.u32 %v9980_v28, %v8150_v30  ;;  %v10043_v25 = vld [vmem:[#allocation14 + $0x50c] sm:$0xf]  ;;  %v1074_v30 = vperm.slane %v10819_v43, 2 }
 0x23a   :  { %5713 = vmatpush.bf16.msrb.mxu3 %v9045_v15  ;;  %5691 = vmatpush.bf16.msrb.mxu1 %v8485_v37  ;;  %v10263_v15 = vld [vmem:[#allocation14 + $0xbe8] sm:$0xf0]  ;;  %v10825_v37 = vpack.c.bf16 %v2791_v51, %v2791_v51 }
 0x23b   :  { %5655 = vmatmul.bf16.vlgmr.msra.gmra.mxu2 %v10809_v4  ;;  %v9269_v61 = vor.u32 %v10263_v15, %v9268_v62  ;;  %v7901_v62 = vor.u32 %v9917_v54, %v7898_v50  ;;  %v9910_v15 = vld [vmem:[#allocation14 + $0xe4] sm:$0xf] }
 0x23c   :  { %5699 = vmatpush.bf16.msrb.mxu2 %v8849_v55  ;;  %5677 = vmatpush.bf16.msrb.mxu0 %v8289_v63  ;;  %v8737_v55 = vor.u32 %v10130_v44, %v8736_v22  ;;  %v10116_v63 = vld [vmem:[#allocation14 + $0x750] sm:$0xf0]  ;;  %v10242_v22 = vld [vmem:[#allocation14 + $0xb40] sm:$0xf0] }
 0x23d   :  { %v8681_v17 = vor.u32 %v10116_v63, %v8680_v6  ;;  %v9185_v51 = vor.u32 %v10242_v22, %v9184_v42  ;;  %v9128_v63 = vld [vmem:[#allocation14 + $0xab8] sm:$0xf]  ;;  %v9436_v22 = vld [vmem:[#allocation14 + $0xd20] sm:$0xf] }
 0x23e   :  { %5714 = vmatpush.bf16.msrb.mxu3 %v9017_v16  ;;  %5692 = vmatpush.bf16.msrb.mxu1 %v8457_v20  ;;  %v2590_v46 = vpop.f32.mrf.mxu2  ;;  %v8178_v16 = vld [vmem:[#allocation14 + $0x364] sm:$0xf0]  ;;  %v10109_v20 = vld [vmem:[#allocation14 + $0x718] sm:$0xf0] }
 0x23f   :  { %v2591_v10 = vadd.f32 %v2590_v46, %v1089_v0  ;;  %v8181_v9 = vor.u32 %v9987_v36, %v8178_v16  ;;  %v8653_v31 = vor.u32 %v10109_v20, %v8652_v19  ;;  %v10326_v46 = vld [vmem:[#allocation14 + $0xde0] sm:$0xf0]  ;;  %v9157_v0 = vor.u32 %v10235_v2, %v9156_v56  ;;  %v7842_v36 = vld [vmem:[#allocation14 + $0xc4] sm:$0xf0]  ;;  %v9952_v16 = vld [vmem:[#allocation14 + $0x234] sm:$0xf] }
 0x240   :  { %5700 = vmatpush.bf16.msrb.mxu2 %v8821_v7  ;;  %5678 = vmatpush.bf16.msrb.mxu0 %v8261_v24  ;;  %v2605_v1 = vpop.f32.mrf.mxu3  ;;  %v8905_v7 = vor.u32 %v10172_v34, %v8904_v59  ;;  %v9241_v24 = vor.u32 %v10256_v13, %v9240_v12  ;;  %v9492_v12 = vld [vmem:[#allocation14 + $0xd90] sm:$0xf]  ;;  %v10319_v13 = vld [vmem:[#allocation14 + $0xda8] sm:$0xf0]  ;;  %v7845_v28 = vor.u32 %v9903_v11, %v7842_v36  ;;  %v10029_v2 = vld [vmem:[#allocation14 + $0x49c] sm:$0xf] }
 0x241   :  { %v9493_v19 = vor.u32 %v10319_v13, %v9492_v12  ;;  %v9380_v12 = vld [vmem:[#allocation14 + $0xcb0] sm:$0xf]  ;;  %v10291_v13 = vld [vmem:[#allocation14 + $0xcc8] sm:$0xf0] }
 0x242   :  { %5715 = vmatpush.bf16.msrb.mxu3 %v8989_v29  ;;  %5693 = vmatpush.bf16.msrb.mxu1 %v8429_v33  ;;  %v2629_v14 = vpop.f32.mrf.mxu1  ;;  %v2604_v29 = vadd.f32 %v10816_v21, %v2591_v10  ;;  %v9924_v33 = vld [vmem:[#allocation14 + $0x154] sm:$0xf]  ;;  %v8038_v10 = vld [vmem:[#allocation14 + $0x24c] sm:$0xf0]  ;;  %v9381_v36 = vor.u32 %v10291_v13, %v9380_v12  ;;  %v8570_v12 = vld [vmem:[#allocation14 + $0x674] sm:$0xf0] }
 0x244   :  { %5701 = vmatpush.bf16.msrb.mxu2 %v8793_v38  ;;  %5679 = vmatpush.bf16.msrb.mxu0 %v8233_v39 }
 0x245   :  { %5694 = vmatmul.bf16.vlgmr.msrb.gmra.mxu1 %v10821_v52 }
 0x246   :  { %5716 = vmatpush.bf16.msrb.mxu3 %v8961_v45  ;;  %v2592_v38 = vpop.f32.mrf.mxu2  ;;  %v9973_v45 = vld [vmem:[#allocation14 + $0x2dc] sm:$0xf] }
 0x247   :  { %v9464_v38 = vld [vmem:[#allocation14 + $0xd58] sm:$0xf] }
 0x248   :  { %5702 = vmatpush.bf16.msrb.mxu2 %v8765_v40  ;;  %5680 = vmatpush.bf16.msrb.mxu0 %v8205_v53  ;;  %v2616_v32 = vpop.f32.mrf.mxu0  ;;  %v7926_v40 = vld [vmem:[#allocation14 + $0x16c] sm:$0xf0]  ;;  %v9465_v27 = vor.u32 %v10312_v26, %v9464_v38  ;;  %v8290_v38 = vld [vmem:[#allocation14 + $0x444] sm:$0xf0]  ;;  %v10284_v26 = vld [vmem:[#allocation14 + $0xc90] sm:$0xf0] }
 0x249   :  { %v2617_v39 = vadd.f32 %v2616_v32, %v2604_v29  ;;  %v7929_v21 = vor.u32 %v9924_v33, %v7926_v40  ;;  %v7814_v32 = vld [vmem:[#allocation14 + $0x8c] sm:$0xf0]  ;;  %v9945_v33 = vld [vmem:[#allocation14 + $0x1fc] sm:$0xf]  ;;  %v10036_v40 = vld [vmem:[#allocation14 + $0x4d4] sm:$0xf] }
 0x24a   :  { %5717 = vmatpush.bf16.msrb.mxu3 %v8933_v58  ;;  %v2631_v44 = vpop.f32.mrf.mxu1  ;;  %v8094_v58 = vld [vmem:[#allocation14 + $0x2bc] sm:$0xf0] }
 0x24b   :  { %5681 = vmatmul.bf16.vlgmr.msrb.gmra.mxu0 %v10825_v37  ;;  %v2630_v18 = vadd.f32 %v2629_v14, %v2617_v39  ;;  %v8097_v6 = vor.u32 %v9966_v57, %v8094_v58  ;;  %v8010_v39 = vld [vmem:[#allocation14 + $0x214] sm:$0xf0]  ;;  %v10305_v44 = vld [vmem:[#allocation14 + $0xd38] sm:$0xf0]  ;;  %v9408_v58 = vld [vmem:[#allocation14 + $0xce8] sm:$0xf] }
 0x24c   :  { %5703 = vmatpush.bf16.msrb.mxu2 %v8737_v55  ;;  %5725 = vmatpush.bf16.msra.mxu0 %v9297_v60  ;;  %v8125_v55 = vor.u32 %v9973_v45, %v8122_v47  ;;  %v9520_v60 = vld [vmem:[#allocation14 + $0xdc8] sm:$0xf]  ;;  %v1090_v45 = vperm.slane %v1074_v30, 0  ;;  %v9437_v54 = vor.u32 %v10305_v44, %v9436_v22  ;;  %v8346_v57 = vld [vmem:[#allocation14 + $0x4b4] sm:$0xf0] }
 0x24d   :  { %v2793_v53 = vmax.f32 %v2630_v18, 0.0  ;;  %v9521_v1 = vor.u32 %v10326_v46, %v9520_v60  ;;  %v9889_v18 = vld [vmem:[#allocation14 + $0x3c] sm:$0xf]  ;;  %v10298_v60 = vld [vmem:[#allocation14 + $0xd00] sm:$0xf0] }
 0x24e   :  { %5718 = vmatpush.bf16.msrb.mxu3 %v8905_v7  ;;  %v10228_v7 = vld [vmem:[#allocation14 + $0xad0] sm:$0xf0]  ;;  %v9409_v46 = vor.u32 %v10298_v60, %v9408_v58 }
 0x24f   :  { %v10829_v59 = vpack.c.bf16 %v2793_v53, %v2793_v53  ;;  %5738 = vmatpush.bf16.msra.mxu1 %v9521_v1  ;;  %v9938_v53 = vld [vmem:[#allocation14 + $0x1c4] sm:$0xf]  ;;  %v7758_v1 = vld [vmem:[#allocation14 + $0x1c] sm:$0xf0]  ;;  %v10204_v44 = vld [vmem:[#allocation14 + $0xa14] sm:$0xf] }
 0x250   :  { %5704 = vmatpush.bf16.msrb.mxu2 %v8709_v3  ;;  %5726 = vmatpush.bf16.msra.mxu0 %v9269_v61  ;;  %v2618_v34 = vpop.f32.mrf.mxu0  ;;  %v7870_v3 = vld [vmem:[#allocation14 + $0xfc] sm:$0xf0]  ;;  %v8066_v61 = vld [vmem:[#allocation14 + $0x284] sm:$0xf0] }
 0x251   :  { %v7873_v14 = vor.u32 %v9910_v15, %v7870_v3  ;;  %v8069_v5 = vor.u32 %v9959_v8, %v8066_v61  ;;  %v10155_v3 = vld [vmem:[#allocation14 + $0x88c] sm:$0xf]  ;;  %v10022_v8 = vld [vmem:[#allocation14 + $0x464] sm:$0xf]  ;;  %v8318_v61 = vld [vmem:[#allocation14 + $0x47c] sm:$0xf0] }
 0x252   :  { %5719 = vmatpush.bf16.msrb.mxu3 %v8877_v23  ;;  %v9100_v23 = vld [vmem:[#allocation14 + $0xa80] sm:$0xf] }
 0x253   :  { %5739 = vmatpush.bf16.msra.mxu1 %v9493_v19  ;;  %v8321_v19 = vor.u32 %v10022_v8, %v8318_v61  ;;  %v8206_v8 = vld [vmem:[#allocation14 + $0x39c] sm:$0xf0]  ;;  %v10085_v61 = vld [vmem:[#allocation14 + $0x65c] sm:$0xf] }
 0x254   :  { %5705 = vmatpush.bf16.msrb.mxu2 %v8681_v17  ;;  %5727 = vmatpush.bf16.msra.mxu0 %v9241_v24  ;;  %v9129_v17 = vor.u32 %v10228_v7, %v9128_v63  ;;  %v10221_v24 = vld [vmem:[#allocation14 + $0xa98] sm:$0xf0]  ;;  %v8349_v63 = vor.u32 %v10029_v2, %v8346_v57  ;;  %v8850_v7 = vld [vmem:[#allocation14 + $0x8a4] sm:$0xf0]  ;;  %v8234_v57 = vld [vmem:[#allocation14 + $0x3d4] sm:$0xf0] }
 0x255   :  { %v9101_v29 = vor.u32 %v10221_v24, %v9100_v23  ;;  %v8822_v23 = vld [vmem:[#allocation14 + $0x86c] sm:$0xf0]  ;;  %v10015_v24 = vld [vmem:[#allocation14 + $0x42c] sm:$0xf]  ;;  %v10001_v2 = vld [vmem:[#allocation14 + $0x3bc] sm:$0xf] }
 0x256   :  { %5764 = vmatpush.bf16.msra.mxu3 %v8181_v9  ;;  %v8402_v9 = vld [vmem:[#allocation14 + $0x524] sm:$0xf0] }
 0x257   :  { %5740 = vmatpush.bf16.msra.mxu1 %v9465_v27 }
 0x258   :  { %5706 = vmatpush.bf16.msrb.mxu2 %v8653_v31  ;;  %5728 = vmatpush.bf16.msra.mxu0 %v9213_v35  ;;  %v10832_v20 = vpop.f32.mrf.mxu3  ;;  %v9896_v31 = vld [vmem:[#allocation14 + $0x74] sm:$0xf]  ;;  %v8405_v35 = vor.u32 %v10043_v25, %v8402_v9  ;;  %v9352_v9 = vld [vmem:[#allocation14 + $0xc78] sm:$0xf] }
 0x259   :  { %v7817_v47 = vor.u32 %v9896_v31, %v7814_v32  ;;  %v9074_v31 = vld [vmem:[#allocation14 + $0xa64] sm:$0xf0]  ;;  %v10141_v32 = vld [vmem:[#allocation14 + $0x81c] sm:$0xf] }
 0x25a   :  { %5765 = vmatpush.bf16.msra.mxu3 %v8153_v41  ;;  %v8374_v41 = vld [vmem:[#allocation14 + $0x4ec] sm:$0xf0] }
 0x25b   :  { %5707 = vmatmul.bf16.vlgmr.msrb.gmra.mxu2 %v10829_v59  ;;  %v8377_v56 = vor.u32 %v10036_v40, %v8374_v41  ;;  %5741 = vmatpush.bf16.msra.mxu1 %v9437_v54  ;;  %v9324_v41 = vld [vmem:[#allocation14 + $0xc40] sm:$0xf]  ;;  %v10134_v54 = vld [vmem:[#allocation14 + $0x7e4] sm:$0xf] }
 0x25c   :  { %5751 = vmatpush.bf16.msra.mxu2 %v7957_v48  ;;  %5729 = vmatpush.bf16.msra.mxu0 %v9185_v51  ;;  %v8041_v48 = vor.u32 %v9952_v16, %v8038_v10  ;;  %v8013_v51 = vor.u32 %v9945_v33, %v8010_v39  ;;  %v8853_v10 = vor.u32 %v10155_v3, %v8850_v7  ;;  %v8794_v33 = vld [vmem:[#allocation14 + $0x834] sm:$0xf0]  ;;  %v8262_v39 = vld [vmem:[#allocation14 + $0x40c] sm:$0xf0]  ;;  %v8738_v3 = vld [vmem:[#allocation14 + $0x7c4] sm:$0xf0] }
 0x25d   :  { %v9994_v7 = vld [vmem:[#allocation14 + $0x384] sm:$0xf] }
 0x25e   :  { %5766 = vmatpush.bf16.msra.mxu3 %v8125_v55  ;;  %v2642_v42 = vpop.f32.mrf.mxu2  ;;  %v7982_v55 = vld [vmem:[#allocation14 + $0x1dc] sm:$0xf0] }
 0x25f   :  { %v2643_v15 = vadd.f32 %v2642_v42, %v1090_v45  ;;  %5742 = vmatpush.bf16.msra.mxu1 %v9409_v46  ;;  %v10277_v42 = vld [vmem:[#allocation14 + $0xc58] sm:$0xf0]  ;;  %v9046_v45 = vld [vmem:[#allocation14 + $0xa2c] sm:$0xf0] }
 0x260   :  { %5752 = vmatpush.bf16.msra.mxu2 %v7929_v21  ;;  %5730 = vmatpush.bf16.msra.mxu0 %v9157_v0  ;;  %v7786_v21 = vld [vmem:[#allocation14 + $0x54] sm:$0xf0]  ;;  %v2657_v50 = vpop.f32.mrf.mxu3  ;;  %v9882_v0 = vld [vmem:[#allocation14 + $0x4] sm:$0xf]  ;;  %v9049_v60 = vor.u32 %v10204_v44, %v9046_v45  ;;  %v10197_v46 = vld [vmem:[#allocation14 + $0x9dc] sm:$0xf] }
 0x261   :  { %v2656_v16 = vadd.f32 %v10832_v20, %v2643_v15  ;;  %v10211_v20 = vld [vmem:[#allocation14 + $0xa4c] sm:$0xf]  ;;  %v10106_v44 = vld [vmem:[#allocation14 + $0x704] sm:$0xf]  ;;  %v8654_v45 = vld [vmem:[#allocation14 + $0x71c] sm:$0xf0] }
 0x262   :  { %5767 = vmatpush.bf16.msra.mxu3 %v8097_v6  ;;  %v2681_v34 = vpop.f32.mrf.mxu1  ;;  %v7985_v6 = vor.u32 %v9938_v53, %v7982_v55  ;;  %v9077_v22 = vor.u32 %v10211_v20, %v9074_v31  ;;  %v8626_v53 = vld [vmem:[#allocation14 + $0x6e4] sm:$0xf0]  ;;  %v8682_v20 = vld [vmem:[#allocation14 + $0x754] sm:$0xf0] }
 0x263   :  { %5743 = vmatpush.bf16.msra.mxu1 %v9381_v36 }
 0x264   :  { %5753 = vmatpush.bf16.msra.mxu2 %v7901_v62  ;;  %5731 = vmatpush.bf16.msra.mxu0 %v9129_v17  ;;  %v7789_v62 = vor.u32 %v9889_v18, %v7786_v21  ;;  %v10148_v17 = vld [vmem:[#allocation14 + $0x854] sm:$0xf]  ;;  %v8797_v21 = vor.u32 %v10141_v32, %v8794_v33  ;;  %v10071_v33 = vld [vmem:[#allocation14 + $0x5ec] sm:$0xf] }
 0x266   :  { %5768 = vmatpush.bf16.msra.mxu3 %v8069_v5  ;;  %v2644_v11 = vpop.f32.mrf.mxu2 }
 0x268   :  { %5754 = vmatpush.bf16.msra.mxu2 %v7873_v14  ;;  %5732 = vmatpush.bf16.msra.mxu0 %v9101_v29  ;;  %v7761_v14 = vor.u32 %v9882_v0, %v7758_v1  ;;  %v2668_v5 = vpop.f32.mrf.mxu0  ;;  %v8825_v29 = vor.u32 %v10148_v17, %v8822_v23  ;;  %v9018_v0 = vld [vmem:[#allocation14 + $0x9f4] sm:$0xf0]  ;;  %v10127_v1 = vld [vmem:[#allocation14 + $0x7ac] sm:$0xf]  ;;  %v8209_v17 = vor.u32 %v9994_v7, %v8206_v8  ;;  %v1075_v23 = vperm.slane %v10819_v43, 4 }
 0x269   :  { %v2669_v25 = vadd.f32 %v2668_v5, %v2656_v16  ;;  %v9021_v13 = vor.u32 %v10197_v46, %v9018_v0  ;;  %v8741_v36 = vor.u32 %v10127_v1, %v8738_v3  ;;  %v10190_v16 = vld [vmem:[#allocation14 + $0x9a4] sm:$0xf]  ;;  %v8710_v5 = vld [vmem:[#allocation14 + $0x78c] sm:$0xf0]  ;;  %v10057_v1 = vld [vmem:[#allocation14 + $0x57c] sm:$0xf] }
 0x26a   :  { %5769 = vmatpush.bf16.msra.mxu3 %v8041_v48  ;;  %v2683_v27 = vpop.f32.mrf.mxu1  ;;  %v8293_v48 = vor.u32 %v10015_v24, %v8290_v38  ;;  %v10078_v38 = vld [vmem:[#allocation14 + $0x624] sm:$0xf]  ;;  %v1091_v31 = vperm.slane %v1075_v23, 0  ;;  %v8458_v3 = vld [vmem:[#allocation14 + $0x594] sm:$0xf0] }
 0x26b   :  { %v2682_v30 = vadd.f32 %v2681_v34, %v2669_v25  ;;  %v10092_v34 = vld [vmem:[#allocation14 + $0x694] sm:$0xf]  ;;  %v8542_v25 = vld [vmem:[#allocation14 + $0x63c] sm:$0xf0]  ;;  %v10183_v27 = vld [vmem:[#allocation14 + $0x96c] sm:$0xf]  ;;  %v8461_v8 = vor.u32 %v10057_v1, %v8458_v3 }
 0x26c   :  { %5755 = vmatpush.bf16.msra.mxu2 %v7845_v28  ;;  %5777 = vmatpush.bf16.msrb.mxu0 %v8405_v35  ;;  %v9353_v28 = vor.u32 %v10284_v26, %v9352_v9  ;;  %v10008_v35 = vld [vmem:[#allocation14 + $0x3f4] sm:$0xf]  ;;  %v8878_v7 = vld [vmem:[#allocation14 + $0x8dc] sm:$0xf0]  ;;  %v9186_v3 = vld [vmem:[#allocation14 + $0xb44] sm:$0xf0] }
 0x26d   :  { %v2794_v40 = vmax.f32 %v2682_v30, 0.0  ;;  %v8265_v50 = vor.u32 %v10008_v35, %v8262_v39  ;;  %v8545_v30 = vor.u32 %v10078_v38, %v8542_v25  ;;  %v8514_v35 = vld [vmem:[#allocation14 + $0x604] sm:$0xf0]  ;;  %v8430_v23 = vld [vmem:[#allocation14 + $0x55c] sm:$0xf0] }
 0x26e   :  { %5770 = vmatpush.bf16.msra.mxu3 %v8013_v51  ;;  %5744 = vmatpush.bf16.msra.mxu1 %v9353_v28  ;;  %v10099_v51 = vld [vmem:[#allocation14 + $0x6cc] sm:$0xf]  ;;  %v8962_v28 = vld [vmem:[#allocation14 + $0x984] sm:$0xf0] }
 0x26f   :  { %v10837_v18 = vpack.c.bf16 %v2794_v40, %v2794_v40  ;;  %v8629_v58 = vor.u32 %v10099_v51, %v8626_v53  ;;  %v10176_v40 = vld [vmem:[#allocation14 + $0x934] sm:$0xf]  ;;  %v8486_v53 = vld [vmem:[#allocation14 + $0x5cc] sm:$0xf0] }
 0x270   :  { %5756 = vmatpush.bf16.msra.mxu2 %v7817_v47  ;;  %5778 = vmatpush.bf16.msrb.mxu0 %v8377_v56  ;;  %v9325_v47 = vor.u32 %v10277_v42, %v9324_v41  ;;  %v2670_v55 = vpop.f32.mrf.mxu0  ;;  %v8766_v56 = vld [vmem:[#allocation14 + $0x7fc] sm:$0xf0]  ;;  %v8934_v41 = vld [vmem:[#allocation14 + $0x94c] sm:$0xf0]  ;;  %v8517_v42 = vor.u32 %v10071_v33, %v8514_v35  ;;  %v10064_v51 = vld [vmem:[#allocation14 + $0x5b4] sm:$0xf] }
 0x271   :  { %5720 = vmatmul.bf16.vlgmr.msrb.gmra.mxu3 %v10837_v18  ;;  %v8769_v15 = vor.u32 %v10134_v54, %v8766_v56  ;;  %v9935_v54 = vld [vmem:[#allocation14 + $0x1a8] sm:$0xf0]  ;;  %v8657_v56 = vor.u32 %v10106_v44, %v8654_v45  ;;  %v7848_v44 = vld [vmem:[#allocation14 + $0xb0] sm:$0xf] }
 0x272   :  { %5771 = vmatpush.bf16.msra.mxu3 %v7985_v6  ;;  %5745 = vmatpush.bf16.msra.mxu1 %v9325_v47  ;;  %v8237_v6 = vor.u32 %v10001_v2, %v8234_v57  ;;  %v10169_v2 = vld [vmem:[#allocation14 + $0x8fc] sm:$0xf]  ;;  %v8906_v57 = vld [vmem:[#allocation14 + $0x914] sm:$0xf0]  ;;  %v9907_v45 = vld [vmem:[#allocation14 + $0xc8] sm:$0xf0] }
 0x273   :  { %v8909_v0 = vor.u32 %v10169_v2, %v8906_v57  ;;  %v7820_v2 = vld [vmem:[#allocation14 + $0x78] sm:$0xf]  ;;  %v9900_v57 = vld [vmem:[#allocation14 + $0x90] sm:$0xf0] }
 0x274   :  { %5757 = vmatpush.bf16.msra.mxu2 %v7789_v62  ;;  %5779 = vmatpush.bf16.msrb.mxu0 %v8349_v63  ;;  %v8598_v62 = vld [vmem:[#allocation14 + $0x6ac] sm:$0xf0] }
 0x275   :  { %v8601_v63 = vor.u32 %v10092_v34, %v8598_v62  ;;  %v7932_v34 = vld [vmem:[#allocation14 + $0x158] sm:$0xf]  ;;  %v9928_v62 = vld [vmem:[#allocation14 + $0x170] sm:$0xf0] }
 0x276   :  { %5816 = vmatpush.bf16.msrb.mxu3 %v9077_v22  ;;  %5790 = vmatpush.bf16.msrb.mxu1 %v8629_v58  ;;  %v8489_v58 = vor.u32 %v10064_v51, %v8486_v53  ;;  %v10246_v51 = vld [vmem:[#allocation14 + $0xb64] sm:$0xf]  ;;  %v8100_v53 = vld [vmem:[#allocation14 + $0x2a8] sm:$0xf] }
 0x278   :  { %5758 = vmatpush.bf16.msra.mxu2 %v7761_v14  ;;  %5780 = vmatpush.bf16.msrb.mxu0 %v8321_v19  ;;  %v2707_v11 = vpop.f32.mrf.mxu3  ;;  %v8573_v14 = vor.u32 %v10085_v61, %v8570_v12  ;;  %v10120_v19 = vld [vmem:[#allocation14 + $0x774] sm:$0xf]  ;;  %v7933_v12 = vor.u32 %v9928_v62, %v7932_v34  ;;  %v7821_v34 = vor.u32 %v9900_v57, %v7820_v2  ;;  %v10239_v62 = vld [vmem:[#allocation14 + $0xb2c] sm:$0xf]  ;;  %v9522_v57 = vld [vmem:[#allocation14 + $0xde4] sm:$0xf0] }
 0x279   :  { %v8713_v26 = vor.u32 %v10120_v19, %v8710_v5  ;;  %v10050_v5 = vld [vmem:[#allocation14 + $0x544] sm:$0xf] }
 0x27a   :  { %5817 = vmatpush.bf16.msrb.mxu3 %v9049_v60  ;;  %5791 = vmatpush.bf16.msrb.mxu1 %v8601_v63  ;;  %v10162_v63 = vld [vmem:[#allocation14 + $0x8c4] sm:$0xf] }
 0x27b   :  { %5759 = vmatmul.bf16.vlgmr.msra.gmra.mxu2 %v10809_v4  ;;  %v8881_v19 = vor.u32 %v10162_v63, %v8878_v7  ;;  %v9893_v63 = vld [vmem:[#allocation14 + $0x58] sm:$0xf0] }
 0x27c   :  { %5803 = vmatpush.bf16.msrb.mxu2 %v8853_v10  ;;  %5781 = vmatpush.bf16.msrb.mxu0 %v8293_v48  ;;  %v8990_v10 = vld [vmem:[#allocation14 + $0x9bc] sm:$0xf0]  ;;  %v8965_v48 = vor.u32 %v10183_v27, %v8962_v28  ;;  %v8156_v27 = vld [vmem:[#allocation14 + $0x318] sm:$0xf]  ;;  %v9984_v28 = vld [vmem:[#allocation14 + $0x330] sm:$0xf0] }
 0x27d   :  { %v8993_v24 = vor.u32 %v10190_v16, %v8990_v10  ;;  %v9298_v16 = vld [vmem:[#allocation14 + $0xc24] sm:$0xf0]  ;;  %v7904_v10 = vld [vmem:[#allocation14 + $0x120] sm:$0xf]  ;;  %v8157_v33 = vor.u32 %v9984_v28, %v8156_v27 }
 0x27e   :  { %5818 = vmatpush.bf16.msrb.mxu3 %v9021_v13  ;;  %5792 = vmatpush.bf16.msrb.mxu1 %v8573_v14  ;;  %v2694_v9 = vpop.f32.mrf.mxu2  ;;  %v10267_v13 = vld [vmem:[#allocation14 + $0xc0c] sm:$0xf]  ;;  %v8184_v14 = vld [vmem:[#allocation14 + $0x350] sm:$0xf] }
 0x27f   :  { %v2695_v47 = vadd.f32 %v2694_v9, %v1091_v31  ;;  %v9301_v25 = vor.u32 %v10267_v13, %v9298_v16  ;;  %v9914_v31 = vld [vmem:[#allocation14 + $0x100] sm:$0xf0]  ;;  %v10232_v13 = vld [vmem:[#allocation14 + $0xaf4] sm:$0xf]  ;;  %v7764_v16 = vld [vmem:[#allocation14 + $0x8] sm:$0xf] }
 0x280   :  { %5804 = vmatpush.bf16.msrb.mxu2 %v8825_v29  ;;  %5782 = vmatpush.bf16.msrb.mxu0 %v8265_v50  ;;  %v10113_v29 = vld [vmem:[#allocation14 + $0x73c] sm:$0xf]  ;;  %v2709_v32 = vpop.f32.mrf.mxu3  ;;  %v8937_v50 = vor.u32 %v10176_v40, %v8934_v41  ;;  %v8128_v41 = vld [vmem:[#allocation14 + $0x2e0] sm:$0xf] }
 0x281   :  { %v8685_v39 = vor.u32 %v10113_v29, %v8682_v20  ;;  %5772 = vmatmul.bf16.vlgmr.msra.gmra.mxu3 %v10804_v49  ;;  %v2708_v46 = vadd.f32 %v2707_v11, %v2695_v47  ;;  %v9270_v29 = vld [vmem:[#allocation14 + $0xbec] sm:$0xf0]  ;;  %v7876_v20 = vld [vmem:[#allocation14 + $0xe8] sm:$0xf]  ;;  %v8433_v32 = vor.u32 %v10050_v5, %v8430_v23  ;;  %v10253_v40 = vld [vmem:[#allocation14 + $0xb9c] sm:$0xf] }
 0x282   :  { %5819 = vmatpush.bf16.msrb.mxu3 %v8993_v24  ;;  %5793 = vmatpush.bf16.msrb.mxu1 %v8545_v30  ;;  %v2733_v22 = vpop.f32.mrf.mxu1  ;;  %v10159_v5 = vld [vmem:[#allocation14 + $0x8a8] sm:$0xf0] }
 0x284   :  { %5805 = vmatpush.bf16.msrb.mxu2 %v8797_v21  ;;  %5783 = vmatpush.bf16.msrb.mxu0 %v8237_v6  ;;  %v7960_v21 = vld [vmem:[#allocation14 + $0x190] sm:$0xf] }
 0x285   :  { %v7961_v60 = vor.u32 %v9935_v54, %v7960_v21 }
 0x286   :  { %5820 = vmatpush.bf16.msrb.mxu3 %v8965_v48  ;;  %5794 = vmatpush.bf16.msrb.mxu1 %v8517_v42  ;;  %v2696_v55 = vpop.f32.mrf.mxu2  ;;  %v9977_v42 = vld [vmem:[#allocation14 + $0x2f8] sm:$0xf0] }
 0x287   :  { %v8129_v21 = vor.u32 %v9977_v42, %v8128_v41  ;;  %v9970_v55 = vld [vmem:[#allocation14 + $0x2c0] sm:$0xf0]  ;;  %v9102_v41 = vld [vmem:[#allocation14 + $0xa9c] sm:$0xf0]  ;;  %v7988_v42 = vld [vmem:[#allocation14 + $0x1c8] sm:$0xf] }
 0x288   :  { %5806 = vmatpush.bf16.msrb.mxu2 %v8769_v15  ;;  %5784 = vmatpush.bf16.msrb.mxu0 %v8209_v17  ;;  %v2720_v15 = vpop.f32.mrf.mxu0  ;;  %v9921_v17 = vld [vmem:[#allocation14 + $0x138] sm:$0xf0] }
 0x289   :  { %v2721_v6 = vadd.f32 %v2720_v15, %v2708_v46  ;;  %v7905_v9 = vor.u32 %v9921_v17, %v7904_v10  ;;  %v8072_v15 = vld [vmem:[#allocation14 + $0x270] sm:$0xf]  ;;  %v9886_v10 = vld [vmem:[#allocation14 + $0x20] sm:$0xf0] }
 0x28a   :  { %5821 = vmatpush.bf16.msrb.mxu3 %v8937_v50  ;;  %5795 = vmatpush.bf16.msrb.mxu1 %v8489_v58  ;;  %v2735_v61 = vpop.f32.mrf.mxu1  ;;  %v7849_v50 = vor.u32 %v9907_v45, %v7848_v44  ;;  %v1076_v58 = vperm.slane %v10819_v43, 6 }
 0x28b   :  { %v2734_v11 = vadd.f32 %v2733_v22, %v2721_v6  ;;  %v9242_v22 = vld [vmem:[#allocation14 + $0xbb4] sm:$0xf0]  ;;  %v7792_v6 = vld [vmem:[#allocation14 + $0x40] sm:$0xf] }
 0x28c   :  { %5807 = vmatpush.bf16.msrb.mxu2 %v8741_v36  ;;  %v9991_v36 = vld [vmem:[#allocation14 + $0x368] sm:$0xf0]  ;;  %v9245_v54 = vor.u32 %v10253_v40, %v9242_v22  ;;  %v1092_v7 = vperm.slane %v1076_v58, 0  ;;  %v7793_v43 = vor.u32 %v9893_v63, %v7792_v6  ;;  %v9942_v22 = vld [vmem:[#allocation14 + $0x1e0] sm:$0xf0] }
 0x28d   :  { %v2795_v24 = vmax.f32 %v2734_v11, 0.0  ;;  %v8185_v38 = vor.u32 %v9991_v36, %v8184_v14  ;;  %v8044_v14 = vld [vmem:[#allocation14 + $0x238] sm:$0xf]  ;;  %v9956_v36 = vld [vmem:[#allocation14 + $0x250] sm:$0xf0]  ;;  %v7989_v2 = vor.u32 %v9942_v22, %v7988_v42 }
 0x28e   :  { %5822 = vmatpush.bf16.msrb.mxu3 %v8909_v0  ;;  %5796 = vmatpush.bf16.msrb.mxu1 %v8461_v8  ;;  %v9963_v0 = vld [vmem:[#allocation14 + $0x288] sm:$0xf0]  ;;  %v9158_v11 = vld [vmem:[#allocation14 + $0xb0c] sm:$0xf0]  ;;  %v8800_v58 = vld [vmem:[#allocation14 + $0x820] sm:$0xf] }
 0x28f   :  { %v10843_v30 = vpack.c.bf16 %v2795_v24, %v2795_v24  ;;  %v8073_v61 = vor.u32 %v9963_v0, %v8072_v15  ;;  %v8045_v24 = vor.u32 %v9956_v36, %v8044_v14  ;;  %v9052_v0 = vld [vmem:[#allocation14 + $0xa18] sm:$0xf]  ;;  %v10138_v14 = vld [vmem:[#allocation14 + $0x800] sm:$0xf0]  ;;  %v9438_v42 = vld [vmem:[#allocation14 + $0xd3c] sm:$0xf0] }
 0x290   :  { %5808 = vmatpush.bf16.msrb.mxu2 %v8713_v26  ;;  %v10260_v26 = vld [vmem:[#allocation14 + $0xbd4] sm:$0xf]  ;;  %v2722_v48 = vpop.f32.mrf.mxu0  ;;  %v8716_v22 = vld [vmem:[#allocation14 + $0x778] sm:$0xf] }
 0x291   :  { %5733 = vmatmul.bf16.vlgmr.msra.gmra.mxu0 %v10843_v30  ;;  %v9273_v35 = vor.u32 %v10260_v26, %v9270_v29  ;;  %v9949_v26 = vld [vmem:[#allocation14 + $0x218] sm:$0xf0] }
 0x292   :  { %5823 = vmatpush.bf16.msrb.mxu3 %v8881_v19  ;;  %5829 = vmatpush.bf16.msra.mxu0 %v9301_v25  ;;  %v8856_v19 = vld [vmem:[#allocation14 + $0x890] sm:$0xf]  ;;  %v7765_v25 = vor.u32 %v9886_v10, %v7764_v16  ;;  %v10225_v29 = vld [vmem:[#allocation14 + $0xabc] sm:$0xf]  ;;  %v9024_v10 = vld [vmem:[#allocation14 + $0x9e0] sm:$0xf] }
 0x293   :  { %5797 = vmatpush.bf16.msrb.mxu1 %v8433_v32  ;;  %v8857_v28 = vor.u32 %v10159_v5, %v8856_v19  ;;  %v10152_v32 = vld [vmem:[#allocation14 + $0x870] sm:$0xf0] }
 0x294   :  { %5809 = vmatpush.bf16.msrb.mxu2 %v8685_v39  ;;  %v7877_v39 = vor.u32 %v9914_v31, %v7876_v20  ;;  %v9130_v20 = vld [vmem:[#allocation14 + $0xad4] sm:$0xf0] }
 0x295   :  { %5824 = vmatmul.bf16.vlgmr.msrb.gmra.mxu3 %v10837_v18  ;;  %v8828_v31 = vld [vmem:[#allocation14 + $0x858] sm:$0xf]  ;;  %v9133_v40 = vor.u32 %v10225_v29, %v9130_v20 }
 0x296   :  { %5868 = vmatpush.bf16.msra.mxu3 %v8185_v38  ;;  %5830 = vmatpush.bf16.msra.mxu0 %v9273_v35  ;;  %v9161_v38 = vor.u32 %v10232_v13, %v9158_v11  ;;  %v10218_v35 = vld [vmem:[#allocation14 + $0xa84] sm:$0xf]  ;;  %v8829_v45 = vor.u32 %v10152_v32, %v8828_v31  ;;  %v8772_v13 = vld [vmem:[#allocation14 + $0x7e8] sm:$0xf] }
 0x297   :  { %v8996_v32 = vld [vmem:[#allocation14 + $0x9a8] sm:$0xf] }
 0x298   :  { %5810 = vmatpush.bf16.msrb.mxu2 %v8657_v56  ;;  %v2759_v47 = vpop.f32.mrf.mxu3  ;;  %v9214_v56 = vld [vmem:[#allocation14 + $0xb7c] sm:$0xf0] }
 0x299   :  { %v9217_v46 = vor.u32 %v10246_v51, %v9214_v56 }
 0x29a   :  { %5869 = vmatpush.bf16.msra.mxu3 %v8157_v33  ;;  %5831 = vmatpush.bf16.msra.mxu0 %v9245_v54  ;;  %v9080_v54 = vld [vmem:[#allocation14 + $0xa50] sm:$0xf] }
 0x29b   :  { %5811 = vmatmul.bf16.vlgmr.msrb.gmra.mxu2 %v10829_v59 }
 0x29c   :  { %5855 = vmatpush.bf16.msra.mxu2 %v7961_v60  ;;  %v8101_v60 = vor.u32 %v9970_v55, %v8100_v53  ;;  %v8408_v53 = vld [vmem:[#allocation14 + $0x510] sm:$0xf]  ;;  %v10047_v55 = vld [vmem:[#allocation14 + $0x528] sm:$0xf0] }
 0x29d   :  { %v8409_v15 = vor.u32 %v10047_v55, %v8408_v53 }
 0x29e   :  { %5870 = vmatpush.bf16.msra.mxu3 %v8129_v21  ;;  %v2746_v1 = vpop.f32.mrf.mxu2  ;;  %5832 = vmatpush.bf16.msra.mxu0 %v9217_v46  ;;  %v10323_v21 = vld [vmem:[#allocation14 + $0xdcc] sm:$0xf]  ;;  %v9105_v46 = vor.u32 %v10218_v35, %v9102_v41  ;;  %v10026_v41 = vld [vmem:[#allocation14 + $0x480] sm:$0xf0] }
 0x29f   :  { %v2747_v23 = vadd.f32 %v2746_v1, %v1092_v7  ;;  %v10208_v1 = vld [vmem:[#allocation14 + $0xa30] sm:$0xf0]  ;;  %v9525_v6 = vor.u32 %v10323_v21, %v9522_v57 }
 0x2a0   :  { %5856 = vmatpush.bf16.msra.mxu2 %v7933_v12  ;;  %v2761_v8 = vpop.f32.mrf.mxu3  ;;  %v9189_v12 = vor.u32 %v10239_v62, %v9186_v3  ;;  %v10316_v7 = vld [vmem:[#allocation14 + $0xd94] sm:$0xf]  ;;  %v9053_v11 = vor.u32 %v10208_v1, %v9052_v0  ;;  %v8940_v1 = vld [vmem:[#allocation14 + $0x938] sm:$0xf] }
 0x2a1   :  { %5785 = vmatmul.bf16.vlgmr.msrb.gmra.mxu0 %v10825_v37  ;;  %v2760_v48 = vadd.f32 %v2759_v47, %v2747_v23  ;;  %v3317_v47 = vld [vmem:[#allocation16] sm:$0x7f]  ;;  %v8380_v8 = vld [vmem:[#allocation14 + $0x4d8] sm:$0xf]  ;;  %v8773_v23 = vor.u32 %v10138_v14, %v8772_v13  ;;  %v9382_v13 = vld [vmem:[#allocation14 + $0xccc] sm:$0xf0] }
 0x2a2   :  { %5871 = vmatpush.bf16.msra.mxu3 %v8101_v60  ;;  %v2785_v17 = vpop.f32.mrf.mxu1  ;;  %5833 = vmatpush.bf16.msra.mxu0 %v9189_v12  ;;  %v10145_v60 = vld [vmem:[#allocation14 + $0x838] sm:$0xf0]  ;;  %v10850_v3 = vunpack.c.l.bf16 %v3317_v47  ;;  %v10295_v47 = vld [vmem:[#allocation14 + $0xcec] sm:$0xf]  ;;  %v8660_v14 = vld [vmem:[#allocation14 + $0x708] sm:$0xf] }
 0x2a3   :  { %v8801_v63 = vor.u32 %v10145_v60, %v8800_v58  ;;  %v9410_v58 = vld [vmem:[#allocation14 + $0xd04] sm:$0xf0]  ;;  %v8688_v60 = vld [vmem:[#allocation14 + $0x740] sm:$0xf] }
 0x2a4   :  { %5857 = vmatpush.bf16.msra.mxu2 %v7905_v9  ;;  %v8016_v9 = vld [vmem:[#allocation14 + $0x200] sm:$0xf]  ;;  %v3322_v19 = vperm.slane %v10850_v3, 0 }
 0x2a5   :  { %v8017_v33 = vor.u32 %v9949_v26, %v8016_v9  ;;  %v9466_v9 = vld [vmem:[#allocation14 + $0xd74] sm:$0xf0]  ;;  %v8744_v26 = vld [vmem:[#allocation14 + $0x7b0] sm:$0xf] }
 0x2a6   :  { %5872 = vmatpush.bf16.msra.mxu3 %v8073_v61  ;;  %v2748_v27 = vpop.f32.mrf.mxu2  ;;  %5834 = vmatpush.bf16.msra.mxu0 %v9161_v38  ;;  %v10040_v61 = vld [vmem:[#allocation14 + $0x4f0] sm:$0xf0]  ;;  %v8352_v38 = vld [vmem:[#allocation14 + $0x4a0] sm:$0xf]  ;;  %v3336_v31 = vperm.slane %v3322_v19, 0 }
 0x2a7   :  { %v8381_v16 = vor.u32 %v10040_v61, %v8380_v8  ;;  %v10131_v27 = vld [vmem:[#allocation14 + $0x7c8] sm:$0xf0]  ;;  %v10288_v8 = vld [vmem:[#allocation14 + $0xcb4] sm:$0xf]  ;;  %v8268_v61 = vld [vmem:[#allocation14 + $0x3f8] sm:$0xf] }
 0x2a8   :  { %5858 = vmatpush.bf16.msra.mxu2 %v7877_v39  ;;  %v2772_v39 = vpop.f32.mrf.mxu0  ;;  %v8745_v35 = vor.u32 %v10131_v27, %v8744_v26  ;;  %v10005_v26 = vld [vmem:[#allocation14 + $0x3d8] sm:$0xf0] }
 0x2a9   :  { %v2773_v44 = vadd.f32 %v2772_v39, %v2760_v48  ;;  %v10194_v48 = vld [vmem:[#allocation14 + $0x9c0] sm:$0xf0] }
 0x2aa   :  { %5873 = vmatpush.bf16.msra.mxu3 %v8045_v24  ;;  %v2787_v51 = vpop.f32.mrf.mxu1  ;;  %5835 = vmatpush.bf16.msra.mxu0 %v9133_v40  ;;  %v10309_v24 = vld [vmem:[#allocation14 + $0xd5c] sm:$0xf]  ;;  %v10302_v39 = vld [vmem:[#allocation14 + $0xd24] sm:$0xf]  ;;  %v8324_v40 = vld [vmem:[#allocation14 + $0x468] sm:$0xf] }
 0x2ab   :  { %v2786_v56 = vadd.f32 %v2785_v17, %v2773_v44  ;;  %v10201_v17 = vld [vmem:[#allocation14 + $0x9f8] sm:$0xf0]  ;;  %v10124_v44 = vld [vmem:[#allocation14 + $0x790] sm:$0xf0]  ;;  %v8325_v21 = vor.u32 %v10026_v41, %v8324_v40  ;;  %v9441_v53 = vor.u32 %v10302_v39, %v9438_v42  ;;  %v9326_v39 = vld [vmem:[#allocation14 + $0xc5c] sm:$0xf0] }
 0x2ac   :  { %5859 = vmatpush.bf16.msra.mxu2 %v7849_v50  ;;  %v10215_v50 = vld [vmem:[#allocation14 + $0xa68] sm:$0xf0]  ;;  %v8717_v55 = vor.u32 %v10124_v44, %v8716_v22  ;;  %v8212_v40 = vld [vmem:[#allocation14 + $0x388] sm:$0xf]  ;;  %v10166_v42 = vld [vmem:[#allocation14 + $0x8e0] sm:$0xf0] }
 0x2ad   :  { %v2796_v62 = vmax.f32 %v2786_v56, 0.0  ;;  %v8296_v56 = vld [vmem:[#allocation14 + $0x430] sm:$0xf]  ;;  %v8884_v41 = vld [vmem:[#allocation14 + $0x8c8] sm:$0xf] }
 0x2ae   :  { %5874 = vmatpush.bf16.msra.mxu3 %v8017_v33  ;;  %5836 = vmatpush.bf16.msra.mxu0 %v9105_v46  ;;  %v9469_v33 = vor.u32 %v10309_v24, %v9466_v9  ;;  %v10117_v46 = vld [vmem:[#allocation14 + $0x758] sm:$0xf0]  ;;  %v8240_v9 = vld [vmem:[#allocation14 + $0x3c0] sm:$0xf] }
 0x2af   :  { %v10852_v12 = vpack.c.bf16 %v2796_v62, %v2796_v62 }
 0x2b0   :  { %5860 = vmatpush.bf16.msra.mxu2 %v7821_v34  ;;  %v9081_v34 = vor.u32 %v10215_v50, %v9080_v54  ;;  %v2774_v36 = vpop.f32.mrf.mxu0  ;;  %v8968_v54 = vld [vmem:[#allocation14 + $0x970] sm:$0xf]  ;;  %v10187_v50 = vld [vmem:[#allocation14 + $0x988] sm:$0xf0] }
 0x2b1   :  { %5746 = vmatmul.bf16.vlgmr.msra.gmra.mxu1 %v10852_v12  ;;  %5837 = vmatmul.bf16.vlgmr.msra.gmra.mxu0 %v10843_v30  ;;  %v10110_v36 = vld [vmem:[#allocation14 + $0x720] sm:$0xf0] }
 0x2b2   :  { %5875 = vmatpush.bf16.msra.mxu3 %v7989_v2  ;;  %5881 = vmatpush.bf16.msrb.mxu0 %v8409_v15  ;;  %v10019_v2 = vld [vmem:[#allocation14 + $0x448] sm:$0xf0] }
 0x2b3   :  { %5842 = vmatpush.bf16.msra.mxu1 %v9525_v6  ;;  %v8297_v15 = vor.u32 %v10019_v2, %v8296_v56  ;;  %v10180_v6 = vld [vmem:[#allocation14 + $0x950] sm:$0xf0]  ;;  %v8885_v56 = vor.u32 %v10166_v42, %v8884_v41  ;;  %v10103_v2 = vld [vmem:[#allocation14 + $0x6e8] sm:$0xf0]  ;;  %v7822_v41 = vld [vmem:[#allocation14 + $0x94] sm:$0xf0] }
 0x2b4   :  { %5861 = vmatpush.bf16.msra.mxu2 %v7793_v43  ;;  %v9494_v43 = vld [vmem:[#allocation14 + $0xdac] sm:$0xf0] }
 0x2b5   :  { %v9497_v5 = vor.u32 %v10316_v7, %v9494_v43  ;;  %5876 = vmatmul.bf16.vlgmr.msra.gmra.mxu3 %v10804_v49  ;;  %v8689_v7 = vor.u32 %v10117_v46, %v8688_v60  ;;  %v10012_v43 = vld [vmem:[#allocation14 + $0x410] sm:$0xf0] }
 0x2b6   :  { %5920 = vmatpush.bf16.msrb.mxu3 %v9081_v34  ;;  %5882 = vmatpush.bf16.msrb.mxu0 %v8381_v16  ;;  %v8969_v34 = vor.u32 %v10187_v50, %v8968_v54  ;;  %v8941_v16 = vor.u32 %v10180_v6, %v8940_v1  ;;  %v8269_v19 = vor.u32 %v10012_v43, %v8268_v61  ;;  %v8186_v54 = vld [vmem:[#allocation14 + $0x36c] sm:$0xf0]  ;;  %v8158_v1 = vld [vmem:[#allocation14 + $0x334] sm:$0xf0]  ;;  %v10264_v61 = vld [vmem:[#allocation14 + $0xbf0] sm:$0xf0] }
 0x2b7   :  { %5843 = vmatpush.bf16.msra.mxu1 %v9497_v5  ;;  %v8912_v5 = vld [vmem:[#allocation14 + $0x900] sm:$0xf]  ;;  %v10096_v43 = vld [vmem:[#allocation14 + $0x6b0] sm:$0xf0] }
 0x2b8   :  { %5862 = vmatpush.bf16.msra.mxu2 %v7765_v25  ;;  %v10033_v25 = vld [vmem:[#allocation14 + $0x4b8] sm:$0xf0]  ;;  %v5669_v29 = vpop.f32.mrf.mxu3 }
 0x2b9   :  { %v8353_v20 = vor.u32 %v10033_v25, %v8352_v38  ;;  %v9385_v38 = vor.u32 %v10288_v8, %v9382_v13  ;;  %v8661_v25 = vor.u32 %v10110_v36, %v8660_v14  ;;  %v9276_v8 = vld [vmem:[#allocation14 + $0xbd8] sm:$0xf]  ;;  %v9911_v13 = vld [vmem:[#allocation14 + $0xec] sm:$0xf]  ;;  %v7878_v14 = vld [vmem:[#allocation14 + $0x104] sm:$0xf0] }
 0x2ba   :  { %5921 = vmatpush.bf16.msrb.mxu3 %v9053_v11 }
 0x2bb   :  { %5863 = vmatmul.bf16.vlgmr.msra.gmra.mxu2 %v10809_v4  ;;  %5883 = vmatpush.bf16.msrb.mxu0 %v8353_v20 }
 0x2bc   :  { %5907 = vmatpush.bf16.msrb.mxu2 %v8857_v28  ;;  %v9025_v28 = vor.u32 %v10201_v17, %v9024_v10  ;;  %5844 = vmatpush.bf16.msra.mxu1 %v9469_v33  ;;  %v9932_v10 = vld [vmem:[#allocation14 + $0x194] sm:$0xf]  ;;  %v7962_v17 = vld [vmem:[#allocation14 + $0x1ac] sm:$0xf0]  ;;  %v8241_v33 = vor.u32 %v10005_v26, %v8240_v9 }
 0x2bd   :  { %v7965_v27 = vor.u32 %v9932_v10, %v7962_v17  ;;  %v9974_v10 = vld [vmem:[#allocation14 + $0x2e4] sm:$0xf]  ;;  %v8130_v17 = vld [vmem:[#allocation14 + $0x2fc] sm:$0xf0]  ;;  %v9904_v9 = vld [vmem:[#allocation14 + $0xb4] sm:$0xf] }
 0x2be   :  { %5922 = vmatpush.bf16.msrb.mxu3 %v9025_v28  ;;  %v5656_v51 = vpop.f32.mrf.mxu2  ;;  %v10281_v28 = vld [vmem:[#allocation14 + $0xc7c] sm:$0xf]  ;;  %v7850_v26 = vld [vmem:[#allocation14 + $0xcc] sm:$0xf0] }
 0x2bf   :  { %v5657_v57 = vadd.f32 %v5656_v51, %v3336_v31  ;;  %5884 = vmatpush.bf16.msrb.mxu0 %v8325_v21  ;;  %v9925_v31 = vld [vmem:[#allocation14 + $0x15c] sm:$0xf]  ;;  %v9988_v21 = vld [vmem:[#allocation14 + $0x354] sm:$0xf]  ;;  %v8632_v51 = vld [vmem:[#allocation14 + $0x6d0] sm:$0xf] }
 0x2c0   :  { %5908 = vmatpush.bf16.msrb.mxu2 %v8829_v45  ;;  %v8997_v45 = vor.u32 %v10194_v48, %v8996_v32  ;;  %v5671_v62 = vpop.f32.mrf.mxu3  ;;  %5845 = vmatpush.bf16.msra.mxu1 %v9441_v53  ;;  %v7934_v32 = vld [vmem:[#allocation14 + $0x174] sm:$0xf0]  ;;  %v9304_v53 = vld [vmem:[#allocation14 + $0xc10] sm:$0xf]  ;;  %v8633_v6 = vor.u32 %v10103_v2, %v8632_v51 }
 0x2c1   :  { %v5670_v0 = vadd.f32 %v5669_v29, %v5657_v57  ;;  %5798 = vmatmul.bf16.vlgmr.msrb.gmra.mxu1 %v10821_v52  ;;  %v9354_v29 = vld [vmem:[#allocation14 + $0xc94] sm:$0xf0]  ;;  %v7937_v50 = vor.u32 %v9925_v31, %v7934_v32  ;;  %v9918_v57 = vld [vmem:[#allocation14 + $0x124] sm:$0xf]  ;;  %v7853_v32 = vor.u32 %v9904_v9, %v7850_v26  ;;  %v9192_v51 = vld [vmem:[#allocation14 + $0xb30] sm:$0xf] }
 0x2c2   :  { %5923 = vmatpush.bf16.msrb.mxu3 %v8997_v45  ;;  %v5695_v11 = vpop.f32.mrf.mxu1  ;;  %v9357_v44 = vor.u32 %v10281_v28, %v9354_v29  ;;  %v9998_v45 = vld [vmem:[#allocation14 + $0x3a0] sm:$0xf0]  ;;  %v9967_v29 = vld [vmem:[#allocation14 + $0x2ac] sm:$0xf]  ;;  %v8830_v9 = vld [vmem:[#allocation14 + $0x874] sm:$0xf0] }
 0x2c3   :  { %5885 = vmatpush.bf16.msrb.mxu0 %v8297_v15  ;;  %v8213_v46 = vor.u32 %v9998_v45, %v8212_v40  ;;  %v9897_v40 = vld [vmem:[#allocation14 + $0x7c] sm:$0xf]  ;;  %v8074_v45 = vld [vmem:[#allocation14 + $0x28c] sm:$0xf0] }
 0x2c4   :  { %5909 = vmatpush.bf16.msrb.mxu2 %v8801_v63  ;;  %v9413_v63 = vor.u32 %v10295_v47, %v9410_v58  ;;  %v7906_v58 = vld [vmem:[#allocation14 + $0x13c] sm:$0xf0] }
 0x2c6   :  { %5924 = vmatpush.bf16.msrb.mxu3 %v8969_v34  ;;  %5846 = vmatpush.bf16.msra.mxu1 %v9413_v63  ;;  %v5658_v24 = vpop.f32.mrf.mxu2  ;;  %v8189_v34 = vor.u32 %v9988_v21, %v8186_v54  ;;  %v7909_v63 = vor.u32 %v9918_v57, %v7906_v58  ;;  %v7825_v54 = vor.u32 %v9897_v40, %v7822_v41  ;;  %v9528_v41 = vld [vmem:[#allocation14 + $0xdd0] sm:$0xf] }
 0x2c7   :  { %5886 = vmatpush.bf16.msrb.mxu0 %v8269_v19  ;;  %v9248_v24 = vld [vmem:[#allocation14 + $0xba0] sm:$0xf] }
 0x2c8   :  { %5910 = vmatpush.bf16.msrb.mxu2 %v8773_v23  ;;  %v10173_v23 = vld [vmem:[#allocation14 + $0x918] sm:$0xf0]  ;;  %v5682_v48 = vpop.f32.mrf.mxu0 }
 0x2c9   :  { %v8913_v20 = vor.u32 %v10173_v23, %v8912_v5  ;;  %v5683_v22 = vadd.f32 %v5682_v48, %v5670_v0  ;;  %v9981_v0 = vld [vmem:[#allocation14 + $0x31c] sm:$0xf]  ;;  %v7881_v5 = vor.u32 %v9911_v13, %v7878_v14  ;;  %v8576_v23 = vld [vmem:[#allocation14 + $0x660] sm:$0xf]  ;;  %v8548_v48 = vld [vmem:[#allocation14 + $0x628] sm:$0xf] }
 0x2ca   :  { %5925 = vmatpush.bf16.msrb.mxu3 %v8941_v16  ;;  %5847 = vmatpush.bf16.msra.mxu1 %v9385_v38  ;;  %v5697_v47 = vpop.f32.mrf.mxu1  ;;  %v9277_v16 = vor.u32 %v10264_v61, %v9276_v8  ;;  %v10257_v38 = vld [vmem:[#allocation14 + $0xbb8] sm:$0xf0]  ;;  %v9883_v8 = vld [vmem:[#allocation14 + $0xc] sm:$0xf]  ;;  %v7766_v61 = vld [vmem:[#allocation14 + $0x24] sm:$0xf0] }
 0x2cb   :  { %v10859_v60 = vadd.f32 %v5695_v11, %v5683_v22  ;;  %5887 = vmatpush.bf16.msrb.mxu0 %v8241_v33  ;;  %v8161_v11 = vor.u32 %v9981_v0, %v8158_v1  ;;  %v9249_v28 = vor.u32 %v10257_v38, %v9248_v24  ;;  %v9220_v33 = vld [vmem:[#allocation14 + $0xb68] sm:$0xf]  ;;  %v9890_v47 = vld [vmem:[#allocation14 + $0x44] sm:$0xf]  ;;  %v8492_v1 = vld [vmem:[#allocation14 + $0x5b8] sm:$0xf] }
 0x2cc   :  { %5911 = vmatpush.bf16.msrb.mxu2 %v8745_v35  ;;  %v10274_v35 = vld [vmem:[#allocation14 + $0xc44] sm:$0xf]  ;;  %v10156_v13 = vld [vmem:[#allocation14 + $0x894] sm:$0xf]  ;;  %v8858_v14 = vld [vmem:[#allocation14 + $0x8ac] sm:$0xf0] }
 0x2cd   :  { %v9329_v62 = vor.u32 %v10274_v35, %v9326_v39  ;;  %v10250_v35 = vld [vmem:[#allocation14 + $0xb80] sm:$0xf0]  ;;  %v10061_v24 = vld [vmem:[#allocation14 + $0x598] sm:$0xf0] }
 0x2ce   :  { %5926 = vmatpush.bf16.msrb.mxu3 %v8913_v20  ;;  %5848 = vmatpush.bf16.msra.mxu1 %v9357_v44  ;;  %v8102_v20 = vld [vmem:[#allocation14 + $0x2c4] sm:$0xf0]  ;;  %v10082_v39 = vld [vmem:[#allocation14 + $0x640] sm:$0xf0]  ;;  %v9221_v22 = vor.u32 %v10250_v35, %v9220_v33  ;;  %v9960_v44 = vld [vmem:[#allocation14 + $0x274] sm:$0xf] }
 0x2cf   :  { %5888 = vmatpush.bf16.msrb.mxu0 %v8213_v46  ;;  %v8105_v42 = vor.u32 %v9967_v29, %v8102_v20  ;;  %v8549_v21 = vor.u32 %v10082_v39, %v8548_v48  ;;  %v8077_v2 = vor.u32 %v9960_v44, %v8074_v45  ;;  %v9953_v46 = vld [vmem:[#allocation14 + $0x23c] sm:$0xf]  ;;  %v10054_v29 = vld [vmem:[#allocation14 + $0x560] sm:$0xf0]  ;;  %v9108_v20 = vld [vmem:[#allocation14 + $0xa88] sm:$0xf] }
 0x2d0   :  { %5912 = vmatpush.bf16.msrb.mxu2 %v8717_v55  ;;  %v10271_v55 = vld [vmem:[#allocation14 + $0xc28] sm:$0xf0]  ;;  %v5684_v36 = vpop.f32.mrf.mxu0  ;;  %v10222_v33 = vld [vmem:[#allocation14 + $0xaa0] sm:$0xf0]  ;;  %v10212_v35 = vld [vmem:[#allocation14 + $0xa54] sm:$0xf] }
 0x2d1   :  { %v9305_v15 = vor.u32 %v10271_v55, %v9304_v53  ;;  %v10243_v53 = vld [vmem:[#allocation14 + $0xb48] sm:$0xf0]  ;;  %v9082_v39 = vld [vmem:[#allocation14 + $0xa6c] sm:$0xf0] }
 0x2d2   :  { %5927 = vmatpush.bf16.msrb.mxu3 %v8885_v56  ;;  %5849 = vmatpush.bf16.msra.mxu1 %v9329_v62  ;;  %v10075_v55 = vld [vmem:[#allocation14 + $0x608] sm:$0xf0]  ;;  %v7794_v56 = vld [vmem:[#allocation14 + $0x5c] sm:$0xf0]  ;;  %v9193_v58 = vor.u32 %v10243_v53, %v9192_v51  ;;  %v9085_v51 = vor.u32 %v10212_v35, %v9082_v39  ;;  %v9416_v39 = vld [vmem:[#allocation14 + $0xcf0] sm:$0xf] }
 0x2d3   :  { %5933 = vmatpush.bf16.msra.mxu0 %v9305_v15  ;;  %v7797_v0 = vor.u32 %v9890_v47, %v7794_v56  ;;  %v10327_v45 = vld [vmem:[#allocation14 + $0xde8] sm:$0xf0]  ;;  %v10205_v47 = vld [vmem:[#allocation14 + $0xa1c] sm:$0xf]  ;;  %v9054_v56 = vld [vmem:[#allocation14 + $0xa34] sm:$0xf0] }
 0x2d4   :  { %5913 = vmatpush.bf16.msrb.mxu2 %v8689_v7  ;;  %v8604_v7 = vld [vmem:[#allocation14 + $0x698] sm:$0xf]  ;;  %5889 = vmatmul.bf16.vlgmr.msrb.gmra.mxu0 %v10825_v37 }
 0x2d5   :  { %v8605_v19 = vor.u32 %v10096_v43, %v8604_v7  ;;  %5928 = vmatmul.bf16.vlgmr.msrb.gmra.mxu3 %v10837_v18  ;;  %5850 = vmatmul.bf16.vlgmr.msra.gmra.mxu1 %v10852_v12  ;;  %v10068_v7 = vld [vmem:[#allocation14 + $0x5d0] sm:$0xf0] }
 0x2d6   :  { %5972 = vmatpush.bf16.msra.mxu3 %v8189_v34  ;;  %5894 = vmatpush.bf16.msrb.mxu1 %v8633_v6  ;;  %v8046_v34 = vld [vmem:[#allocation14 + $0x254] sm:$0xf0] }
 0x2d7   :  { %5934 = vmatpush.bf16.msra.mxu0 %v9277_v16  ;;  %v9164_v6 = vld [vmem:[#allocation14 + $0xaf8] sm:$0xf]  ;;  %v8049_v43 = vor.u32 %v9953_v46, %v8046_v34  ;;  %v8018_v16 = vld [vmem:[#allocation14 + $0x21c] sm:$0xf0]  ;;  %v10037_v46 = vld [vmem:[#allocation14 + $0x4dc] sm:$0xf] }
 0x2d8   :  { %5914 = vmatpush.bf16.msrb.mxu2 %v8661_v25  ;;  %v10089_v25 = vld [vmem:[#allocation14 + $0x678] sm:$0xf0]  ;;  %v8382_v34 = vld [vmem:[#allocation14 + $0x4f4] sm:$0xf0] }
 0x2d9   :  { %v8577_v31 = vor.u32 %v10089_v25, %v8576_v23  ;;  %v8464_v23 = vld [vmem:[#allocation14 + $0x580] sm:$0xf]  ;;  %v10149_v25 = vld [vmem:[#allocation14 + $0x85c] sm:$0xf] }
 0x2da   :  { %5973 = vmatpush.bf16.msra.mxu3 %v8161_v11  ;;  %5895 = vmatpush.bf16.msrb.mxu1 %v8605_v19  ;;  %v9946_v11 = vld [vmem:[#allocation14 + $0x204] sm:$0xf]  ;;  %v10229_v19 = vld [vmem:[#allocation14 + $0xad8] sm:$0xf0]  ;;  %v8465_v48 = vor.u32 %v10061_v24, %v8464_v23  ;;  %v8833_v40 = vor.u32 %v10149_v25, %v8830_v9  ;;  %v10023_v25 = vld [vmem:[#allocation14 + $0x46c] sm:$0xf] }
 0x2db   :  { %5915 = vmatmul.bf16.vlgmr.msrb.gmra.mxu2 %v10829_v59  ;;  %5935 = vmatpush.bf16.msra.mxu0 %v9249_v28  ;;  %v8021_v38 = vor.u32 %v9946_v11, %v8018_v16  ;;  %v8436_v28 = vld [vmem:[#allocation14 + $0x548] sm:$0xf]  ;;  %v10313_v11 = vld [vmem:[#allocation14 + $0xd78] sm:$0xf0]  ;;  %v10128_v16 = vld [vmem:[#allocation14 + $0x7b4] sm:$0xf] }
 0x2dc   :  { %5959 = vmatpush.bf16.msra.mxu2 %v7965_v27  ;;  %v8133_v27 = vor.u32 %v9974_v10, %v8130_v17  ;;  %v7769_v10 = vor.u32 %v9883_v8, %v7766_v61  ;;  %v9136_v17 = vld [vmem:[#allocation14 + $0xac0] sm:$0xf]  ;;  %v8437_v53 = vor.u32 %v10054_v29, %v8436_v28  ;;  %v8326_v9 = vld [vmem:[#allocation14 + $0x484] sm:$0xf0]  ;;  %v8718_v28 = vld [vmem:[#allocation14 + $0x794] sm:$0xf0] }
 0x2dd   :  { %v9026_v8 = vld [vmem:[#allocation14 + $0x9fc] sm:$0xf0] }
 0x2de   :  { %5974 = vmatpush.bf16.msra.mxu3 %v8133_v27  ;;  %5896 = vmatpush.bf16.msrb.mxu1 %v8577_v31  ;;  %v5708_v57 = vpop.f32.mrf.mxu2  ;;  %v9137_v27 = vor.u32 %v10229_v19, %v9136_v17  ;;  %v9939_v31 = vld [vmem:[#allocation14 + $0x1cc] sm:$0xf] }
 0x2df   :  { %5936 = vmatpush.bf16.msra.mxu0 %v9221_v22  ;;  %v10866_v62 = vadd.f32 %v5708_v57, %v10859_v60  ;;  %v8493_v60 = vor.u32 %v10068_v7, %v8492_v1  ;;  %v8410_v22 = vld [vmem:[#allocation14 + $0x52c] sm:$0xf0]  ;;  %v8774_v1 = vld [vmem:[#allocation14 + $0x804] sm:$0xf0]  ;;  %v10198_v7 = vld [vmem:[#allocation14 + $0x9e4] sm:$0xf] }
 0x2e0   :  { %5960 = vmatpush.bf16.msra.mxu2 %v7937_v50  ;;  %v8520_v50 = vld [vmem:[#allocation14 + $0x5f0] sm:$0xf]  ;;  %v10191_v19 = vld [vmem:[#allocation14 + $0x9ac] sm:$0xf] }
 0x2e1   :  { %v8521_v15 = vor.u32 %v10075_v55, %v8520_v50  ;;  %v9109_v50 = vor.u32 %v10222_v33, %v9108_v20  ;;  %v8329_v20 = vor.u32 %v10023_v25, %v8326_v9 }
 0x2e2   :  { %5975 = vmatpush.bf16.msra.mxu3 %v8105_v42  ;;  %5897 = vmatpush.bf16.msrb.mxu1 %v8549_v21  ;;  %v10044_v42 = vld [vmem:[#allocation14 + $0x514] sm:$0xf]  ;;  %v10142_v21 = vld [vmem:[#allocation14 + $0x824] sm:$0xf] }
 0x2e3   :  { %5937 = vmatpush.bf16.msra.mxu0 %v9193_v58  ;;  %v8413_v55 = vor.u32 %v10044_v42, %v8410_v22  ;;  %v9500_v58 = vld [vmem:[#allocation14 + $0xd98] sm:$0xf]  ;;  %v10299_v42 = vld [vmem:[#allocation14 + $0xd08] sm:$0xf0]  ;;  %v10114_v22 = vld [vmem:[#allocation14 + $0x744] sm:$0xf] }
 0x2e4   :  { %5961 = vmatpush.bf16.msra.mxu2 %v7909_v63  ;;  %v10236_v63 = vld [vmem:[#allocation14 + $0xb10] sm:$0xf0] }
 0x2e5   :  { %v9165_v36 = vor.u32 %v10236_v63, %v9164_v6  ;;  %v9057_v6 = vor.u32 %v10205_v47, %v9054_v56  ;;  %v8385_v63 = vor.u32 %v10037_v46, %v8382_v34  ;;  %v9388_v47 = vld [vmem:[#allocation14 + $0xcb8] sm:$0xf]  ;;  %v10009_v56 = vld [vmem:[#allocation14 + $0x3fc] sm:$0xf]  ;;  %v8662_v46 = vld [vmem:[#allocation14 + $0x724] sm:$0xf0] }
 0x2e6   :  { %5976 = vmatpush.bf16.msra.mxu3 %v8077_v2  ;;  %5898 = vmatpush.bf16.msrb.mxu1 %v8521_v15  ;;  %v5710_v26 = vpop.f32.mrf.mxu2  ;;  %v9529_v2 = vor.u32 %v10327_v45, %v9528_v41  ;;  %v10320_v15 = vld [vmem:[#allocation14 + $0xdb0] sm:$0xf0]  ;;  %v8298_v41 = vld [vmem:[#allocation14 + $0x44c] sm:$0xf0] }
 0x2e7   :  { %5938 = vmatpush.bf16.msra.mxu0 %v9165_v36  ;;  %v9501_v61 = vor.u32 %v10320_v15, %v9500_v58  ;;  %v8354_v36 = vld [vmem:[#allocation14 + $0x4bc] sm:$0xf0]  ;;  %v10306_v26 = vld [vmem:[#allocation14 + $0xd40] sm:$0xf0]  ;;  %v10107_v58 = vld [vmem:[#allocation14 + $0x70c] sm:$0xf] }
 0x2e8   :  { %5962 = vmatpush.bf16.msra.mxu2 %v7881_v5  ;;  %v8861_v5 = vor.u32 %v10156_v13, %v8858_v14  ;;  %v9472_v13 = vld [vmem:[#allocation14 + $0xd60] sm:$0xf]  ;;  %v10030_v14 = vld [vmem:[#allocation14 + $0x4a4] sm:$0xf]  ;;  %v7968_v15 = vld [vmem:[#allocation14 + $0x198] sm:$0xf] }
 0x2e9   :  { %v8357_v17 = vor.u32 %v10030_v14, %v8354_v36  ;;  %v9473_v23 = vor.u32 %v10313_v11, %v9472_v13  ;;  %v8242_v13 = vld [vmem:[#allocation14 + $0x3dc] sm:$0xf0]  ;;  %v10285_v11 = vld [vmem:[#allocation14 + $0xc98] sm:$0xf0] }
 0x2ea   :  { %5977 = vmatpush.bf16.msra.mxu3 %v8049_v43  ;;  %5899 = vmatpush.bf16.msrb.mxu1 %v8493_v60  ;;  %v8746_v60 = vld [vmem:[#allocation14 + $0x7cc] sm:$0xf0]  ;;  %v9360_v36 = vld [vmem:[#allocation14 + $0xc80] sm:$0xf] }
 0x2eb   :  { %5939 = vmatpush.bf16.msra.mxu0 %v9137_v27  ;;  %v8749_v24 = vor.u32 %v10128_v16, %v8746_v60  ;;  %v10121_v27 = vld [vmem:[#allocation14 + $0x77c] sm:$0xf]  ;;  %v7940_v60 = vld [vmem:[#allocation14 + $0x160] sm:$0xf]  ;;  %v9361_v9 = vor.u32 %v10285_v11, %v9360_v36  ;;  %v8108_v11 = vld [vmem:[#allocation14 + $0x2b0] sm:$0xf] }
 0x2ec   :  { %5963 = vmatpush.bf16.msra.mxu2 %v7853_v32  ;;  %v7990_v32 = vld [vmem:[#allocation14 + $0x1e4] sm:$0xf0]  ;;  %v8721_v35 = vor.u32 %v10121_v27, %v8718_v28  ;;  %v8192_v27 = vld [vmem:[#allocation14 + $0x358] sm:$0xf]  ;;  %v9992_v28 = vld [vmem:[#allocation14 + $0x370] sm:$0xf0] }
 0x2ed   :  { %v7993_v44 = vor.u32 %v9939_v31, %v7990_v32  ;;  %v10184_v31 = vld [vmem:[#allocation14 + $0x974] sm:$0xf]  ;;  %v8970_v32 = vld [vmem:[#allocation14 + $0x98c] sm:$0xf0] }
 0x2ee   :  { %5978 = vmatpush.bf16.msra.mxu3 %v8021_v38  ;;  %5900 = vmatpush.bf16.msrb.mxu1 %v8465_v48  ;;  %v9444_v38 = vld [vmem:[#allocation14 + $0xd28] sm:$0xf]  ;;  %v8973_v45 = vor.u32 %v10184_v31, %v8970_v32  ;;  %v10268_v31 = vld [vmem:[#allocation14 + $0xc14] sm:$0xf]  ;;  %v9306_v32 = vld [vmem:[#allocation14 + $0xc2c] sm:$0xf0] }
 0x2ef   :  { %5940 = vmatpush.bf16.msra.mxu0 %v9109_v50  ;;  %v9445_v33 = vor.u32 %v10306_v26, %v9444_v38  ;;  %v8942_v50 = vld [vmem:[#allocation14 + $0x954] sm:$0xf0]  ;;  %v8886_v38 = vld [vmem:[#allocation14 + $0x8e4] sm:$0xf0] }
 0x2f0   :  { %5964 = vmatpush.bf16.msra.mxu2 %v7825_v54  ;;  %v8802_v54 = vld [vmem:[#allocation14 + $0x83c] sm:$0xf0]  ;;  %v8214_v26 = vld [vmem:[#allocation14 + $0x3a4] sm:$0xf0] }
 0x2f1   :  { %v8805_v57 = vor.u32 %v10142_v21, %v8802_v54  ;;  %v10177_v54 = vld [vmem:[#allocation14 + $0x93c] sm:$0xf] }
 0x2f2   :  { %5979 = vmatpush.bf16.msra.mxu3 %v7993_v44  ;;  %5901 = vmatpush.bf16.msrb.mxu1 %v8437_v53  ;;  %v8690_v44 = vld [vmem:[#allocation14 + $0x75c] sm:$0xf0]  ;;  %v9417_v53 = vor.u32 %v10299_v42, %v9416_v39  ;;  %v8945_v34 = vor.u32 %v10177_v54, %v8942_v50  ;;  %v7912_v39 = vld [vmem:[#allocation14 + $0x128] sm:$0xf]  ;;  %v8193_v42 = vor.u32 %v9992_v28, %v8192_v27  ;;  %v8080_v28 = vld [vmem:[#allocation14 + $0x278] sm:$0xf] }
 0x2f3   :  { %5985 = vmatpush.bf16.msrb.mxu0 %v8413_v55  ;;  %v8693_v55 = vor.u32 %v10114_v22, %v8690_v44  ;;  %v9309_v44 = vor.u32 %v10268_v31, %v9306_v32 }
 0x2f4   :  { %5965 = vmatpush.bf16.msra.mxu2 %v7797_v0  ;;  %v10135_v0 = vld [vmem:[#allocation14 + $0x7ec] sm:$0xf]  ;;  %5941 = vmatmul.bf16.vlgmr.msra.gmra.mxu0 %v10843_v30 }
 0x2f5   :  { %v8777_v43 = vor.u32 %v10135_v0, %v8774_v1  ;;  %5980 = vmatmul.bf16.vlgmr.msra.gmra.mxu3 %v10804_v49  ;;  %5902 = vmatmul.bf16.vlgmr.msrb.gmra.mxu1 %v10821_v52  ;;  %v9936_v0 = vld [vmem:[#allocation14 + $0x1b0] sm:$0xf0] }
 0x2f6   :  { %6024 = vmatpush.bf16.msrb.mxu3 %v9085_v51  ;;  %5946 = vmatpush.bf16.msra.mxu1 %v9529_v2  ;;  %v10874_v51 = vpop.f32.mrf.mxu3  ;;  %v8270_v2 = vld [vmem:[#allocation14 + $0x414] sm:$0xf0]  ;;  %v7969_v14 = vor.u32 %v9936_v0, %v7968_v15  ;;  %v8136_v15 = vld [vmem:[#allocation14 + $0x2e8] sm:$0xf]  ;;  %v9978_v0 = vld [vmem:[#allocation14 + $0x300] sm:$0xf0] }
 0x2f7   :  { %5986 = vmatpush.bf16.msrb.mxu0 %v8385_v63  ;;  %v8273_v1 = vor.u32 %v10009_v56, %v8270_v2  ;;  %v8914_v63 = vld [vmem:[#allocation14 + $0x91c] sm:$0xf0]  ;;  %v8606_v56 = vld [vmem:[#allocation14 + $0x6b4] sm:$0xf0]  ;;  %v7884_v2 = vld [vmem:[#allocation14 + $0xf0] sm:$0xf] }
 0x2f8   :  { %5966 = vmatpush.bf16.msra.mxu2 %v7769_v10  ;;  %v9029_v10 = vor.u32 %v10198_v7, %v9026_v8 }
 0x2fa   :  { %6025 = vmatpush.bf16.msrb.mxu3 %v9057_v6  ;;  %5947 = vmatpush.bf16.msra.mxu1 %v9501_v61  ;;  %v10170_v6 = vld [vmem:[#allocation14 + $0x904] sm:$0xf]  ;;  %v8665_v61 = vor.u32 %v10107_v58, %v8662_v46 }
 0x2fb   :  { %5967 = vmatmul.bf16.vlgmr.msra.gmra.mxu2 %v10809_v4  ;;  %5987 = vmatpush.bf16.msrb.mxu0 %v8357_v17  ;;  %v8917_v16 = vor.u32 %v10170_v6, %v8914_v63  ;;  %v10086_v63 = vld [vmem:[#allocation14 + $0x664] sm:$0xf] }
 0x2fc   :  { %6011 = vmatpush.bf16.msrb.mxu2 %v8861_v5  ;;  %v8998_v5 = vld [vmem:[#allocation14 + $0x9c4] sm:$0xf0] }
 0x2fd   :  { %v9001_v29 = vor.u32 %v10191_v19, %v8998_v5  ;;  %v9332_v19 = vld [vmem:[#allocation14 + $0xc48] sm:$0xf]  ;;  %v10278_v5 = vld [vmem:[#allocation14 + $0xc60] sm:$0xf0] }
 0x2fe   :  { %6026 = vmatpush.bf16.msrb.mxu3 %v9029_v10  ;;  %5948 = vmatpush.bf16.msra.mxu1 %v9473_v23  ;;  %v10872_v48 = vpop.f32.mrf.mxu2  ;;  %v9929_v10 = vld [vmem:[#allocation14 + $0x178] sm:$0xf0]  ;;  %v9995_v23 = vld [vmem:[#allocation14 + $0x38c] sm:$0xf]  ;;  %v5723_v25 = vpop.f32.mrf.mxu3  ;;  %v9333_v22 = vor.u32 %v10278_v5, %v9332_v19  ;;  %v9222_v5 = vld [vmem:[#allocation14 + $0xb84] sm:$0xf0] }
 0x2ff   :  { %5988 = vmatpush.bf16.msrb.mxu0 %v8329_v20  ;;  %v10100_v20 = vld [vmem:[#allocation14 + $0x6d4] sm:$0xf]  ;;  %v10247_v19 = vld [vmem:[#allocation14 + $0xb6c] sm:$0xf] }
 0x300   :  { %6012 = vmatpush.bf16.msrb.mxu2 %v8833_v40  ;;  %v10016_v40 = vld [vmem:[#allocation14 + $0x434] sm:$0xf]  ;;  %v9225_v27 = vor.u32 %v10247_v19, %v9222_v5  ;;  %v10051_v5 = vld [vmem:[#allocation14 + $0x54c] sm:$0xf] }
 0x301   :  { %v8301_v21 = vor.u32 %v10016_v40, %v8298_v41  ;;  %v9922_v40 = vld [vmem:[#allocation14 + $0x140] sm:$0xf0]  ;;  %v8217_v41 = vor.u32 %v9995_v23, %v8214_v26  ;;  %v8550_v23 = vld [vmem:[#allocation14 + $0x644] sm:$0xf0] }
 0x302   :  { %6027 = vmatpush.bf16.msrb.mxu3 %v9001_v29  ;;  %5949 = vmatpush.bf16.msra.mxu1 %v9445_v33  ;;  %v7941_v29 = vor.u32 %v9929_v10, %v7940_v60  ;;  %v7913_v50 = vor.u32 %v9922_v40, %v7912_v39  ;;  %v9194_v39 = vld [vmem:[#allocation14 + $0xb4c] sm:$0xf0] }
 0x303   :  { %5989 = vmatpush.bf16.msrb.mxu0 %v8301_v21  ;;  %v9985_v21 = vld [vmem:[#allocation14 + $0x338] sm:$0xf0]  ;;  %v8522_v40 = vld [vmem:[#allocation14 + $0x60c] sm:$0xf0] }
 0x304   :  { %6013 = vmatpush.bf16.msrb.mxu2 %v8805_v57  ;;  %v10292_v57 = vld [vmem:[#allocation14 + $0xcd0] sm:$0xf0] }
 0x305   :  { %v9389_v8 = vor.u32 %v10292_v57, %v9388_v47  ;;  %v9278_v47 = vld [vmem:[#allocation14 + $0xbf4] sm:$0xf0]  ;;  %v9915_v57 = vld [vmem:[#allocation14 + $0x108] sm:$0xf0] }
 0x306   :  { %6028 = vmatpush.bf16.msrb.mxu3 %v8973_v45  ;;  %5950 = vmatpush.bf16.msra.mxu1 %v9417_v53  ;;  %v5762_v7 = vpop.f32.mrf.mxu2  ;;  %v8164_v45 = vld [vmem:[#allocation14 + $0x320] sm:$0xf]  ;;  %v10093_v53 = vld [vmem:[#allocation14 + $0x69c] sm:$0xf]  ;;  %v10877_v46 = vpop.f32.mrf.mxu3  ;;  %v7885_v6 = vor.u32 %v9915_v57, %v7884_v2  ;;  %v7772_v2 = vld [vmem:[#allocation14 + $0x10] sm:$0xf] }
 0x307   :  { %5990 = vmatpush.bf16.msrb.mxu0 %v8273_v1  ;;  %v8165_v58 = vor.u32 %v9985_v21, %v8164_v45  ;;  %v8609_v1 = vor.u32 %v10093_v53, %v8606_v56  ;;  %v10254_v7 = vld [vmem:[#allocation14 + $0xba4] sm:$0xf]  ;;  %v8052_v45 = vld [vmem:[#allocation14 + $0x240] sm:$0xf]  ;;  %v9957_v21 = vld [vmem:[#allocation14 + $0x258] sm:$0xf0] }
 0x308   :  { %6014 = vmatpush.bf16.msrb.mxu2 %v8777_v43  ;;  %v10002_v43 = vld [vmem:[#allocation14 + $0x3c4] sm:$0xf]  ;;  %v10065_v53 = vld [vmem:[#allocation14 + $0x5bc] sm:$0xf]  ;;  %v8494_v56 = vld [vmem:[#allocation14 + $0x5d4] sm:$0xf0] }
 0x309   :  { %v8245_v17 = vor.u32 %v10002_v43, %v8242_v13  ;;  %v7856_v43 = vld [vmem:[#allocation14 + $0xb8] sm:$0xf]  ;;  %v9908_v13 = vld [vmem:[#allocation14 + $0xd0] sm:$0xf0]  ;;  %v9887_v57 = vld [vmem:[#allocation14 + $0x28] sm:$0xf0] }
 0x30a   :  { %6029 = vmatpush.bf16.msrb.mxu3 %v8945_v34  ;;  %5951 = vmatpush.bf16.msra.mxu1 %v9389_v8  ;;  %v9250_v8 = vld [vmem:[#allocation14 + $0xbbc] sm:$0xf0]  ;;  %v7857_v10 = vor.u32 %v9908_v13, %v7856_v43  ;;  %v7773_v43 = vor.u32 %v9887_v57, %v7772_v2  ;;  %v10226_v13 = vld [vmem:[#allocation14 + $0xac4] sm:$0xf]  ;;  %v10317_v2 = vld [vmem:[#allocation14 + $0xd9c] sm:$0xf] }
 0x30b   :  { %5991 = vmatpush.bf16.msrb.mxu0 %v8245_v17  ;;  %v9253_v36 = vor.u32 %v10254_v7, %v9250_v8  ;;  %v10079_v17 = vld [vmem:[#allocation14 + $0x62c] sm:$0xf]  ;;  %v9950_v7 = vld [vmem:[#allocation14 + $0x220] sm:$0xf0]  ;;  %v8388_v57 = vld [vmem:[#allocation14 + $0x4e0] sm:$0xf] }
 0x30c   :  { %6015 = vmatpush.bf16.msrb.mxu2 %v8749_v24  ;;  %v10163_v24 = vld [vmem:[#allocation14 + $0x8cc] sm:$0xf]  ;;  %v8553_v31 = vor.u32 %v10079_v17, %v8550_v23  ;;  %v10153_v17 = vld [vmem:[#allocation14 + $0x878] sm:$0xf0]  ;;  %v8438_v23 = vld [vmem:[#allocation14 + $0x564] sm:$0xf0] }
 0x30d   :  { %v8889_v33 = vor.u32 %v10163_v24, %v8886_v38  ;;  %v7828_v24 = vld [vmem:[#allocation14 + $0x80] sm:$0xf]  ;;  %v9901_v38 = vld [vmem:[#allocation14 + $0x98] sm:$0xf0] }
 0x30e   :  { %6030 = vmatpush.bf16.msrb.mxu3 %v8917_v16  ;;  %5952 = vmatpush.bf16.msra.mxu1 %v9361_v9  ;;  %v9971_v16 = vld [vmem:[#allocation14 + $0x2c8] sm:$0xf0]  ;;  %v10882_v9 = vpop.f32.mrf.mxu0  ;;  %v5775_v26 = vpop.f32.mrf.mxu3  ;;  %v7829_v32 = vor.u32 %v9901_v38, %v7828_v24  ;;  %v7996_v38 = vld [vmem:[#allocation14 + $0x1d0] sm:$0xf] }
 0x30f   :  { %5992 = vmatpush.bf16.msrb.mxu0 %v8217_v41  ;;  %v8109_v25 = vor.u32 %v9971_v16, %v8108_v11  ;;  %v7800_v41 = vld [vmem:[#allocation14 + $0x48] sm:$0xf]  ;;  %v10058_v11 = vld [vmem:[#allocation14 + $0x584] sm:$0xf]  ;;  %v8466_v16 = vld [vmem:[#allocation14 + $0x59c] sm:$0xf0] }
 0x310   :  { %6016 = vmatpush.bf16.msrb.mxu2 %v8721_v35  ;;  %v8634_v35 = vld [vmem:[#allocation14 + $0x6ec] sm:$0xf0]  ;;  %v10219_v24 = vld [vmem:[#allocation14 + $0xa8c] sm:$0xf]  ;;  %v8469_v26 = vor.u32 %v10058_v11, %v8466_v16  ;;  %v9474_v11 = vld [vmem:[#allocation14 + $0xd7c] sm:$0xf0] }
 0x311   :  { %v8637_v54 = vor.u32 %v10100_v20, %v8634_v35  ;;  %v10240_v35 = vld [vmem:[#allocation14 + $0xb34] sm:$0xf]  ;;  %v8752_v16 = vld [vmem:[#allocation14 + $0x7b8] sm:$0xf] }
 0x312   :  { %6031 = vmatpush.bf16.msrb.mxu3 %v8889_v33  ;;  %5953 = vmatpush.bf16.msra.mxu1 %v9333_v22  ;;  %v10072_v33 = vld [vmem:[#allocation14 + $0x5f4] sm:$0xf] }
 0x313   :  { %6037 = vmatpush.bf16.msra.mxu0 %v9309_v44  ;;  %v9197_v44 = vor.u32 %v10240_v35, %v9194_v39  ;;  %v10048_v35 = vld [vmem:[#allocation14 + $0x530] sm:$0xf0] }
 0x314   :  { %6017 = vmatpush.bf16.msrb.mxu2 %v8693_v55  ;;  %v10261_v55 = vld [vmem:[#allocation14 + $0xbdc] sm:$0xf]  ;;  %5993 = vmatmul.bf16.vlgmr.msrb.gmra.mxu0 %v10825_v37 }
 0x315   :  { %v9281_v34 = vor.u32 %v10261_v55, %v9278_v47  ;;  %6032 = vmatmul.bf16.vlgmr.msrb.gmra.mxu3 %v10837_v18  ;;  %5954 = vmatmul.bf16.vlgmr.msra.gmra.mxu1 %v10852_v12  ;;  %v10233_v55 = vld [vmem:[#allocation14 + $0xafc] sm:$0xf]  ;;  %v9166_v47 = vld [vmem:[#allocation14 + $0xb14] sm:$0xf0] }
 0x316   :  { %6076 = vmatpush.bf16.msra.mxu3 %v8193_v42  ;;  %5998 = vmatpush.bf16.msrb.mxu1 %v8637_v54  ;;  %v9894_v42 = vld [vmem:[#allocation14 + $0x60] sm:$0xf0]  ;;  %v8525_v54 = vor.u32 %v10072_v33, %v8522_v40  ;;  %v8416_v33 = vld [vmem:[#allocation14 + $0x518] sm:$0xf]  ;;  %v9530_v40 = vld [vmem:[#allocation14 + $0xdec] sm:$0xf0] }
 0x317   :  { %6038 = vmatpush.bf16.msra.mxu0 %v9281_v34  ;;  %v8864_v34 = vld [vmem:[#allocation14 + $0x898] sm:$0xf] }
 0x318   :  { %6018 = vmatpush.bf16.msrb.mxu2 %v8665_v61  ;;  %v8578_v61 = vld [vmem:[#allocation14 + $0x67c] sm:$0xf0] }
 0x319   :  { %v8581_v60 = vor.u32 %v10086_v63, %v8578_v61  ;;  %v8024_v63 = vld [vmem:[#allocation14 + $0x208] sm:$0xf]  ;;  %v8497_v61 = vor.u32 %v10065_v53, %v8494_v56  ;;  %v9060_v53 = vld [vmem:[#allocation14 + $0xa20] sm:$0xf] }
 0x31a   :  { %6077 = vmatpush.bf16.msra.mxu3 %v8165_v58  ;;  %5999 = vmatpush.bf16.msrb.mxu1 %v8609_v1  ;;  %v8053_v58 = vor.u32 %v9957_v21, %v8052_v45  ;;  %v10886_v1 = vpop.f32.mrf.mxu3 }
 0x31b   :  { %6019 = vmatmul.bf16.vlgmr.msrb.gmra.mxu2 %v10829_v59  ;;  %6039 = vmatpush.bf16.msra.mxu0 %v9253_v36 }
 0x31c   :  { %6063 = vmatpush.bf16.msra.mxu2 %v7969_v14  ;;  %v8137_v14 = vor.u32 %v9978_v0, %v8136_v15  ;;  %v10160_v15 = vld [vmem:[#allocation14 + $0x8b0] sm:$0xf0]  ;;  %v5736_v0 = vpop.f32.mrf.mxu0 }
 0x31d   :  { %v8865_v36 = vor.u32 %v10160_v15, %v8864_v34  ;;  %v9502_v34 = vld [vmem:[#allocation14 + $0xdb4] sm:$0xf0]  ;;  %v8780_v15 = vld [vmem:[#allocation14 + $0x7f0] sm:$0xf]  ;;  %v10139_v0 = vld [vmem:[#allocation14 + $0x808] sm:$0xf0] }
 0x31e   :  { %6078 = vmatpush.bf16.msra.mxu3 %v8137_v14  ;;  %6000 = vmatpush.bf16.msrb.mxu1 %v8581_v60  ;;  %v10884_v20 = vpop.f32.mrf.mxu2  ;;  %v9138_v14 = vld [vmem:[#allocation14 + $0xadc] sm:$0xf0]  ;;  %v8025_v60 = vor.u32 %v9950_v7, %v8024_v63  ;;  %v9032_v7 = vld [vmem:[#allocation14 + $0x9e8] sm:$0xf] }
 0x31f   :  { %6040 = vmatpush.bf16.msra.mxu0 %v9225_v27  ;;  %v9141_v19 = vor.u32 %v10226_v13, %v9138_v14  ;;  %v9110_v27 = vld [vmem:[#allocation14 + $0xaa4] sm:$0xf0]  ;;  %v10310_v13 = vld [vmem:[#allocation14 + $0xd64] sm:$0xf] }
 0x320   :  { %6064 = vmatpush.bf16.msra.mxu2 %v7941_v29  ;;  %v9964_v29 = vld [vmem:[#allocation14 + $0x290] sm:$0xf0]  ;;  %v9113_v45 = vor.u32 %v10219_v24, %v9110_v27  ;;  %v8360_v14 = vld [vmem:[#allocation14 + $0x4a8] sm:$0xf]  ;;  %v9477_v24 = vor.u32 %v10310_v13, %v9474_v11  ;;  %v10027_v27 = vld [vmem:[#allocation14 + $0x488] sm:$0xf0] }
 0x321   :  { %v8081_v22 = vor.u32 %v9964_v29, %v8080_v28  ;;  %v9088_v28 = vld [vmem:[#allocation14 + $0xa58] sm:$0xf]  ;;  %v10216_v29 = vld [vmem:[#allocation14 + $0xa70] sm:$0xf0]  ;;  %v8668_v13 = vld [vmem:[#allocation14 + $0x710] sm:$0xf] }
 0x322   :  { %6079 = vmatpush.bf16.msra.mxu3 %v8109_v25  ;;  %6001 = vmatpush.bf16.msrb.mxu1 %v8553_v31  ;;  %v9943_v25 = vld [vmem:[#allocation14 + $0x1e8] sm:$0xf0]  ;;  %v9089_v21 = vor.u32 %v10216_v29, %v9088_v28  ;;  %v5722_v28 = vadd.f32 %v10874_v51, %v10866_v62  ;;  %v9446_v29 = vld [vmem:[#allocation14 + $0xd44] sm:$0xf0]  ;;  %v10296_v62 = vld [vmem:[#allocation14 + $0xcf4] sm:$0xf] }
 0x323   :  { %6041 = vmatpush.bf16.msra.mxu0 %v9197_v44  ;;  %v7997_v39 = vor.u32 %v9943_v25, %v7996_v38  ;;  %v5827_v44 = vpop.f32.mrf.mxu3  ;;  %v10303_v25 = vld [vmem:[#allocation14 + $0xd2c] sm:$0xf]  ;;  %v8304_v51 = vld [vmem:[#allocation14 + $0x438] sm:$0xf]  ;;  %v9933_v11 = vld [vmem:[#allocation14 + $0x19c] sm:$0xf] }
 0x324   :  { %6065 = vmatpush.bf16.msra.mxu2 %v7913_v50  ;;  %v7801_v50 = vor.u32 %v9894_v42, %v7800_v41  ;;  %v8808_v41 = vld [vmem:[#allocation14 + $0x828] sm:$0xf]  ;;  %v10146_v42 = vld [vmem:[#allocation14 + $0x840] sm:$0xf0] }
 0x325   :  { %v8809_v56 = vor.u32 %v10146_v42, %v8808_v41  ;;  %v8976_v41 = vld [vmem:[#allocation14 + $0x978] sm:$0xf]  ;;  %v10188_v42 = vld [vmem:[#allocation14 + $0x990] sm:$0xf0] }
 0x326   :  { %6080 = vmatpush.bf16.msra.mxu3 %v8081_v22  ;;  %6002 = vmatpush.bf16.msrb.mxu1 %v8525_v54  ;;  %v5814_v8 = vpop.f32.mrf.mxu2  ;;  %v10889_v22 = vpop.f32.mrf.mxu0  ;;  %v8441_v54 = vor.u32 %v10051_v5, %v8438_v23  ;;  %v9004_v5 = vld [vmem:[#allocation14 + $0x9b0] sm:$0xf]  ;;  %v10195_v23 = vld [vmem:[#allocation14 + $0x9c8] sm:$0xf0] }
 0x327   :  { %v10202_v8 = vld [vmem:[#allocation14 + $0xa00] sm:$0xf0] }
 0x328   :  { %6066 = vmatpush.bf16.msra.mxu2 %v7885_v6  ;;  %v9169_v6 = vor.u32 %v10233_v55, %v9166_v47  ;;  %v10209_v55 = vld [vmem:[#allocation14 + $0xa38] sm:$0xf0] }
 0x32a   :  { %6081 = vmatpush.bf16.msra.mxu3 %v8053_v58  ;;  %6042 = vmatpush.bf16.msra.mxu0 %v9169_v6  ;;  %v10041_v58 = vld [vmem:[#allocation14 + $0x4f8] sm:$0xf0]  ;;  %v9061_v6 = vor.u32 %v10209_v55, %v9060_v53  ;;  %v9418_v55 = vld [vmem:[#allocation14 + $0xd0c] sm:$0xf0] }
 0x32b   :  { %6003 = vmatpush.bf16.msrb.mxu1 %v8497_v61  ;;  %v8389_v63 = vor.u32 %v10041_v58, %v8388_v57  ;;  %v9505_v61 = vor.u32 %v10317_v2, %v9502_v34  ;;  %v8977_v2 = vor.u32 %v10188_v42, %v8976_v41  ;;  %v3323_v57 = vperm.slane %v10850_v3, 2  ;;  %v9926_v41 = vld [vmem:[#allocation14 + $0x164] sm:$0xf]  ;;  %v7942_v42 = vld [vmem:[#allocation14 + $0x17c] sm:$0xf0] }
 0x32c   :  { %6067 = vmatpush.bf16.msra.mxu2 %v7857_v10  ;;  %v8836_v10 = vld [vmem:[#allocation14 + $0x860] sm:$0xf] }
 0x32d   :  { %v8837_v31 = vor.u32 %v10153_v17, %v8836_v10  ;;  %v9033_v17 = vor.u32 %v10202_v8, %v9032_v7  ;;  %v10289_v7 = vld [vmem:[#allocation14 + $0xcbc] sm:$0xf]  ;;  %v8276_v8 = vld [vmem:[#allocation14 + $0x400] sm:$0xf] }
 0x32e   :  { %6082 = vmatpush.bf16.msra.mxu3 %v8025_v60  ;;  %6043 = vmatpush.bf16.msra.mxu0 %v9141_v19  ;;  %v10132_v60 = vld [vmem:[#allocation14 + $0x7d0] sm:$0xf0]  ;;  %v5788_v10 = vpop.f32.mrf.mxu0  ;;  %v5747_v44 = vpop.f32.mrf.mxu1 }
 0x32f   :  { %6004 = vmatpush.bf16.msrb.mxu1 %v8469_v26  ;;  %v8753_v38 = vor.u32 %v10132_v60, %v8752_v16  ;;  %v8332_v26 = vld [vmem:[#allocation14 + $0x470] sm:$0xf]  ;;  %v7970_v16 = vld [vmem:[#allocation14 + $0x1b4] sm:$0xf0] }
 0x330   :  { %6068 = vmatpush.bf16.msra.mxu2 %v7829_v32  ;;  %v10324_v32 = vld [vmem:[#allocation14 + $0xdd4] sm:$0xf] }
 0x331   :  { %v9533_v47 = vor.u32 %v10324_v32, %v9530_v40  ;;  %v10125_v32 = vld [vmem:[#allocation14 + $0x798] sm:$0xf0]  ;;  %v8333_v40 = vor.u32 %v10027_v27, %v8332_v26  ;;  %v10006_v26 = vld [vmem:[#allocation14 + $0x3e0] sm:$0xf0] }
 0x332   :  { %6083 = vmatpush.bf16.msra.mxu3 %v7997_v39  ;;  %6044 = vmatpush.bf16.msra.mxu0 %v9113_v45  ;;  %v3324_v39 = vperm.slane %v10850_v3, 4 }
 0x333   :  { %6005 = vmatpush.bf16.msrb.mxu1 %v8441_v54 }
 0x334   :  { %6069 = vmatpush.bf16.msra.mxu2 %v7801_v50  ;;  %v8417_v50 = vor.u32 %v10048_v35, %v8416_v33  ;;  %v9005_v33 = vor.u32 %v10195_v23, %v9004_v5  ;;  %v5735_v35 = vadd.f32 %v10882_v9, %v5722_v28  ;;  %v3338_v58 = vperm.slane %v3324_v39, 0 }
 0x335   :  { %6045 = vmatmul.bf16.vlgmr.msra.gmra.mxu0 %v10843_v30  ;;  %6084 = vmatmul.bf16.vlgmr.msra.gmra.mxu3 %v10804_v49  ;;  %v3337_v28 = vperm.slane %v3323_v57, 0  ;;  %v8640_v57 = vld [vmem:[#allocation14 + $0x6d8] sm:$0xf] }
 0x336   :  { %6128 = vmatpush.bf16.msrb.mxu3 %v9089_v21  ;;  %6089 = vmatpush.bf16.msrb.mxu0 %v8417_v50  ;;  %v9449_v21 = vor.u32 %v10303_v25, %v9446_v29  ;;  %v10020_v50 = vld [vmem:[#allocation14 + $0x450] sm:$0xf0]  ;;  %v5748_v53 = vadd.f32 %v5747_v44, %v5735_v35  ;;  %v10898_v9 = vpop.f32.mrf.mxu0  ;;  %v5749_v5 = vpop.f32.mrf.mxu1  ;;  %v8248_v25 = vld [vmem:[#allocation14 + $0x3c8] sm:$0xf]  ;;  %v9362_v35 = vld [vmem:[#allocation14 + $0xc9c] sm:$0xf0] }
 0x337   :  { %6050 = vmatpush.bf16.msra.mxu1 %v9533_v47  ;;  %v8696_v47 = vld [vmem:[#allocation14 + $0x748] sm:$0xf]  ;;  %v8305_v34 = vor.u32 %v10020_v50, %v8304_v51  ;;  %v8249_v44 = vor.u32 %v10006_v26, %v8248_v25  ;;  %v10167_v51 = vld [vmem:[#allocation14 + $0x8e8] sm:$0xf0]  ;;  %v10097_v5 = vld [vmem:[#allocation14 + $0x6b8] sm:$0xf0] }
 0x338   :  { %6070 = vmatpush.bf16.msra.mxu2 %v7773_v43  ;;  %v8781_v43 = vor.u32 %v10139_v0, %v8780_v15  ;;  %6006 = vmatmul.bf16.vlgmr.msrb.gmra.mxu1 %v10821_v52  ;;  %10348 = vtanh.f32 %v5748_v53  ;;  %v8948_v15 = vld [vmem:[#allocation14 + $0x940] sm:$0xf]  ;;  %v10181_v0 = vld [vmem:[#allocation14 + $0x958] sm:$0xf0]  ;;  %v5877_v23 = vpop.f32.mrf.mxu3  ;;  %v9999_v53 = vld [vmem:[#allocation14 + $0x3a8] sm:$0xf0] }
 0x33a   :  { %6129 = vmatpush.bf16.msrb.mxu3 %v9061_v6  ;;  %6090 = vmatpush.bf16.msrb.mxu0 %v8389_v63  ;;  %v9421_v6 = vor.u32 %v10296_v62, %v9418_v55  ;;  %v8892_v62 = vld [vmem:[#allocation14 + $0x8d0] sm:$0xf]  ;;  %v9989_v55 = vld [vmem:[#allocation14 + $0x35c] sm:$0xf] }
 0x33b   :  { %6071 = vmatmul.bf16.vlgmr.msra.gmra.mxu2 %v10809_v4  ;;  %6051 = vmatpush.bf16.msra.mxu1 %v9505_v61  ;;  %v10013_v61 = vld [vmem:[#allocation14 + $0x418] sm:$0xf0] }
 0x33c   :  { %6115 = vmatpush.bf16.msrb.mxu2 %v8865_v36  ;;  %v10034_v36 = vld [vmem:[#allocation14 + $0x4c0] sm:$0xf0]  ;;  %v8277_v10 = vor.u32 %v10013_v61, %v8276_v8 }
 0x33d   :  { %v8361_v19 = vor.u32 %v10034_v36, %v8360_v14  ;;  %v10111_v14 = vld [vmem:[#allocation14 + $0x728] sm:$0xf0]  ;;  %v8949_v36 = vor.u32 %v10181_v0, %v8948_v15  ;;  %v8893_v15 = vor.u32 %v10167_v51, %v8892_v62  ;;  %v10104_v0 = vld [vmem:[#allocation14 + $0x6f0] sm:$0xf0]  ;;  %v8110_v62 = vld [vmem:[#allocation14 + $0x2cc] sm:$0xf0] }
 0x33e   :  { %6130 = vmatpush.bf16.msrb.mxu3 %v9033_v17  ;;  %v5864_v45 = vpop.f32.mrf.mxu2  ;;  %v8920_v17 = vld [vmem:[#allocation14 + $0x908] sm:$0xf]  ;;  %v10349_v27 = vpop.eup %10348 }
 0x33f   :  { %6091 = vmatpush.bf16.msrb.mxu0 %v8361_v19  ;;  %6052 = vmatpush.bf16.msra.mxu1 %v9477_v24  ;;  %v5865_v60 = vadd.f32 %v5864_v45, %v3338_v58  ;;  %v10174_v19 = vld [vmem:[#allocation14 + $0x920] sm:$0xf0]  ;;  %6382 = vst [vmem:[#allocation17] sm:$0xff] %v10349_v27  ;;  %v5840_v39 = vpop.f32.mrf.mxu0  ;;  %v10275_v45 = vld [vmem:[#allocation14 + $0xc4c] sm:$0xf] }
 0x340   :  { %6116 = vmatpush.bf16.msrb.mxu2 %v8837_v31  ;;  %v8724_v31 = vld [vmem:[#allocation14 + $0x780] sm:$0xf]  ;;  %v9312_v58 = vld [vmem:[#allocation14 + $0xc18] sm:$0xf]  ;;  %v9975_v27 = vld [vmem:[#allocation14 + $0x2ec] sm:$0xf] }
 0x341   :  { %v8725_v54 = vor.u32 %v10125_v32, %v8724_v31  ;;  %v10901_v29 = vadd.f32 %v5877_v23, %v5865_v60  ;;  %v7973_v32 = vor.u32 %v9933_v11, %v7970_v16  ;;  %v8166_v11 = vld [vmem:[#allocation14 + $0x33c] sm:$0xf0]  ;;  %v8641_v60 = vor.u32 %v10104_v0, %v8640_v57  ;;  %v9912_v23 = vld [vmem:[#allocation14 + $0xf4] sm:$0xf]  ;;  %v10090_v39 = vld [vmem:[#allocation14 + $0x680] sm:$0xf0] }
 0x342   :  { %6131 = vmatpush.bf16.msrb.mxu3 %v9005_v33  ;;  %v10282_v33 = vld [vmem:[#allocation14 + $0xc84] sm:$0xf]  ;;  %v7830_v57 = vld [vmem:[#allocation14 + $0x9c] sm:$0xf0]  ;;  %v8082_v0 = vld [vmem:[#allocation14 + $0x294] sm:$0xf0] }
 0x343   :  { %6092 = vmatpush.bf16.msrb.mxu0 %v8333_v40  ;;  %6053 = vmatpush.bf16.msra.mxu1 %v9449_v21  ;;  %v8921_v40 = vor.u32 %v10174_v19, %v8920_v17  ;;  %v9334_v21 = vld [vmem:[#allocation14 + $0xc64] sm:$0xf0]  ;;  %v9365_v50 = vor.u32 %v10282_v33, %v9362_v35  ;;  %v8612_v17 = vld [vmem:[#allocation14 + $0x6a0] sm:$0xf]  ;;  %v10258_v35 = vld [vmem:[#allocation14 + $0xbc0] sm:$0xf0] }
 0x344   :  { %6117 = vmatpush.bf16.msrb.mxu2 %v8809_v56  ;;  %v10118_v56 = vld [vmem:[#allocation14 + $0x760] sm:$0xf0]  ;;  %v9284_v19 = vld [vmem:[#allocation14 + $0xbe0] sm:$0xf]  ;;  %v9256_v33 = vld [vmem:[#allocation14 + $0xba8] sm:$0xf] }
 0x345   :  { %v8697_v63 = vor.u32 %v10118_v56, %v8696_v47  ;;  %v8194_v47 = vld [vmem:[#allocation14 + $0x374] sm:$0xf0]  ;;  %v5761_v56 = vadd.f32 %v10872_v48, %v3337_v28  ;;  %v5879_v48 = vpop.f32.mrf.mxu3  ;;  %v8138_v28 = vld [vmem:[#allocation14 + $0x304] sm:$0xf0] }
 0x346   :  { %6132 = vmatpush.bf16.msrb.mxu3 %v8977_v2  ;;  %v5866_v31 = vpop.f32.mrf.mxu2  ;;  %v7945_v2 = vor.u32 %v9926_v41, %v7942_v42  ;;  %v8197_v61 = vor.u32 %v9989_v55, %v8194_v47  ;;  %v7858_v41 = vld [vmem:[#allocation14 + $0xd4] sm:$0xf0]  ;;  %v9228_v55 = vld [vmem:[#allocation14 + $0xb70] sm:$0xf]  ;;  %v10251_v47 = vld [vmem:[#allocation14 + $0xb88] sm:$0xf0] }
 0x347   :  { %6093 = vmatpush.bf16.msrb.mxu0 %v8305_v34  ;;  %6054 = vmatpush.bf16.msra.mxu1 %v9421_v6  ;;  %v10272_v34 = vld [vmem:[#allocation14 + $0xc30] sm:$0xf0]  ;;  %v9919_v6 = vld [vmem:[#allocation14 + $0x12c] sm:$0xf] }
 0x348   :  { %6118 = vmatpush.bf16.msrb.mxu2 %v8781_v43  ;;  %v9390_v43 = vld [vmem:[#allocation14 + $0xcd4] sm:$0xf0]  ;;  %v10076_v48 = vld [vmem:[#allocation14 + $0x610] sm:$0xf0] }
 0x349   :  { %v9393_v24 = vor.u32 %v10289_v7, %v9390_v43  ;;  %v5774_v7 = vadd.f32 %v10877_v46, %v5761_v56  ;;  %v5799_v43 = vpop.f32.mrf.mxu1  ;;  %v10265_v46 = vld [vmem:[#allocation14 + $0xbf8] sm:$0xf0]  ;;  %v10083_v56 = vld [vmem:[#allocation14 + $0x648] sm:$0xf0] }
 0x34a   :  { %6133 = vmatpush.bf16.msrb.mxu3 %v8949_v36  ;;  %v9982_v36 = vld [vmem:[#allocation14 + $0x324] sm:$0xf]  ;;  %v9285_v26 = vor.u32 %v10265_v46, %v9284_v19 }
 0x34b   :  { %6094 = vmatpush.bf16.msrb.mxu0 %v8277_v10  ;;  %6055 = vmatpush.bf16.msra.mxu1 %v9393_v24  ;;  %v5787_v16 = vadd.f32 %v10889_v22, %v5774_v7  ;;  %v7886_v24 = vld [vmem:[#allocation14 + $0x10c] sm:$0xf0]  ;;  %v8169_v25 = vor.u32 %v9982_v36, %v8166_v11  ;;  %v8613_v22 = vor.u32 %v10097_v5, %v8612_v17  ;;  %v8528_v7 = vld [vmem:[#allocation14 + $0x5f8] sm:$0xf]  ;;  %v8054_v17 = vld [vmem:[#allocation14 + $0x25c] sm:$0xf0] }
 0x34c   :  { %6119 = vmatpush.bf16.msrb.mxu2 %v8753_v38  ;;  %v8669_v38 = vor.u32 %v10111_v14, %v8668_v13  ;;  %v9337_v13 = vor.u32 %v10275_v45, %v9334_v21  ;;  %v9313_v14 = vor.u32 %v10272_v34, %v9312_v58  ;;  %v7889_v31 = vor.u32 %v9912_v23, %v7886_v24  ;;  %v8500_v23 = vld [vmem:[#allocation14 + $0x5c0] sm:$0xf] }
 0x34d   :  { %v9257_v21 = vor.u32 %v10258_v35, %v9256_v33  ;;  %v9229_v34 = vor.u32 %v10251_v47, %v9228_v55  ;;  %v8529_v46 = vor.u32 %v10076_v48, %v8528_v7  ;;  %v9172_v24 = vld [vmem:[#allocation14 + $0xb00] sm:$0xf]  ;;  %v8026_v33 = vld [vmem:[#allocation14 + $0x224] sm:$0xf0]  ;;  %v9116_v55 = vld [vmem:[#allocation14 + $0xa90] sm:$0xf] }
 0x34e   :  { %6134 = vmatpush.bf16.msrb.mxu3 %v8921_v40  ;;  %v9905_v40 = vld [vmem:[#allocation14 + $0xbc] sm:$0xf]  ;;  %v9090_v7 = vld [vmem:[#allocation14 + $0xa74] sm:$0xf0] }
 0x34f   :  { %6095 = vmatpush.bf16.msrb.mxu0 %v8249_v44  ;;  %6056 = vmatpush.bf16.msra.mxu1 %v9365_v50  ;;  %v8141_v44 = vor.u32 %v9975_v27, %v8138_v28  ;;  %v7861_v50 = vor.u32 %v9905_v40, %v7858_v41  ;;  %v7774_v27 = vld [vmem:[#allocation14 + $0x2c] sm:$0xf0]  ;;  %v10157_v28 = vld [vmem:[#allocation14 + $0x89c] sm:$0xf]  ;;  %v9144_v41 = vld [vmem:[#allocation14 + $0xac8] sm:$0xf] }
 0x350   :  { %6120 = vmatpush.bf16.msrb.mxu2 %v8725_v54  ;;  %v8220_v54 = vld [vmem:[#allocation14 + $0x390] sm:$0xf]  ;;  %v8418_v48 = vld [vmem:[#allocation14 + $0x534] sm:$0xf0] }
 0x351   :  { %v8221_v8 = vor.u32 %v9999_v53, %v8220_v54  ;;  %v5801_v45 = vpop.f32.mrf.mxu1  ;;  %v9968_v54 = vld [vmem:[#allocation14 + $0x2b4] sm:$0xf]  ;;  %v8556_v53 = vld [vmem:[#allocation14 + $0x630] sm:$0xf]  ;;  %v10914_v36 = vpop.f32.mrf.mxu0 }
 0x352   :  { %6135 = vmatpush.bf16.msrb.mxu3 %v8893_v15  ;;  %v8113_v58 = vor.u32 %v9968_v54, %v8110_v62  ;;  %v9961_v15 = vld [vmem:[#allocation14 + $0x27c] sm:$0xf]  ;;  %v10062_v54 = vld [vmem:[#allocation14 + $0x5a0] sm:$0xf0] }
 0x353   :  { %6096 = vmatpush.bf16.msrb.mxu0 %v8221_v8  ;;  %6057 = vmatpush.bf16.msra.mxu1 %v9337_v13  ;;  %v9200_v8 = vld [vmem:[#allocation14 + $0xb38] sm:$0xf]  ;;  %v9891_v13 = vld [vmem:[#allocation14 + $0x4c] sm:$0xf]  ;;  %v8085_v11 = vor.u32 %v9961_v15, %v8082_v0 }
 0x354   :  { %6121 = vmatpush.bf16.msrb.mxu2 %v8697_v63  ;;  %v7914_v63 = vld [vmem:[#allocation14 + $0x144] sm:$0xf0] }
 0x355   :  { %v7917_v10 = vor.u32 %v9919_v6, %v7914_v63  ;;  %6136 = vmatmul.bf16.vlgmr.msrb.gmra.mxu3 %v10837_v18  ;;  %v8557_v6 = vor.u32 %v10083_v56, %v8556_v53  ;;  %v8838_v53 = vld [vmem:[#allocation14 + $0x87c] sm:$0xf0] }
 0x356   :  { %6180 = vmatpush.bf16.msra.mxu3 %v8197_v61  ;;  %6097 = vmatmul.bf16.vlgmr.msrb.gmra.mxu0 %v10825_v37  ;;  %v10244_v61 = vld [vmem:[#allocation14 + $0xb50] sm:$0xf0] }
 0x357   :  { %6141 = vmatpush.bf16.msra.mxu0 %v9313_v14  ;;  %6102 = vmatpush.bf16.msrb.mxu1 %v8641_v60  ;;  %v7802_v14 = vld [vmem:[#allocation14 + $0x64] sm:$0xf0]  ;;  %v9201_v60 = vor.u32 %v10244_v61, %v9200_v8  ;;  %v10045_v61 = vld [vmem:[#allocation14 + $0x51c] sm:$0xf] }
 0x358   :  { %6122 = vmatpush.bf16.msrb.mxu2 %v8669_v38  ;;  %v5800_v38 = vadd.f32 %v5799_v43, %v5787_v16  ;;  %6058 = vmatmul.bf16.vlgmr.msra.gmra.mxu1 %v10852_v12  ;;  %v7805_v5 = vor.u32 %v9891_v13, %v7802_v14  ;;  %v10917_v35 = vpop.f32.mrf.mxu3  ;;  %v10328_v14 = vld [vmem:[#allocation14 + $0xdf0] sm:$0xf0] }
 0x359   :  { %v5851_v16 = vpop.f32.mrf.mxu1  ;;  %v5892_v62 = vpop.f32.mrf.mxu0 }
 0x35a   :  { %v5813_v42 = vadd.f32 %v10884_v20, %v5800_v38  ;;  %6181 = vmatpush.bf16.msra.mxu3 %v8169_v25  ;;  %v10237_v38 = vld [vmem:[#allocation14 + $0xb18] sm:$0xf0] }
 0x35b   :  { %6123 = vmatmul.bf16.vlgmr.msrb.gmra.mxu2 %v10829_v59  ;;  %6142 = vmatpush.bf16.msra.mxu0 %v9285_v26  ;;  %v10069_v25 = vld [vmem:[#allocation14 + $0x5d8] sm:$0xf0]  ;;  %v9884_v26 = vld [vmem:[#allocation14 + $0x14] sm:$0xf] }
 0x35c   :  { %6167 = vmatpush.bf16.msra.mxu2 %v7973_v32  ;;  %v8584_v32 = vld [vmem:[#allocation14 + $0x668] sm:$0xf]  ;;  %6103 = vmatpush.bf16.msrb.mxu1 %v8613_v22  ;;  %v5826_v20 = vadd.f32 %v10886_v1, %v5813_v42  ;;  %v8866_v22 = vld [vmem:[#allocation14 + $0x8b4] sm:$0xf0]  ;;  %v7777_v40 = vor.u32 %v9884_v26, %v7774_v27  ;;  %v10230_v42 = vld [vmem:[#allocation14 + $0xae0] sm:$0xf0] }
 0x35d   :  { %v8585_v51 = vor.u32 %v10090_v39, %v8584_v32  ;;  %v9947_v32 = vld [vmem:[#allocation14 + $0x20c] sm:$0xf]  ;;  %v8501_v39 = vor.u32 %v10069_v25, %v8500_v23  ;;  %v8869_v45 = vor.u32 %v10157_v28, %v8866_v22  ;;  %v9145_v56 = vor.u32 %v10230_v42, %v9144_v41  ;;  %v10038_v25 = vld [vmem:[#allocation14 + $0x4e4] sm:$0xf]  ;;  %v8390_v26 = vld [vmem:[#allocation14 + $0x4fc] sm:$0xf0] }
 0x35e   :  { %6182 = vmatpush.bf16.msra.mxu3 %v8141_v44  ;;  %v10912_v43 = vpop.f32.mrf.mxu2  ;;  %v5839_v1 = vadd.f32 %v10898_v9, %v5826_v20  ;;  %v10223_v20 = vld [vmem:[#allocation14 + $0xaa8] sm:$0xf0]  ;;  %v10321_v27 = vld [vmem:[#allocation14 + $0xdb8] sm:$0xf0]  ;;  %v8782_v28 = vld [vmem:[#allocation14 + $0x80c] sm:$0xf0] }
 0x35f   :  { %6143 = vmatpush.bf16.msra.mxu0 %v9257_v21  ;;  %v8472_v21 = vld [vmem:[#allocation14 + $0x588] sm:$0xf]  ;;  %v10031_v42 = vld [vmem:[#allocation14 + $0x4ac] sm:$0xf] }
 0x360   :  { %6168 = vmatpush.bf16.msra.mxu2 %v7945_v2  ;;  %v9898_v2 = vld [vmem:[#allocation14 + $0x84] sm:$0xf]  ;;  %6104 = vmatpush.bf16.msrb.mxu1 %v8585_v51  ;;  %v5852_v19 = vadd.f32 %v5851_v16, %v5839_v1  ;;  %v8029_v51 = vor.u32 %v9947_v32, %v8026_v33  ;;  %v8473_v0 = vor.u32 %v10062_v54, %v8472_v21  ;;  %v10143_v1 = vld [vmem:[#allocation14 + $0x82c] sm:$0xf]  ;;  %v9034_v33 = vld [vmem:[#allocation14 + $0xa04] sm:$0xf0] }
 0x361   :  { %v7833_v63 = vor.u32 %v9898_v2, %v7830_v57  ;;  %v5853_v47 = vpop.f32.mrf.mxu1  ;;  %v8444_v2 = vld [vmem:[#allocation14 + $0x550] sm:$0xf]  ;;  %v10055_v57 = vld [vmem:[#allocation14 + $0x568] sm:$0xf0]  ;;  %v9117_v16 = vor.u32 %v10223_v20, %v9116_v55  ;;  %v9480_v41 = vld [vmem:[#allocation14 + $0xd68] sm:$0xf] }
 0x362   :  { %6183 = vmatpush.bf16.msra.mxu3 %v8113_v58  ;;  %10350 = vtanh.f32 %v5852_v19  ;;  %v9940_v58 = vld [vmem:[#allocation14 + $0x1d4] sm:$0xf]  ;;  %v8421_v19 = vor.u32 %v10045_v61, %v8418_v48  ;;  %v10199_v32 = vld [vmem:[#allocation14 + $0x9ec] sm:$0xf]  ;;  %v10129_v21 = vld [vmem:[#allocation14 + $0x7bc] sm:$0xf] }
 0x363   :  { %6144 = vmatpush.bf16.msra.mxu0 %v9229_v34  ;;  %v7998_v34 = vld [vmem:[#allocation14 + $0x1ec] sm:$0xf0]  ;;  %v8754_v54 = vld [vmem:[#allocation14 + $0x7d4] sm:$0xf0]  ;;  %v9037_v62 = vor.u32 %v10199_v32, %v9034_v33  ;;  %v10307_v20 = vld [vmem:[#allocation14 + $0xd48] sm:$0xf0] }
 0x364   :  { %6169 = vmatpush.bf16.msra.mxu2 %v7917_v10  ;;  %v9954_v10 = vld [vmem:[#allocation14 + $0x244] sm:$0xf]  ;;  %6105 = vmatpush.bf16.msrb.mxu1 %v8557_v6  ;;  %v9536_v6 = vld [vmem:[#allocation14 + $0xdd8] sm:$0xf]  ;;  %v8001_v13 = vor.u32 %v9940_v58, %v7998_v34  ;;  %v8757_v47 = vor.u32 %v10129_v21, %v8754_v54  ;;  %v8726_v34 = vld [vmem:[#allocation14 + $0x79c] sm:$0xf0] }
 0x365   :  { %v8057_v9 = vor.u32 %v9954_v10, %v8054_v17  ;;  %v5931_v10 = vpop.f32.mrf.mxu3  ;;  %v8445_v17 = vor.u32 %v10055_v57, %v8444_v2  ;;  %v9537_v23 = vor.u32 %v10328_v14, %v9536_v6  ;;  %v10024_v2 = vld [vmem:[#allocation14 + $0x474] sm:$0xf]  ;;  %v8334_v57 = vld [vmem:[#allocation14 + $0x48c] sm:$0xf0]  ;;  %v10122_v58 = vld [vmem:[#allocation14 + $0x784] sm:$0xf] }
 0x366   :  { %6184 = vmatpush.bf16.msra.mxu3 %v8085_v11  ;;  %v5918_v44 = vpop.f32.mrf.mxu2  ;;  %v8810_v11 = vld [vmem:[#allocation14 + $0x844] sm:$0xf0]  ;;  %v8337_v6 = vor.u32 %v10024_v2, %v8334_v57  ;;  %v8729_v61 = vor.u32 %v10122_v58, %v8726_v34  ;;  %v9424_v48 = vld [vmem:[#allocation14 + $0xcf8] sm:$0xf]  ;;  %v7976_v32 = vld [vmem:[#allocation14 + $0x1a0] sm:$0xf] }
 0x367   :  { %6145 = vmatpush.bf16.msra.mxu0 %v9201_v60  ;;  %v8362_v44 = vld [vmem:[#allocation14 + $0x4c4] sm:$0xf0]  ;;  %v8306_v14 = vld [vmem:[#allocation14 + $0x454] sm:$0xf0]  ;;  %v9937_v33 = vld [vmem:[#allocation14 + $0x1b8] sm:$0xf0] }
 0x368   :  { %6170 = vmatpush.bf16.msra.mxu2 %v7889_v31  ;;  %v9173_v31 = vor.u32 %v10237_v38, %v9172_v24  ;;  %6106 = vmatpush.bf16.msrb.mxu1 %v8529_v46  ;;  %v10351_v15 = vpop.eup %10350  ;;  %v10206_v46 = vld [vmem:[#allocation14 + $0xa24] sm:$0xf]  ;;  %v8813_v24 = vor.u32 %v10143_v1, %v8810_v11  ;;  %v9508_v38 = vld [vmem:[#allocation14 + $0xda0] sm:$0xf]  ;;  %v10300_v11 = vld [vmem:[#allocation14 + $0xd10] sm:$0xf0] }
 0x369   :  { %6383 = vst [vmem:[#allocation17 + $0x8] sm:$0xff] %v10351_v15  ;;  %v10003_v54 = vld [vmem:[#allocation14 + $0x3cc] sm:$0xf]  ;;  %v7948_v57 = vld [vmem:[#allocation14 + $0x168] sm:$0xf] }
 0x36a   :  { %6185 = vmatpush.bf16.msra.mxu3 %v8057_v9  ;;  %v10136_v9 = vld [vmem:[#allocation14 + $0x7f4] sm:$0xf] }
 0x36b   :  { %6146 = vmatpush.bf16.msra.mxu0 %v9173_v31  ;;  %v8393_v31 = vor.u32 %v10038_v25, %v8390_v26  ;;  %v9396_v25 = vld [vmem:[#allocation14 + $0xcc0] sm:$0xf]  ;;  %v10010_v26 = vld [vmem:[#allocation14 + $0x404] sm:$0xf] }
 0x36c   :  { %6171 = vmatpush.bf16.msra.mxu2 %v7861_v50  ;;  %v10150_v50 = vld [vmem:[#allocation14 + $0x864] sm:$0xf]  ;;  %6107 = vmatpush.bf16.msrb.mxu1 %v8501_v39  ;;  %v9509_v39 = vor.u32 %v10321_v27, %v9508_v38  ;;  %v8278_v27 = vld [vmem:[#allocation14 + $0x41c] sm:$0xf0] }
 0x36d   :  { %v8841_v8 = vor.u32 %v10150_v50, %v8838_v53  ;;  %v10192_v50 = vld [vmem:[#allocation14 + $0x9b4] sm:$0xf]  ;;  %v9006_v53 = vld [vmem:[#allocation14 + $0x9cc] sm:$0xf0] }
 0x36e   :  { %6186 = vmatpush.bf16.msra.mxu3 %v8029_v51  ;;  %v8365_v51 = vor.u32 %v10031_v42, %v8362_v44  ;;  %v9009_v15 = vor.u32 %v10192_v50, %v9006_v53  ;;  %v8922_v42 = vld [vmem:[#allocation14 + $0x924] sm:$0xf0]  ;;  %v7977_v53 = vor.u32 %v9937_v33, %v7976_v32  ;;  %v10262_v32 = vld [vmem:[#allocation14 + $0xbe4] sm:$0xf]  ;;  %v9286_v33 = vld [vmem:[#allocation14 + $0xbfc] sm:$0xf0] }
 0x36f   :  { %6147 = vmatpush.bf16.msra.mxu0 %v9145_v56  ;;  %v9452_v56 = vld [vmem:[#allocation14 + $0xd30] sm:$0xf] }
 0x370   :  { %6172 = vmatpush.bf16.msra.mxu2 %v7833_v63  ;;  %v10213_v63 = vld [vmem:[#allocation14 + $0xa5c] sm:$0xf]  ;;  %6108 = vmatpush.bf16.msrb.mxu1 %v8473_v0  ;;  %v3325_v0 = vperm.slane %v10850_v3, 6 }
 0x371   :  { %v9093_v60 = vor.u32 %v10213_v63, %v9090_v7  ;;  %v10185_v63 = vld [vmem:[#allocation14 + $0x97c] sm:$0xf]  ;;  %v8978_v7 = vld [vmem:[#allocation14 + $0x994] sm:$0xf0]  ;;  %v10924_v10 = vpop.f32.mrf.mxu0 }
 0x372   :  { %6187 = vmatpush.bf16.msra.mxu3 %v8001_v13  ;;  %v10017_v13 = vld [vmem:[#allocation14 + $0x43c] sm:$0xf]  ;;  %v10926_v3 = vpop.f32.mrf.mxu1 }
 0x373   :  { %6148 = vmatpush.bf16.msra.mxu0 %v9117_v16  ;;  %v10115_v16 = vld [vmem:[#allocation14 + $0x74c] sm:$0xf] }
 0x374   :  { %6173 = vmatpush.bf16.msra.mxu2 %v7805_v5  ;;  %v9062_v5 = vld [vmem:[#allocation14 + $0xa3c] sm:$0xf0]  ;;  %6109 = vmatpush.bf16.msrb.mxu1 %v8445_v17  ;;  %v8981_v17 = vor.u32 %v10185_v63, %v8978_v7  ;;  %v10164_v63 = vld [vmem:[#allocation14 + $0x8d4] sm:$0xf]  ;;  %v8894_v7 = vld [vmem:[#allocation14 + $0x8ec] sm:$0xf0] }
 0x375   :  { %v9065_v22 = vor.u32 %v10206_v46, %v9062_v5  ;;  %6188 = vmatmul.bf16.vlgmr.msra.gmra.mxu3 %v10804_v49  ;;  %v8309_v46 = vor.u32 %v10017_v13, %v8306_v14  ;;  %v10178_v5 = vld [vmem:[#allocation14 + $0x944] sm:$0xf]  ;;  %v9993_v13 = vld [vmem:[#allocation14 + $0x378] sm:$0xf0] }
 0x376   :  { %6232 = vmatpush.bf16.msrb.mxu3 %v9093_v60  ;;  %6149 = vmatmul.bf16.vlgmr.msra.gmra.mxu0 %v10843_v30  ;;  %v8698_v60 = vld [vmem:[#allocation14 + $0x764] sm:$0xf0] }
 0x377   :  { %6193 = vmatpush.bf16.msrb.mxu0 %v8421_v19  ;;  %6110 = vmatmul.bf16.vlgmr.msrb.gmra.mxu1 %v10821_v52  ;;  %v3339_v19 = vperm.slane %v3325_v0, 0  ;;  %v8701_v38 = vor.u32 %v10115_v16, %v8698_v60  ;;  %v10279_v0 = vld [vmem:[#allocation14 + $0xc68] sm:$0xf0]  ;;  %v9314_v16 = vld [vmem:[#allocation14 + $0xc34] sm:$0xf0]  ;;  %v8897_v60 = vor.u32 %v10164_v63, %v8894_v7 }
 0x378   :  { %6174 = vmatpush.bf16.msra.mxu2 %v7777_v40  ;;  %6154 = vmatpush.bf16.msra.mxu1 %v9537_v23  ;;  %v8785_v40 = vor.u32 %v10136_v9, %v8782_v28  ;;  %v8950_v23 = vld [vmem:[#allocation14 + $0x95c] sm:$0xf0]  ;;  %v10293_v9 = vld [vmem:[#allocation14 + $0xcd8] sm:$0xf0]  ;;  %v10108_v28 = vld [vmem:[#allocation14 + $0x714] sm:$0xf]  ;;  %v5981_v44 = vpop.f32.mrf.mxu3 }
 0x379   :  { %v9230_v63 = vld [vmem:[#allocation14 + $0xb8c] sm:$0xf0] }
 0x37a   :  { %6233 = vmatpush.bf16.msrb.mxu3 %v9065_v22  ;;  %v8670_v22 = vld [vmem:[#allocation14 + $0x72c] sm:$0xf0]  ;;  %v5905_v58 = vpop.f32.mrf.mxu1 }
 0x37b   :  { %6175 = vmatmul.bf16.vlgmr.msra.gmra.mxu2 %v10809_v4  ;;  %6194 = vmatpush.bf16.msrb.mxu0 %v8393_v31  ;;  %v8953_v31 = vor.u32 %v10178_v5, %v8950_v23  ;;  %v8673_v21 = vor.u32 %v10108_v28, %v8670_v22  ;;  %v9972_v58 = vld [vmem:[#allocation14 + $0x2d0] sm:$0xf0]  ;;  %v8558_v7 = vld [vmem:[#allocation14 + $0x64c] sm:$0xf0] }
 0x37c   :  { %6219 = vmatpush.bf16.msrb.mxu2 %v8869_v45  ;;  %v10314_v45 = vld [vmem:[#allocation14 + $0xd80] sm:$0xf0]  ;;  %6155 = vmatpush.bf16.msra.mxu1 %v9509_v39 }
 0x37d   :  { %v9481_v55 = vor.u32 %v10314_v45, %v9480_v41  ;;  %v10171_v41 = vld [vmem:[#allocation14 + $0x90c] sm:$0xf]  ;;  %v9397_v45 = vor.u32 %v10293_v9, %v9396_v25  ;;  %v5891_v9 = vadd.f32 %v10914_v36, %v10901_v29 }
 0x37e   :  { %6234 = vmatpush.bf16.msrb.mxu3 %v9037_v62  ;;  %v5968_v1 = vpop.f32.mrf.mxu2  ;;  %v8250_v62 = vld [vmem:[#allocation14 + $0x3e4] sm:$0xf0]  ;;  %v8925_v2 = vor.u32 %v10171_v41, %v8922_v42  ;;  %v9916_v41 = vld [vmem:[#allocation14 + $0x110] sm:$0xf0]  ;;  %v9979_v29 = vld [vmem:[#allocation14 + $0x308] sm:$0xf0] }
 0x37f   :  { %6195 = vmatpush.bf16.msrb.mxu0 %v8365_v51  ;;  %v5969_v39 = vadd.f32 %v5968_v1, %v3339_v19  ;;  %v8253_v34 = vor.u32 %v10003_v54, %v8250_v62  ;;  %v10101_v1 = vld [vmem:[#allocation14 + $0x6dc] sm:$0xf]  ;;  %v7920_v19 = vld [vmem:[#allocation14 + $0x130] sm:$0xf]  ;;  %v5904_v42 = vadd.f32 %v10926_v3, %v5891_v9  ;;  %v10087_v62 = vld [vmem:[#allocation14 + $0x66c] sm:$0xf] }
 0x380   :  { %6220 = vmatpush.bf16.msrb.mxu2 %v8841_v8  ;;  %6156 = vmatpush.bf16.msra.mxu1 %v9481_v55  ;;  %v9453_v8 = vor.u32 %v10307_v20, %v9452_v56  ;;  %v9368_v55 = vld [vmem:[#allocation14 + $0xc88] sm:$0xf]  ;;  %v5944_v56 = vpop.f32.mrf.mxu0  ;;  %v9930_v20 = vld [vmem:[#allocation14 + $0x180] sm:$0xf0] }
 0x381   :  { %v10928_v51 = vadd.f32 %v5981_v44, %v5969_v39  ;;  %v7949_v14 = vor.u32 %v9930_v20, %v7948_v57  ;;  %v8614_v39 = vld [vmem:[#allocation14 + $0x6bc] sm:$0xf0]  ;;  %v8586_v3 = vld [vmem:[#allocation14 + $0x684] sm:$0xf0]  ;;  %v5917_v56 = vadd.f32 %v10912_v43, %v5904_v42  ;;  %v8116_v20 = vld [vmem:[#allocation14 + $0x2b8] sm:$0xf] }
 0x382   :  { %6235 = vmatpush.bf16.msrb.mxu3 %v9009_v15  ;;  %v9340_v15 = vld [vmem:[#allocation14 + $0xc50] sm:$0xf]  ;;  %v8060_v9 = vld [vmem:[#allocation14 + $0x248] sm:$0xf]  ;;  %v7780_v42 = vld [vmem:[#allocation14 + $0x18] sm:$0xf] }
 0x383   :  { %6196 = vmatpush.bf16.msrb.mxu0 %v8337_v6  ;;  %v9996_v6 = vld [vmem:[#allocation14 + $0x394] sm:$0xf]  ;;  %v5930_v43 = vadd.f32 %v10917_v35, %v5917_v56 }
 0x384   :  { %6221 = vmatpush.bf16.msrb.mxu2 %v8813_v24  ;;  %6157 = vmatpush.bf16.msra.mxu1 %v9453_v8  ;;  %v9425_v24 = vor.u32 %v10300_v11, %v9424_v48  ;;  %v8200_v48 = vld [vmem:[#allocation14 + $0x360] sm:$0xf]  ;;  %v10269_v11 = vld [vmem:[#allocation14 + $0xc1c] sm:$0xf] }
 0x385   :  { %v8201_v23 = vor.u32 %v9993_v13, %v8200_v48  ;;  %v9317_v25 = vor.u32 %v10269_v11, %v9314_v16  ;;  %v8117_v48 = vor.u32 %v9972_v58, %v8116_v20  ;;  %v5943_v35 = vadd.f32 %v10924_v10, %v5930_v43  ;;  %v9888_v10 = vld [vmem:[#allocation14 + $0x30] sm:$0xf0]  ;;  %v8004_v43 = vld [vmem:[#allocation14 + $0x1d8] sm:$0xf] }
 0x386   :  { %6236 = vmatpush.bf16.msrb.mxu3 %v8981_v17  ;;  %v5970_v50 = vpop.f32.mrf.mxu2  ;;  %v8642_v17 = vld [vmem:[#allocation14 + $0x6f4] sm:$0xf0] }
 0x387   :  { %6197 = vmatpush.bf16.msrb.mxu0 %v8309_v46  ;;  %v9923_v46 = vld [vmem:[#allocation14 + $0x148] sm:$0xf0]  ;;  %v8645_v28 = vor.u32 %v10101_v1, %v8642_v17  ;;  %v9965_v1 = vld [vmem:[#allocation14 + $0x298] sm:$0xf0] }
 0x388   :  { %6222 = vmatpush.bf16.msrb.mxu2 %v8785_v40  ;;  %v8281_v40 = vor.u32 %v10010_v26, %v8278_v27  ;;  %6158 = vmatpush.bf16.msra.mxu1 %v9425_v24  ;;  %v5983_v24 = vpop.f32.mrf.mxu3  ;;  %v8172_v26 = vld [vmem:[#allocation14 + $0x328] sm:$0xf]  ;;  %v9986_v27 = vld [vmem:[#allocation14 + $0x340] sm:$0xf0]  ;;  %v7921_v22 = vor.u32 %v9923_v46, %v7920_v19  ;;  %v10255_v50 = vld [vmem:[#allocation14 + $0xbac] sm:$0xf] }
 0x389   :  { %v8173_v44 = vor.u32 %v9986_v27, %v8172_v26  ;;  %v10241_v17 = vld [vmem:[#allocation14 + $0xb3c] sm:$0xf]  ;;  %v9202_v19 = vld [vmem:[#allocation14 + $0xb54] sm:$0xf0]  ;;  %v9895_v24 = vld [vmem:[#allocation14 + $0x68] sm:$0xf0] }
 0x38a   :  { %6237 = vmatpush.bf16.msrb.mxu3 %v8953_v31  ;;  %v10094_v31 = vld [vmem:[#allocation14 + $0x6a4] sm:$0xf]  ;;  %v9205_v27 = vor.u32 %v10241_v17, %v9202_v19  ;;  %v8424_v17 = vld [vmem:[#allocation14 + $0x520] sm:$0xf]  ;;  %v10049_v19 = vld [vmem:[#allocation14 + $0x538] sm:$0xf0] }
 0x38b   :  { %6198 = vmatpush.bf16.msrb.mxu0 %v8281_v40  ;;  %v7892_v40 = vld [vmem:[#allocation14 + $0xf8] sm:$0xf]  ;;  %v8617_v36 = vor.u32 %v10094_v31, %v8614_v39  ;;  %v10234_v39 = vld [vmem:[#allocation14 + $0xb04] sm:$0xf] }
 0x38c   :  { %6223 = vmatpush.bf16.msrb.mxu2 %v8757_v47  ;;  %v10286_v47 = vld [vmem:[#allocation14 + $0xca0] sm:$0xf0]  ;;  %6159 = vmatpush.bf16.msra.mxu1 %v9397_v45  ;;  %v9289_v45 = vor.u32 %v10262_v32, %v9286_v33  ;;  %v7893_v54 = vor.u32 %v9916_v41, %v7892_v40  ;;  %v9174_v40 = vld [vmem:[#allocation14 + $0xb1c] sm:$0xf0] }
 0x38d   :  { %v9369_v8 = vor.u32 %v10286_v47, %v9368_v55  ;;  %v7864_v55 = vld [vmem:[#allocation14 + $0xc0] sm:$0xf]  ;;  %v9909_v47 = vld [vmem:[#allocation14 + $0xd8] sm:$0xf0]  ;;  %v10066_v33 = vld [vmem:[#allocation14 + $0x5c4] sm:$0xf] }
 0x38e   :  { %6238 = vmatpush.bf16.msrb.mxu3 %v8925_v2  ;;  %v8502_v41 = vld [vmem:[#allocation14 + $0x5dc] sm:$0xf0] }
 0x38f   :  { %6199 = vmatpush.bf16.msrb.mxu0 %v8253_v34  ;;  %v8589_v34 = vor.u32 %v10087_v62, %v8586_v3  ;;  %v10227_v3 = vld [vmem:[#allocation14 + $0xacc] sm:$0xf] }
 0x390   :  { %6224 = vmatpush.bf16.msrb.mxu2 %v8729_v61  ;;  %v8222_v61 = vld [vmem:[#allocation14 + $0x3ac] sm:$0xf0]  ;;  %6160 = vmatpush.bf16.msra.mxu1 %v9369_v8  ;;  %v7836_v8 = vld [vmem:[#allocation14 + $0x88] sm:$0xf] }
 0x391   :  { %v8225_v5 = vor.u32 %v9996_v6, %v8222_v61  ;;  %v10248_v6 = vld [vmem:[#allocation14 + $0xb74] sm:$0xf]  ;;  %v9902_v61 = vld [vmem:[#allocation14 + $0xa0] sm:$0xf0] }
 0x392   :  { %6239 = vmatpush.bf16.msrb.mxu3 %v8897_v60  ;;  %v9233_v13 = vor.u32 %v10248_v6, %v9230_v63  ;;  %v7837_v16 = vor.u32 %v9902_v61, %v7836_v8  ;;  %v10073_v60 = vld [vmem:[#allocation14 + $0x5fc] sm:$0xf]  ;;  %v5955_v26 = vpop.f32.mrf.mxu1  ;;  %v8446_v8 = vld [vmem:[#allocation14 + $0x56c] sm:$0xf0] }
 0x393   :  { %6200 = vmatpush.bf16.msrb.mxu0 %v8225_v5  ;;  %v8530_v5 = vld [vmem:[#allocation14 + $0x614] sm:$0xf0]  ;;  %v9118_v61 = vld [vmem:[#allocation14 + $0xaac] sm:$0xf0] }
 0x394   :  { %6225 = vmatpush.bf16.msrb.mxu2 %v8701_v38  ;;  %v9341_v38 = vor.u32 %v10279_v0, %v9340_v15  ;;  %v7865_v15 = vor.u32 %v9909_v47, %v7864_v55  ;;  %v10080_v0 = vld [vmem:[#allocation14 + $0x634] sm:$0xf]  ;;  %v8533_v31 = vor.u32 %v10073_v60, %v8530_v5  ;;  %v9146_v55 = vld [vmem:[#allocation14 + $0xae4] sm:$0xf0] }
 0x395   :  { %6240 = vmatmul.bf16.vlgmr.msrb.gmra.mxu3 %v10837_v18  ;;  %v8561_v11 = vor.u32 %v10080_v0, %v8558_v7  ;;  %v10220_v0 = vld [vmem:[#allocation14 + $0xa94] sm:$0xf]  ;;  %v9149_v63 = vor.u32 %v10227_v3, %v9146_v55  ;;  %v10035_v3 = vld [vmem:[#allocation14 + $0x4c8] sm:$0xf0]  ;;  %v9482_v55 = vld [vmem:[#allocation14 + $0xd84] sm:$0xf0] }
 0x396   :  { %6284 = vmatpush.bf16.msra.mxu3 %v8201_v23  ;;  %6161 = vmatpush.bf16.msra.mxu1 %v9341_v38  ;;  %v7808_v23 = vld [vmem:[#allocation14 + $0x50] sm:$0xf]  ;;  %v10942_v38 = vpop.f32.mrf.mxu0  ;;  %v10052_v7 = vld [vmem:[#allocation14 + $0x554] sm:$0xf] }
 0x397   :  { %6245 = vmatpush.bf16.msra.mxu0 %v9317_v25  ;;  %v7809_v32 = vor.u32 %v9895_v24, %v7808_v23  ;;  %v9538_v23 = vld [vmem:[#allocation14 + $0xdf4] sm:$0xf0]  ;;  %v8816_v24 = vld [vmem:[#allocation14 + $0x830] sm:$0xf] }
 0x398   :  { %6226 = vmatpush.bf16.msrb.mxu2 %v8673_v21  ;;  %v8144_v21 = vld [vmem:[#allocation14 + $0x2f0] sm:$0xf]  ;;  %6201 = vmatmul.bf16.vlgmr.msrb.gmra.mxu0 %v10825_v37  ;;  %v10944_v62 = vpop.f32.mrf.mxu3 }
 0x399   :  { %6162 = vmatmul.bf16.vlgmr.msra.gmra.mxu1 %v10852_v12  ;;  %v8145_v2 = vor.u32 %v9979_v29, %v8144_v21  ;;  %v10161_v21 = vld [vmem:[#allocation14 + $0x8b8] sm:$0xf0]  ;;  %v9177_v29 = vor.u32 %v10234_v39, %v9174_v40  ;;  %v10318_v39 = vld [vmem:[#allocation14 + $0xda4] sm:$0xf]  ;;  %v8396_v40 = vld [vmem:[#allocation14 + $0x4e8] sm:$0xf] }
 0x39a   :  { %6206 = vmatpush.bf16.msrb.mxu1 %v8645_v28  ;;  %6285 = vmatpush.bf16.msra.mxu3 %v8173_v44  ;;  %v9958_v28 = vld [vmem:[#allocation14 + $0x260] sm:$0xf0]  ;;  %v5957_v6 = vpop.f32.mrf.mxu1 }
 0x39b   :  { %6227 = vmatmul.bf16.vlgmr.msrb.gmra.mxu2 %v10829_v59  ;;  %6246 = vmatpush.bf16.msra.mxu0 %v9289_v45  ;;  %v8061_v44 = vor.u32 %v9958_v28, %v8060_v9  ;;  %v8872_v45 = vld [vmem:[#allocation14 + $0x8a0] sm:$0xf]  ;;  %v8449_v9 = vor.u32 %v10052_v7, %v8446_v8  ;;  %v8425_v28 = vor.u32 %v10049_v19, %v8424_v17  ;;  %v10028_v7 = vld [vmem:[#allocation14 + $0x490] sm:$0xf0]  ;;  %v9454_v8 = vld [vmem:[#allocation14 + $0xd4c] sm:$0xf0] }
 0x39c   :  { %6271 = vmatpush.bf16.msra.mxu2 %v7977_v53  ;;  %v9258_v53 = vld [vmem:[#allocation14 + $0xbc4] sm:$0xf0]  ;;  %v8873_v56 = vor.u32 %v10161_v21, %v8872_v45  ;;  %v9040_v21 = vld [vmem:[#allocation14 + $0x9f0] sm:$0xf]  ;;  %v10297_v17 = vld [vmem:[#allocation14 + $0xcfc] sm:$0xf] }
 0x39d   :  { %v9261_v57 = vor.u32 %v10255_v50, %v9258_v53  ;;  %v8505_v50 = vor.u32 %v10066_v33, %v8502_v41  ;;  %v7781_v53 = vor.u32 %v9888_v10, %v7780_v42  ;;  %v10042_v41 = vld [vmem:[#allocation14 + $0x500] sm:$0xf0]  ;;  %v9510_v42 = vld [vmem:[#allocation14 + $0xdbc] sm:$0xf0]  ;;  %v8788_v10 = vld [vmem:[#allocation14 + $0x7f8] sm:$0xf] }
 0x39e   :  { %6207 = vmatpush.bf16.msrb.mxu1 %v8617_v36  ;;  %6286 = vmatpush.bf16.msra.mxu3 %v8145_v2  ;;  %v10939_v46 = vpop.f32.mrf.mxu2  ;;  %v8032_v36 = vld [vmem:[#allocation14 + $0x210] sm:$0xf]  ;;  %v10059_v2 = vld [vmem:[#allocation14 + $0x58c] sm:$0xf]  ;;  %v5996_v20 = vpop.f32.mrf.mxu0  ;;  %v8397_v45 = vor.u32 %v10042_v41, %v8396_v40  ;;  %v8312_v19 = vld [vmem:[#allocation14 + $0x440] sm:$0xf] }
 0x39f   :  { %6247 = vmatpush.bf16.msra.mxu0 %v9261_v57  ;;  %v8474_v57 = vld [vmem:[#allocation14 + $0x5a4] sm:$0xf0]  ;;  %v10362_v20 = vld [vmem:[#allocation16] sm:$0x7f] }
 0x3a0   :  { %6272 = vmatpush.bf16.msra.mxu2 %v7949_v14  ;;  %v8088_v14 = vld [vmem:[#allocation14 + $0x280] sm:$0xf]  ;;  %v10290_v40 = vld [vmem:[#allocation14 + $0xcc4] sm:$0xf]  ;;  %v8284_v41 = vld [vmem:[#allocation14 + $0x408] sm:$0xf] }
 0x3a1   :  { %v8089_v25 = vor.u32 %v9965_v1, %v8088_v14  ;;  %v8477_v14 = vor.u32 %v10059_v2, %v8474_v57  ;;  %v10325_v1 = vld [vmem:[#allocation14 + $0xddc] sm:$0xf] }
 0x3a2   :  { %6208 = vmatpush.bf16.msrb.mxu1 %v8589_v34  ;;  %6287 = vmatpush.bf16.msra.mxu3 %v8117_v48  ;;  %v8844_v34 = vld [vmem:[#allocation14 + $0x868] sm:$0xf]  ;;  %v9944_v48 = vld [vmem:[#allocation14 + $0x1f0] sm:$0xf0] }
 0x3a3   :  { %6248 = vmatpush.bf16.msra.mxu0 %v9233_v13  ;;  %v8005_v5 = vor.u32 %v9944_v48, %v8004_v43  ;;  %v10126_v43 = vld [vmem:[#allocation14 + $0x7a0] sm:$0xf0] }
 0x3a4   :  { %6273 = vmatpush.bf16.msra.mxu2 %v7921_v22  ;;  %v5956_v22 = vadd.f32 %v5955_v26, %v5943_v35  ;;  %v10147_v35 = vld [vmem:[#allocation14 + $0x848] sm:$0xf0] }
 0x3a5   :  { %v8817_v33 = vor.u32 %v10147_v35, %v8816_v24  ;;  %v9426_v24 = vld [vmem:[#allocation14 + $0xd14] sm:$0xf0]  ;;  %v8704_v35 = vld [vmem:[#allocation14 + $0x750] sm:$0xf] }
 0x3a6   :  { %6209 = vmatpush.bf16.msrb.mxu1 %v8561_v11  ;;  %10352 = vtanh.f32 %v5956_v22  ;;  %6288 = vmatpush.bf16.msra.mxu3 %v8089_v25  ;;  %v6022_v47 = vpop.f32.mrf.mxu2  ;;  %v9096_v11 = vld [vmem:[#allocation14 + $0xa60] sm:$0xf]  ;;  %v9121_v25 = vor.u32 %v10220_v0, %v9118_v61  ;;  %v9068_v22 = vld [vmem:[#allocation14 + $0xa28] sm:$0xf] }
 0x3a7   :  { %6249 = vmatpush.bf16.msra.mxu0 %v9205_v27  ;;  %v6035_v27 = vpop.f32.mrf.mxu3  ;;  %v8760_v47 = vld [vmem:[#allocation14 + $0x7c0] sm:$0xf]  ;;  %v8732_v61 = vld [vmem:[#allocation14 + $0x788] sm:$0xf] }
 0x3a8   :  { %6274 = vmatpush.bf16.msra.mxu2 %v7893_v54  ;;  %v9951_v54 = vld [vmem:[#allocation14 + $0x228] sm:$0xf0] }
 0x3a9   :  { %v8033_v58 = vor.u32 %v9951_v54, %v8032_v36  ;;  %v9513_v36 = vor.u32 %v10318_v39, %v9510_v42  ;;  %v10014_v42 = vld [vmem:[#allocation14 + $0x420] sm:$0xf0] }
 0x3aa   :  { %6210 = vmatpush.bf16.msrb.mxu1 %v8533_v31  ;;  %6289 = vmatpush.bf16.msra.mxu3 %v8061_v44  ;;  %v10210_v31 = vld [vmem:[#allocation14 + $0xa40] sm:$0xf0]  ;;  %v10140_v44 = vld [vmem:[#allocation14 + $0x810] sm:$0xf0] }
 0x3ab   :  { %6250 = vmatpush.bf16.msra.mxu0 %v9177_v29  ;;  %v10203_v29 = vld [vmem:[#allocation14 + $0xa08] sm:$0xf0]  ;;  %v8789_v54 = vor.u32 %v10140_v44, %v8788_v10  ;;  %v9398_v10 = vld [vmem:[#allocation14 + $0xcdc] sm:$0xf0]  ;;  %v8676_v44 = vld [vmem:[#allocation14 + $0x718] sm:$0xf] }
 0x3ac   :  { %6275 = vmatpush.bf16.msra.mxu2 %v7865_v15  ;;  %v10154_v15 = vld [vmem:[#allocation14 + $0x880] sm:$0xf0]  ;;  %v10353_v13 = vpop.eup %10352  ;;  %v9041_v2 = vor.u32 %v10203_v29, %v9040_v21  ;;  %v8285_v29 = vor.u32 %v10014_v42, %v8284_v41  ;;  %v9236_v41 = vld [vmem:[#allocation14 + $0xb78] sm:$0xf]  ;;  %v10252_v42 = vld [vmem:[#allocation14 + $0xb90] sm:$0xf0] }
 0x3ad   :  { %6384 = vst [vmem:[#allocation17 + $0x10] sm:$0xff] %v10353_v13  ;;  %v8845_v60 = vor.u32 %v10154_v15, %v8844_v34  ;;  %v9012_v34 = vld [vmem:[#allocation14 + $0x9b8] sm:$0xf]  ;;  %v10196_v15 = vld [vmem:[#allocation14 + $0x9d0] sm:$0xf0] }
 0x3ae   :  { %6211 = vmatpush.bf16.msrb.mxu1 %v8505_v50  ;;  %6290 = vmatpush.bf16.msra.mxu3 %v8033_v58  ;;  %v10311_v50 = vld [vmem:[#allocation14 + $0xd6c] sm:$0xf]  ;;  %v10950_v58 = vunpack.c.h.bf16 %v10362_v20  ;;  %v9013_v48 = vor.u32 %v10196_v15, %v9012_v34  ;;  %v9370_v20 = vld [vmem:[#allocation14 + $0xca4] sm:$0xf0] }
 0x3af   :  { %6251 = vmatpush.bf16.msra.mxu0 %v9149_v63  ;;  %v9485_v0 = vor.u32 %v10311_v50, %v9482_v55  ;;  %v10304_v63 = vld [vmem:[#allocation14 + $0xd34] sm:$0xf]  ;;  %v8256_v55 = vld [vmem:[#allocation14 + $0x3d0] sm:$0xf] }
 0x3b0   :  { %6276 = vmatpush.bf16.msra.mxu2 %v7837_v16  ;;  %v10217_v16 = vld [vmem:[#allocation14 + $0xa78] sm:$0xf0]  ;;  %v3326_v13 = vperm.slane %v10950_v58, 0 }
 0x3b1   :  { %v9097_v26 = vor.u32 %v10217_v16, %v9096_v11  ;;  %v10189_v11 = vld [vmem:[#allocation14 + $0x998] sm:$0xf0]  ;;  %v9457_v16 = vor.u32 %v10304_v63, %v9454_v8  ;;  %v8900_v63 = vld [vmem:[#allocation14 + $0x8d8] sm:$0xf]  ;;  %v10276_v8 = vld [vmem:[#allocation14 + $0xc54] sm:$0xf] }
 0x3b2   :  { %6212 = vmatpush.bf16.msrb.mxu1 %v8477_v14  ;;  %6291 = vmatpush.bf16.msra.mxu3 %v8005_v5  ;;  %v10021_v5 = vld [vmem:[#allocation14 + $0x458] sm:$0xf0] }
 0x3b3   :  { %6252 = vmatpush.bf16.msra.mxu0 %v9121_v25  ;;  %v10119_v25 = vld [vmem:[#allocation14 + $0x768] sm:$0xf0] }
 0x3b4   :  { %6277 = vmatpush.bf16.msra.mxu2 %v7809_v32  ;;  %v9541_v32 = vor.u32 %v10325_v1, %v9538_v23  ;;  %v8984_v1 = vld [vmem:[#allocation14 + $0x980] sm:$0xf]  ;;  %v8705_v39 = vor.u32 %v10119_v25, %v8704_v35  ;;  %v9292_v35 = vld [vmem:[#allocation14 + $0xbe8] sm:$0xf]  ;;  %v10266_v25 = vld [vmem:[#allocation14 + $0xc00] sm:$0xf0] }
 0x3b5   :  { %6292 = vmatmul.bf16.vlgmr.msra.gmra.mxu3 %v10804_v49  ;;  %v8340_v49 = vld [vmem:[#allocation14 + $0x478] sm:$0xf]  ;;  %v8985_v27 = vor.u32 %v10189_v11, %v8984_v1  ;;  %v8648_v11 = vld [vmem:[#allocation14 + $0x6e0] sm:$0xf] }
 0x3b6   :  { %6336 = vmatpush.bf16.msrb.mxu3 %v9097_v26  ;;  %6213 = vmatpush.bf16.msrb.mxu1 %v8449_v9  ;;  %v8341_v14 = vor.u32 %v10028_v7, %v8340_v49  ;;  %v10953_v26 = vpop.f32.mrf.mxu0  ;;  %v3340_v9 = vperm.slane %v3326_v13, 0  ;;  %v10168_v49 = vld [vmem:[#allocation14 + $0x8f0] sm:$0xf0]  ;;  %v9320_v13 = vld [vmem:[#allocation14 + $0xc20] sm:$0xf] }
 0x3b7   :  { %6297 = vmatpush.bf16.msrb.mxu0 %v8425_v28  ;;  %v10955_v28 = vpop.f32.mrf.mxu1  ;;  %v8901_v1 = vor.u32 %v10168_v49, %v8900_v63  ;;  %v8480_v49 = vld [vmem:[#allocation14 + $0x590] sm:$0xf] }
 0x3b8   :  { %6278 = vmatpush.bf16.msra.mxu2 %v7781_v53  ;;  %v8368_v53 = vld [vmem:[#allocation14 + $0x4b0] sm:$0xf]  ;;  %6253 = vmatmul.bf16.vlgmr.msra.gmra.mxu0 %v10843_v30  ;;  %v6085_v50 = vpop.f32.mrf.mxu3 }
 0x3b9   :  { %6214 = vmatmul.bf16.vlgmr.msrb.gmra.mxu1 %v10821_v52  ;;  %v8369_v57 = vor.u32 %v10035_v3, %v8368_v53  ;;  %v9401_v53 = vor.u32 %v10290_v40, %v9398_v10  ;;  %v8564_v10 = vld [vmem:[#allocation14 + $0x638] sm:$0xf] }
 0x3ba   :  { %6258 = vmatpush.bf16.msra.mxu1 %v9541_v32  ;;  %v10182_v32 = vld [vmem:[#allocation14 + $0x960] sm:$0xf0] }
 0x3bb   :  { %6279 = vmatmul.bf16.vlgmr.msra.gmra.mxu2 %v10809_v4  ;;  %v9069_v4 = vor.u32 %v10210_v31, %v9068_v22  ;;  %6298 = vmatpush.bf16.msrb.mxu0 %v8397_v45  ;;  %v8313_v22 = vor.u32 %v10021_v5, %v8312_v19  ;;  %v8956_v31 = vld [vmem:[#allocation14 + $0x948] sm:$0xf] }
 0x3bc   :  { %6323 = vmatpush.bf16.msrb.mxu2 %v8873_v56  ;;  %v10133_v56 = vld [vmem:[#allocation14 + $0x7d8] sm:$0xf0]  ;;  %v8957_v45 = vor.u32 %v10182_v32, %v8956_v31  ;;  %v9264_v32 = vld [vmem:[#allocation14 + $0xbb0] sm:$0xf] }
 0x3bd   :  { %6337 = vmatpush.bf16.msrb.mxu3 %v9069_v4  ;;  %v8761_v6 = vor.u32 %v10133_v56, %v8760_v47  ;;  %v10112_v4 = vld [vmem:[#allocation14 + $0x730] sm:$0xf0]  ;;  %v10007_v47 = vld [vmem:[#allocation14 + $0x3e8] sm:$0xf0] }
 0x3be   :  { %6259 = vmatpush.bf16.msra.mxu1 %v9513_v36  ;;  %v6072_v23 = vpop.f32.mrf.mxu2  ;;  %v8928_v36 = vld [vmem:[#allocation14 + $0x910] sm:$0xf]  ;;  %v8677_v3 = vor.u32 %v10112_v4, %v8676_v44  ;;  %v6048_v34 = vpop.f32.mrf.mxu0  ;;  %v10084_v44 = vld [vmem:[#allocation14 + $0x650] sm:$0xf0]  ;;  %v9237_v4 = vor.u32 %v10252_v42, %v9236_v41 }
 0x3bf   :  { %6299 = vmatpush.bf16.msrb.mxu0 %v8369_v57  ;;  %v6073_v21 = vadd.f32 %v6072_v23, %v3340_v9  ;;  %v10283_v57 = vld [vmem:[#allocation14 + $0xc8c] sm:$0xf]  ;;  %v5995_v23 = vadd.f32 %v10942_v38, %v10928_v51  ;;  %v10098_v9 = vld [vmem:[#allocation14 + $0x6c0] sm:$0xf0]  ;;  %v8592_v51 = vld [vmem:[#allocation14 + $0x670] sm:$0xf] }
 0x3c0   :  { %6324 = vmatpush.bf16.msrb.mxu2 %v8845_v60  ;;  %v8733_v60 = vor.u32 %v10126_v43, %v8732_v61  ;;  %v9373_v7 = vor.u32 %v10283_v57, %v9370_v20  ;;  %v8228_v61 = vld [vmem:[#allocation14 + $0x398] sm:$0xf]  ;;  %v10000_v43 = vld [vmem:[#allocation14 + $0x3b0] sm:$0xf0]  ;;  %v10091_v38 = vld [vmem:[#allocation14 + $0x688] sm:$0xf0] }
 0x3c1   :  { %6338 = vmatpush.bf16.msrb.mxu3 %v9041_v2  ;;  %v10957_v56 = vadd.f32 %v6085_v50, %v6073_v21  ;;  %v8593_v40 = vor.u32 %v10091_v38, %v8592_v51  ;;  %v10245_v21 = vld [vmem:[#allocation14 + $0xb58] sm:$0xf0]  ;;  %v8508_v57 = vld [vmem:[#allocation14 + $0x5c8] sm:$0xf]  ;;  %v10070_v20 = vld [vmem:[#allocation14 + $0x5e0] sm:$0xf0] }
 0x3c2   :  { %6260 = vmatpush.bf16.msra.mxu1 %v9485_v0  ;;  %v6009_v0 = vpop.f32.mrf.mxu1 }
 0x3c3   :  { %6300 = vmatpush.bf16.msrb.mxu0 %v8341_v14  ;;  %v10273_v14 = vld [vmem:[#allocation14 + $0xc38] sm:$0xf0]  ;;  %v8509_v0 = vor.u32 %v10070_v20, %v8508_v57 }
 0x3c4   :  { %6325 = vmatpush.bf16.msrb.mxu2 %v8817_v33  ;;  %v9429_v33 = vor.u32 %v10297_v17, %v9426_v24  ;;  %v6087_v17 = vpop.f32.mrf.mxu3  ;;  %v9321_v5 = vor.u32 %v10273_v14, %v9320_v13  ;;  %v9124_v14 = vld [vmem:[#allocation14 + $0xa98] sm:$0xf] }
 0x3c5   :  { %6339 = vmatpush.bf16.msrb.mxu3 %v9013_v48  ;;  %v9342_v48 = vld [vmem:[#allocation14 + $0xc6c] sm:$0xf0]  ;;  %v10329_v17 = vld [vmem:[#allocation14 + $0xdf8] sm:$0xf0] }
 0x3c6   :  { %6261 = vmatpush.bf16.msra.mxu1 %v9457_v16  ;;  %v6074_v2 = vpop.f32.mrf.mxu2  ;;  %v10105_v16 = vld [vmem:[#allocation14 + $0x6f8] sm:$0xf0]  ;;  %v9345_v19 = vor.u32 %v10276_v8, %v9342_v48 }
 0x3c7   :  { %6301 = vmatpush.bf16.msrb.mxu0 %v8313_v22  ;;  %v8649_v24 = vor.u32 %v10105_v16, %v8648_v11  ;;  %v6008_v22 = vadd.f32 %v10955_v28, %v5995_v23  ;;  %v10238_v2 = vld [vmem:[#allocation14 + $0xb20] sm:$0xf0]  ;;  %v8452_v11 = vld [vmem:[#allocation14 + $0x558] sm:$0xf]  ;;  %v10056_v16 = vld [vmem:[#allocation14 + $0x570] sm:$0xf0] }
 0x3c8   :  { %6326 = vmatpush.bf16.msrb.mxu2 %v8789_v54  ;;  %v10175_v54 = vld [vmem:[#allocation14 + $0x928] sm:$0xf0]  ;;  %v8453_v23 = vor.u32 %v10056_v16, %v8452_v11 }
 0x3c9   :  { %6340 = vmatpush.bf16.msrb.mxu3 %v8985_v27  ;;  %v8929_v15 = vor.u32 %v10175_v54, %v8928_v36  ;;  %v8620_v27 = vld [vmem:[#allocation14 + $0x6a8] sm:$0xf]  ;;  %v10077_v36 = vld [vmem:[#allocation14 + $0x618] sm:$0xf0] }
 0x3ca   :  { %6262 = vmatpush.bf16.msra.mxu1 %v9429_v33  ;;  %v8621_v31 = vor.u32 %v10098_v9, %v8620_v27  ;;  %v10259_v33 = vld [vmem:[#allocation14 + $0xbc8] sm:$0xf0]  ;;  %v9488_v9 = vld [vmem:[#allocation14 + $0xd70] sm:$0xf] }
 0x3cb   :  { %6302 = vmatpush.bf16.msrb.mxu0 %v8285_v29  ;;  %v9265_v28 = vor.u32 %v10259_v33, %v9264_v32  ;;  %v10308_v32 = vld [vmem:[#allocation14 + $0xd50] sm:$0xf0]  ;;  %v3327_v33 = vperm.slane %v10950_v58, 2 }
 0x3cc   :  { %6327 = vmatpush.bf16.msrb.mxu2 %v8761_v6  ;;  %v8257_v6 = vor.u32 %v10007_v47, %v8256_v55  ;;  %v9180_v47 = vld [vmem:[#allocation14 + $0xb08] sm:$0xf] }
 0x3cd   :  { %6341 = vmatpush.bf16.msrb.mxu3 %v8957_v45  ;;  %v9208_v45 = vld [vmem:[#allocation14 + $0xb40] sm:$0xf]  ;;  %v9181_v34 = vor.u32 %v10238_v2, %v9180_v47  ;;  %v3341_v41 = vperm.slane %v3327_v33, 0 }
 0x3ce   :  { %6263 = vmatpush.bf16.msra.mxu1 %v9401_v53 }
 0x3cf   :  { %6303 = vmatpush.bf16.msrb.mxu0 %v8257_v6  ;;  %v10231_v6 = vld [vmem:[#allocation14 + $0xae8] sm:$0xf0] }
 0x3d0   :  { %6328 = vmatpush.bf16.msrb.mxu2 %v8733_v60  ;;  %v8229_v60 = vor.u32 %v10000_v43, %v8228_v61 }
 0x3d1   :  { %6342 = vmatpush.bf16.msrb.mxu3 %v8929_v15 }
 0x3d2   :  { %6264 = vmatpush.bf16.msra.mxu1 %v9373_v7  ;;  %v10063_v7 = vld [vmem:[#allocation14 + $0x5a8] sm:$0xf0] }
 0x3d3   :  { %6304 = vmatpush.bf16.msrb.mxu0 %v8229_v60  ;;  %v10971_v50 = vpop.f32.mrf.mxu0  ;;  %v8481_v13 = vor.u32 %v10063_v7, %v8480_v49  ;;  %v9544_v60 = vld [vmem:[#allocation14 + $0xde0] sm:$0xf] }
 0x3d4   :  { %6329 = vmatpush.bf16.msrb.mxu2 %v8705_v39  ;;  %v6021_v39 = vadd.f32 %v10939_v46, %v6008_v22  ;;  %v8536_v46 = vld [vmem:[#allocation14 + $0x600] sm:$0xf]  ;;  %v10315_v22 = vld [vmem:[#allocation14 + $0xd88] sm:$0xf0]  ;;  %v6099_v2 = vadd.f32 %v10971_v50, %v10957_v56  ;;  %v3328_v50 = vperm.slane %v10950_v58, 4 }
 0x3d5   :  { %6343 = vmatpush.bf16.msrb.mxu3 %v8901_v1  ;;  %v6059_v53 = vpop.f32.mrf.mxu1  ;;  %v10224_v1 = vld [vmem:[#allocation14 + $0xab0] sm:$0xf0] }
 0x3d6   :  { %6265 = vmatpush.bf16.msra.mxu1 %v9345_v19  ;;  %6305 = vmatmul.bf16.vlgmr.msrb.gmra.mxu0 %v10825_v37  ;;  %v8565_v37 = vor.u32 %v10084_v44, %v8564_v10  ;;  %v9125_v19 = vor.u32 %v10224_v1, %v9124_v14  ;;  %v9404_v10 = vld [vmem:[#allocation14 + $0xcc8] sm:$0xf]  ;;  %v10294_v44 = vld [vmem:[#allocation14 + $0xce0] sm:$0xf0] }
 0x3d7   :  { %6349 = vmatpush.bf16.msra.mxu0 %v9321_v5 }
 0x3d8   :  { %6330 = vmatpush.bf16.msrb.mxu2 %v8677_v3  ;;  %6344 = vmatmul.bf16.vlgmr.msrb.gmra.mxu3 %v10837_v18  ;;  %v6034_v18 = vadd.f32 %v10944_v62, %v6021_v39  ;;  %v9209_v3 = vor.u32 %v10245_v21, %v9208_v45  ;;  %v8537_v62 = vor.u32 %v10077_v36, %v8536_v46  ;;  %v10973_v15 = vpop.f32.mrf.mxu3  ;;  %v9432_v39 = vld [vmem:[#allocation14 + $0xd00] sm:$0xf]  ;;  %v9376_v21 = vld [vmem:[#allocation14 + $0xc90] sm:$0xf]  ;;  %v10287_v46 = vld [vmem:[#allocation14 + $0xca8] sm:$0xf0] }
 0x3d9   :  { %6266 = vmatmul.bf16.vlgmr.msra.gmra.mxu1 %v10852_v12 }
 0x3da   :  { %6310 = vmatpush.bf16.msrb.mxu1 %v8649_v24  ;;  %v6047_v54 = vadd.f32 %v10953_v26, %v6034_v18  ;;  %v9152_v26 = vld [vmem:[#allocation14 + $0xad0] sm:$0xf]  ;;  %v9545_v24 = vor.u32 %v10329_v17, %v9544_v60 }
 0x3db   :  { %6331 = vmatmul.bf16.vlgmr.msrb.gmra.mxu2 %v10829_v59  ;;  %v9293_v59 = vor.u32 %v10266_v25, %v9292_v35  ;;  %v6100_v8 = vpop.f32.mrf.mxu0  ;;  %v9153_v43 = vor.u32 %v10231_v6, %v9152_v26  ;;  %v9516_v35 = vld [vmem:[#allocation14 + $0xda8] sm:$0xf]  ;;  %v10322_v25 = vld [vmem:[#allocation14 + $0xdc0] sm:$0xf0] }
 0x3dc   :  { %v6060_v55 = vadd.f32 %v6059_v53, %v6047_v54  ;;  %v9517_v27 = vor.u32 %v10322_v25, %v9516_v35  ;;  %v9377_v53 = vor.u32 %v10287_v46, %v9376_v21 }
 0x3dd   :  { %6350 = vmatpush.bf16.msra.mxu0 %v9293_v59  ;;  %v6061_v61 = vpop.f32.mrf.mxu1  ;;  %v9489_v59 = vor.u32 %v10315_v22, %v9488_v9 }
 0x3de   :  { %6311 = vmatpush.bf16.msrb.mxu1 %v8621_v31  ;;  %v10968_v29 = vpop.f32.mrf.mxu2  ;;  %10354 = vtanh.f32 %v6060_v55  ;;  %v9460_v31 = vld [vmem:[#allocation14 + $0xd38] sm:$0xf]  ;;  %v10280_v55 = vld [vmem:[#allocation14 + $0xc70] sm:$0xf0] }
 0x3df   :  { %v9461_v51 = vor.u32 %v10308_v32, %v9460_v31 }
 0x3e0   :  { %v6139_v5 = vpop.f32.mrf.mxu3 }
 0x3e1   :  { %6351 = vmatpush.bf16.msra.mxu0 %v9265_v28  ;;  %v10301_v28 = vld [vmem:[#allocation14 + $0xd18] sm:$0xf0] }
 0x3e2   :  { %6312 = vmatpush.bf16.msrb.mxu1 %v8593_v40 }
 0x3e4   :  { %v10355_v48 = vpop.eup %10354 }
 0x3e5   :  { %6352 = vmatpush.bf16.msra.mxu0 %v9237_v4  ;;  %6385 = vst [vmem:[#allocation17 + $0x18] sm:$0xff] %v10355_v48  ;;  %v9405_v4 = vor.u32 %v10294_v44, %v9404_v10 }
 0x3e6   :  { %6313 = vmatpush.bf16.msrb.mxu1 %v8565_v37  ;;  %v6126_v63 = vpop.f32.mrf.mxu2 }
 0x3e9   :  { %6353 = vmatpush.bf16.msra.mxu0 %v9209_v3  ;;  %v9348_v3 = vld [vmem:[#allocation14 + $0xc58] sm:$0xf] }
 0x3ea   :  { %6314 = vmatpush.bf16.msrb.mxu1 %v8537_v62  ;;  %v9349_v47 = vor.u32 %v10280_v55, %v9348_v3 }
 0x3ed   :  { %6354 = vmatpush.bf16.msra.mxu0 %v9181_v34 }
 0x3ee   :  { %6315 = vmatpush.bf16.msrb.mxu1 %v8509_v0 }
 0x3f1   :  { %6355 = vmatpush.bf16.msra.mxu0 %v9153_v43 }
 0x3f2   :  { %6316 = vmatpush.bf16.msrb.mxu1 %v8481_v13 }
 0x3f3   :  { %v6150_v40 = vpop.f32.mrf.mxu0 }
 0x3f4   :  { %v6111_v42 = vpop.f32.mrf.mxu1 }
 0x3f5   :  { %6356 = vmatpush.bf16.msra.mxu0 %v9125_v19  ;;  %v6112_v57 = vadd.f32 %v6111_v42, %v6099_v2 }
 0x3f6   :  { %6317 = vmatpush.bf16.msrb.mxu1 %v8453_v23 }
 0x3f7   :  { %v6125_v20 = vadd.f32 %v10968_v29, %v6112_v57 }
 0x3f8   :  { %6357 = vmatmul.bf16.vlgmr.msra.gmra.mxu0 %v10843_v30  ;;  %v9433_v30 = vor.u32 %v10301_v28, %v9432_v39 }
 0x3f9   :  { %6318 = vmatmul.bf16.vlgmr.msrb.gmra.mxu1 %v10821_v52  ;;  %v6189_v52 = vpop.f32.mrf.mxu3  ;;  %v6138_v34 = vadd.f32 %v10973_v15, %v6125_v20 }
 0x3fa   :  { %6362 = vmatpush.bf16.msra.mxu1 %v9545_v24 }
 0x3fb   :  { %v6152_v36 = vpop.f32.mrf.mxu0  ;;  %v6151_v26 = vadd.f32 %v6150_v40, %v6138_v34 }
 0x3fc   :  { %v6113_v54 = vpop.f32.mrf.mxu1 }
 0x3fe   :  { %6363 = vmatpush.bf16.msra.mxu1 %v9517_v27  ;;  %v6176_v38 = vpop.f32.mrf.mxu2 }
 0x3ff   :  { %v6177_v18 = vadd.f32 %v6176_v38, %v3341_v41 }
 0x401   :  { %v6190_v37 = vadd.f32 %v6189_v52, %v6177_v18  ;;  %v6191_v62 = vpop.f32.mrf.mxu3 }
 0x402   :  { %6364 = vmatpush.bf16.msra.mxu1 %v9489_v59 }
 0x406   :  { %6365 = vmatpush.bf16.msra.mxu1 %v9461_v51  ;;  %v6178_v45 = vpop.f32.mrf.mxu2 }
 0x40a   :  { %6366 = vmatpush.bf16.msra.mxu1 %v9433_v30 }
 0x40e   :  { %6367 = vmatpush.bf16.msra.mxu1 %v9405_v4 }
 0x412   :  { %6368 = vmatpush.bf16.msra.mxu1 %v9377_v53 }
 0x415   :  { %v6202_v6 = vpop.f32.mrf.mxu0 }
 0x416   :  { %6369 = vmatpush.bf16.msra.mxu1 %v9349_v47  ;;  %v6163_v63 = vpop.f32.mrf.mxu1  ;;  %v6203_v5 = vadd.f32 %v6202_v6, %v6190_v37 }
 0x417   :  { %v6164_v49 = vadd.f32 %v6163_v63, %v6151_v26 }
 0x418   :  { %v6241_v7 = vpop.f32.mrf.mxu3 }
 0x419   :  { %6370 = vmatmul.bf16.vlgmr.msra.gmra.mxu1 %v10852_v12  ;;  %10356 = vtanh.f32 %v6164_v49  ;;  %v3342_v12 = vperm.slane %v3328_v50, 0 }
 0x41d   :  { %v6204_v61 = vpop.f32.mrf.mxu0 }
 0x41e   :  { %v6228_v0 = vpop.f32.mrf.mxu2  ;;  %v6165_v43 = vpop.f32.mrf.mxu1 }
 0x41f   :  { %v10357_v48 = vpop.eup %10356 }
 0x420   :  { %6386 = vst [vmem:[#allocation17 + $0x20] sm:$0xff] %v10357_v48  ;;  %v6243_v56 = vpop.f32.mrf.mxu3 }
 0x426   :  { %v6230_v8 = vpop.f32.mrf.mxu2 }
 0x435   :  { %v6254_v13 = vpop.f32.mrf.mxu0 }
 0x436   :  { %v6215_v14 = vpop.f32.mrf.mxu1 }
 0x437   :  { %v6216_v23 = vadd.f32 %v6215_v14, %v6203_v5 }
 0x438   :  { %v6293_v1 = vpop.f32.mrf.mxu3 }
 0x439   :  { %v6229_v24 = vadd.f32 %v6228_v0, %v6216_v23 }
 0x43b   :  { %v6242_v35 = vadd.f32 %v6241_v7, %v6229_v24 }
 0x43d   :  { %v6256_v60 = vpop.f32.mrf.mxu0  ;;  %v6255_v27 = vadd.f32 %v6254_v13, %v6242_v35 }
 0x43e   :  { %v6280_v29 = vpop.f32.mrf.mxu2  ;;  %v6217_v17 = vpop.f32.mrf.mxu1 }
 0x43f   :  { %v6281_v15 = vadd.f32 %v6280_v29, %v3342_v12 }
 0x440   :  { %v6295_v19 = vpop.f32.mrf.mxu3 }
 0x441   :  { %v6294_v11 = vadd.f32 %v6293_v1, %v6281_v15 }
 0x446   :  { %v6282_v16 = vpop.f32.mrf.mxu2 }
 0x453   :  { %v6306_v9 = vpop.f32.mrf.mxu0 }
 0x454   :  { %v6307_v42 = vadd.f32 %v6306_v9, %v6294_v11 }
 0x456   :  { %v6267_v22 = vpop.f32.mrf.mxu1 }
 0x457   :  { %v6268_v58 = vadd.f32 %v6267_v22, %v6255_v27 }
 0x459   :  { %10358 = vtanh.f32 %v6268_v58 }
 0x45b   :  { %v6345_v59 = vpop.f32.mrf.mxu3  ;;  %v6308_v32 = vpop.f32.mrf.mxu0 }
 0x45e   :  { %v6332_v25 = vpop.f32.mrf.mxu2  ;;  %v6269_v33 = vpop.f32.mrf.mxu1 }
 0x45f   :  { %v10359_v51 = vpop.eup %10358 }
 0x460   :  { %6387 = vst [vmem:[#allocation17 + $0x28] sm:$0xff] %v10359_v51 }
 0x463   :  { %v6347_v38 = vpop.f32.mrf.mxu3 }
 0x466   :  { %v6334_v31 = vpop.f32.mrf.mxu2 }
 0x475   :  { %v6358_v39 = vpop.f32.mrf.mxu0 }
 0x476   :  { %v6319_v28 = vpop.f32.mrf.mxu1 }
 0x477   :  { %v6320_v30 = vadd.f32 %v6319_v28, %v6307_v42 }
 0x479   :  { %v6333_v10 = vadd.f32 %v6332_v25, %v6320_v30 }
 0x47b   :  { %v6346_v44 = vadd.f32 %v6345_v59, %v6333_v10 }
 0x47d   :  { %v6360_v40 = vpop.f32.mrf.mxu0  ;;  %v6359_v18 = vadd.f32 %v6358_v39, %v6346_v44 }
 0x47e   :  { %v6321_v41 = vpop.f32.mrf.mxu1 }
 0x496   :  { %v6371_v52 = vpop.f32.mrf.mxu1 }
 0x497   :  { %v6372_v4 = vadd.f32 %v6371_v52, %v6359_v18 }
 0x499   :  { %10360 = vtanh.f32 %v6372_v4 }
 0x49e   :  { %v6373_v37 = vpop.f32.mrf.mxu1 }
 0x49f   :  { %v10361_v45 = vpop.eup %10360 }
 0x4a0   :  { %6388 = vst [vmem:[#allocation17 + $0x30] sm:$0xff] %v10361_v45 }
 0x4a1   :  { %6399 = dma.vmem_to_hbm [thread:$0]  %s6395_s8, 896, %s6397_s13, [#allocation4]  }
 0x4a2   :  { %10613 = dma.done.wait [#allocation4], 896  }
 0x4a3   :  { %10614 = vsyncadd [#allocation4], 4294966400 }
 0x4a4   :  { %6404 = vsyncpa [#allocation3], 1 }
 0x4a5   :  { %6405 = vsyncpa [#allocation6], 1 }
 0x4a6   :  { %6406 = vsyncpa [#allocation9], 1 }
 0x4a7   :  { %6407 = vsyncpa [#allocation12], 1 }
 0x4a8   :  { %6408 = vsyncpa [#allocation15], 1 }
 0x4a9   :  { %6409 = vsyncpa [#allocation4], 1 }

</bundles_post_ra>
